<compile_context>
chip_gen: v7x
topology: tpu7x:2x2x1
jax: 0.10.0
libtpu: 0.0.40
codegen_flags: <defaults>
</compile_context>

<pallas_src>
import jax
import jax.numpy as jnp
import numpy as np
from jax.experimental import pallas as pl
from jax.experimental.pallas import tpu as pltpu

EPS = 1e-5
F32 = jnp.float32


# ----------------------------------------------------------------------------
# Static descriptor of one parameter's slice inside the packed slab.
# NOT registered as a pytree node -> survives tree_unflatten as a leaf.
# ----------------------------------------------------------------------------
class _P:
    __slots__ = ("off", "rows", "cols")

    def __init__(self, off, rows, cols):
        self.off, self.rows, self.cols = off, rows, cols


# ----------------------------------------------------------------------------
# Fused Pallas kernel: whole encoder, whole batch, one invocation.
# ----------------------------------------------------------------------------
def _make_fused_kernel(meta, batch):
    def _dot(a, b):
        return jnp.dot(a, b, preferred_element_type=F32)

    def kernel(past_ref, future_ref, static_ref, slab_ref, o_ref):
        def G(s):  # static slice into the packed parameter slab
            return slab_ref[s.off:s.off + s.rows, 0:s.cols]

        def ln(z, g, bt):
            # Fused single-pass LayerNorm over the full [L, C] slab
            # (torch normalized_shape=[L, C]):  var = E[z^2] - mu^2.
            inv_n = 1.0 / z.size
            s1 = jnp.sum(z)
            s2 = jnp.sum(z * z)
            mu = s1 * inv_n
            var = s2 * inv_n - mu * mu
            return (z - mu) * jax.lax.rsqrt(var + EPS) * g + bt

        def feat_plain(x, fm):
            # plain FeaturalResBlock (used for the (1, S) static row)
            res = _dot(x, G(fm['WrT'])) + G(fm['br'])
            h = jnp.maximum(_dot(x, G(fm['W1T'])) + G(fm['b1']), 0.0)
            y = _dot(h, G(fm['W2T'])) + G(fm['b2'])
            return ln(res + y, G(fm['gamma']), G(fm['beta']))

        def cond_feat(x, s_row, cm):
            # ConditionalFeaturalResBlock with concat([x, repeat(s)]) folded
            # into split weights:  x @ Wx + broadcast(s @ Ws)
            s = feat_plain(s_row, cm['static'])                   # (1, H)
            bm = cm['block']
            s_h = _dot(s, G(bm['W1sT']))                          # (1, H)
            s_r = _dot(s, G(bm['WrsT']))                          # (1, H)
            res = _dot(x, G(bm['WrxT'])) + s_r + G(bm['br'])
            h = jnp.maximum(_dot(x, G(bm['W1xT'])) + s_h + G(bm['b1']), 0.0)
            y = _dot(h, G(bm['W2T'])) + G(bm['b2'])
            return ln(res + y, G(bm['gamma']), G(bm['beta']))

        def temporal_res(x, tm):
            # time-mixing linear (relu) + residual + LayerNorm[L, C]
            t = jnp.maximum(_dot(G(tm['W']), x) + G(tm['b']), 0.0)
            return ln(x + t, G(tm['gamma']), G(tm['beta']))

        # Static Python loop over the batch: independent per-element chains
        # interleave inside one invocation (no serial grid steps).
        for b in range(batch):
            s_row = static_ref[b]                                  # (1, S)
            past = past_ref[b]                                     # (Lin, Cp)
            future = future_ref[b]                                 # (L, Cf)

            tl = meta['past_temporal']
            past = _dot(G(tl['W']), past) + G(tl['b'])             # (L, Cp)

            past = cond_feat(past, s_row, meta['past_featural'])        # (L, H)
            future = cond_feat(future, s_row, meta['future_featural'])  # (L, H)

            # in-vreg channel concat (32 + 32 lanes -> one 64-lane slab)
            x = jnp.concatenate([past, future], axis=-1)           # (L, 2H)

            for bm in meta['blocks']:
                x = temporal_res(x, bm['temporal'])
                x = cond_feat(x, s_row, bm['ffwd'])

            o_ref[b] = x

    return kernel


# ----------------------------------------------------------------------------
# One-time parameter restructuring (transpose / split / pre-broadcast biases)
# ----------------------------------------------------------------------------
def prepare_params(params):
    H = params['past_featural_block']['static_block']['W2'].shape[0]
    L = params['past_temporal_linear']['W'].shape[0]          # output_len

    def prep_plain(fp):
        return dict(W1T=fp['W1'].T, b1=fp['b1'][None, :],
                    W2T=fp['W2'].T, b2=fp['b2'][None, :],
                    WrT=fp['Wr'].T, br=fp['br'][None, :],
                    gamma=fp['gamma'], beta=fp['beta'])

    def bfull(v):                                              # (C,) -> (L, C)
        return jnp.broadcast_to(v[None, :], (L, v.shape[0]))

    def prep_cond(cp):
        b = cp['block']
        Cx = b['W1'].shape[1] - H                              # x-part width
        return dict(
            static=prep_plain(cp['static_block']),
            block=dict(
                W1xT=b['W1'][:, :Cx].T, W1sT=b['W1'][:, Cx:].T, b1=bfull(b['b1']),
                W2T=b['W2'].T, b2=bfull(b['b2']),
                WrxT=b['Wr'][:, :Cx].T, WrsT=b['Wr'][:, Cx:].T, br=bfull(b['br']),
                gamma=b['gamma'], beta=b['beta']))

    Cp = params['past_featural_block']['block']['W1'].shape[1] - H
    tl = params['past_temporal_linear']
    return dict(
        past_temporal=dict(
            W=tl['W'],
            b=jnp.broadcast_to(tl['b'][:, None], (L, Cp))),
        past_featural=prep_cond(params['past_featural_block']),
        future_featural=prep_cond(params['future_featural_block']),
        blocks=[dict(
            temporal=dict(
                W=bp['temporal']['W'],
                b=jnp.broadcast_to(bp['temporal']['b'][:, None],
                                   bp['temporal']['gamma'].shape),
                gamma=bp['temporal']['gamma'],
                beta=bp['temporal']['beta']),
            ffwd=prep_cond(bp['ffwd']))
            for bp in params['blocks']])


def pack_params(params):
    """Pack every prepared parameter into ONE (8,128)-tile-padded f32 slab.

    Returns (slab, meta): meta mirrors the prepared structure with static _P
    (offset, rows, cols) descriptors used at kernel-build time.
    """
    prepared = prepare_params(params)
    leaves, treedef = jax.tree_util.tree_flatten(prepared)
    padw = 128 * max(pl.cdiv(int(a.shape[-1]), 128) for a in leaves)

    chunks, specs, off = [], [], 0
    for a in leaves:
        a = jnp.asarray(a, F32)
        r, c = a.shape
        rp = 8 * pl.cdiv(r, 8)
        chunks.append(jnp.zeros((rp, padw), F32).at[:r, :c].set(a))
        specs.append(_P(off, r, c))
        off += rp
    slab = jnp.concatenate(chunks, axis=0)
    meta = jax.tree_util.tree_unflatten(treedef, specs)
    return slab, meta


# ----------------------------------------------------------------------------
# Pallas wrapper: single fused pallas_call over batch + whole encoder
# ----------------------------------------------------------------------------
def make_tsmixer_encoder(params):
    slab, meta = pack_params(params)
    n_block = len(meta['blocks'])
    H = meta['past_featural']['block']['W2T'].cols
    L = meta['past_featural']['block']['gamma'].rows
    Cout = H if n_block > 0 else 2 * H

    def fwd(past, future, static, slab):
        B, Lin, Cp = past.shape
        _, Lf, Cf = future.shape
        S = static.shape[1]
        kernel = _make_fused_kernel(meta, B)
        return pl.pallas_call(
            kernel,
            out_shape=jax.ShapeDtypeStruct((B, L, Cout), F32),
            grid=(1,),
            in_specs=[
                pl.BlockSpec((B, Lin, Cp), lambda i: (0, 0, 0)),
                pl.BlockSpec((B, Lf, Cf), lambda i: (0, 0, 0)),
                pl.BlockSpec((B, 1, S), lambda i: (0, 0, 0)),
                pl.BlockSpec(slab.shape, lambda i: (0, 0)),
            ],
            out_specs=pl.BlockSpec((B, L, Cout), lambda i: (0, 0, 0)),
            compiler_params=pltpu.CompilerParams(
                dimension_semantics=("arbitrary",)),
        )(past, future, static[:, None, :], slab)

    jit_fwd = jax.jit(fwd)
    return lambda past, future, static: jit_fwd(past, future, static, slab)


# ----------------------------------------------------------------------------
# Pure-JAX reference (mirrors the PyTorch module exactly) for verification
# ----------------------------------------------------------------------------
def _ln2d(z, g, b):
    mu = z.mean(axis=(1, 2), keepdims=True)
    var = ((z - mu) ** 2).mean(axis=(1, 2), keepdims=True)
    return (z - mu) / jnp.sqrt(var + EPS) * g + b


def featural_resblock_ref(x, p):
    res = x @ p['Wr'].T + p['br']
    h = jax.nn.relu(x @ p['W1'].T + p['b1'])
    y = h @ p['W2'].T + p['b2']
    return _ln2d(res + y, p['gamma'], p['beta'])


def temporal_linear_ref(x, W, b):
    return jnp.einsum('blc,ml->bmc', x, W) + b[None, :, None]


def temporal_resblock_ref(x, p):
    t = jax.nn.relu(temporal_linear_ref(x, p['W'], p['b']))
    return _ln2d(x + t, p['gamma'], p['beta'])


def cond_featural_ref(x, static, p, L):
    s = featural_resblock_ref(static[:, None, :], p['static_block'])
    s = jnp.repeat(s, L, axis=1)
    return featural_resblock_ref(jnp.concatenate([x, s], axis=2), p['block'])


def tsmixer_encoder_ref(past, future, static, params):
    Lout = params['past_temporal_linear']['W'].shape[0]
    past = temporal_linear_ref(past, params['past_temporal_linear']['W'],
                               params['past_temporal_linear']['b'])
    past = cond_featural_ref(past, static, params['past_featural_block'], Lout)
    future = cond_featural_ref(future, static, params['future_featural_block'], Lout)
    x = jnp.concatenate([past, future], axis=2)
    for bp in params['blocks']:
        x = temporal_resblock_ref(x, bp['temporal'])
        x = cond_featural_ref(x, static, bp['ffwd'], Lout)
    return x


# ----------------------------------------------------------------------------
# Deterministic parameter init (PyTorch nn.Linear-style shapes & bounds)
# ----------------------------------------------------------------------------
def init_linear(key, out_f, in_f):
    k1, k2 = jax.random.split(key)
    bound = 1.0 / np.sqrt(in_f)
    W = jax.random.uniform(k1, (out_f, in_f), F32, -bound, bound)
    b = jax.random.uniform(k2, (out_f,), F32, -bound, bound)
    return W, b


def init_featural_resblock(key, L, Cin, H, Cout):
    assert Cin != Cout  # res_linear always present in this configuration
    ks = jax.random.split(key, 3)
    W1, b1 = init_linear(ks[0], H, Cin)
    W2, b2 = init_linear(ks[1], Cout, H)
    Wr, br = init_linear(ks[2], Cout, Cin)
    return dict(W1=W1, b1=b1, W2=W2, b2=b2, Wr=Wr, br=br,
                gamma=jnp.ones((L, Cout), F32),
                beta=jnp.zeros((L, Cout), F32))


def init_cond_featural(key, L, Cin, H, Cout, S):
    k1, k2 = jax.random.split(key)
    return dict(static_block=init_featural_resblock(k1, 1, S, H, H),
                block=init_featural_resblock(k2, L, Cin + H, H, Cout))


def init_encoder(key, Lin, Lout, Cp, Cf, S, H, n_block):
    keys = jax.random.split(key, 3 + n_block)
    W, b = init_linear(keys[0], Lout, Lin)
    params = dict(
        past_temporal_linear=dict(W=W, b=b),
        past_featural_block=init_cond_featural(keys[1], Lout, Cp, H, H, S),
        future_featural_block=init_cond_featural(keys[2], Lout, Cf, H, H, S),
        blocks=[],
    )
    for i in range(n_block):
        kb1, kb2 = jax.random.split(keys[3 + i])
        Cin = 2 * H if i == 0 else H
        Wt, bt = init_linear(kb1, Lout, Lout)
        params['blocks'].append(dict(
            temporal=dict(W=Wt, b=bt,
                          gamma=jnp.ones((Lout, Cin), F32),
                          beta=jnp.zeros((Lout, Cin), F32)),
            ffwd=init_cond_featural(kb2, Lout, Cin, H, H, S),
        ))
    return params


# ----------------------------------------------------------------------------
if __name__ == "__main__":
    key = jax.random.PRNGKey(0)
    B, Lin, Lout = 2, 12, 8
    Cp, Cf, S, H, n_block = 5, 4, 3, 32, 2

    kp, kf, ks, kw = jax.random.split(key, 4)
    past = jax.random.normal(kp, (B, Lin, Cp), F32)
    future = jax.random.normal(kf, (B, Lout, Cf), F32)
    static = jax.random.normal(ks, (B, S), F32)

    params = init_encoder(kw, Lin, Lout, Cp, Cf, S, H, n_block)

    encoder = make_tsmixer_encoder(params)
    out = jax.block_until_ready(encoder(past, future, static))
    assert out.shape == (B, Lout, H)

    ref = tsmixer_encoder_ref(past, future, static, params)
    np.testing.assert_allclose(np.asarray(out), np.asarray(ref), rtol=2e-3, atol=2e-3)

    print("KERNEL_OK")
</pallas_src>

<mosaic_0001>
module attributes {stable_mosaic.version = 11 : i64} {
  func.func @kernel(%arg0: i32, %arg1: memref<2x12x5xf32, #tpu.memory_space<vmem>>, %arg2: memref<2x8x4xf32, #tpu.memory_space<vmem>>, %arg3: memref<2x1x3xf32, #tpu.memory_space<vmem>>, %arg4: memref<1200x128xf32, #tpu.memory_space<vmem>>, %arg5: memref<2x8x32xf32, #tpu.memory_space<vmem>>) attributes {dimension_semantics = [#tpu.dimension_semantics<arbitrary>], iteration_bounds = array<i64: 1>, scalar_prefetch = 0 : i64, scratch_operands = 0 : i64, tpu.core_type = #tpu.core_type<tc>, window_params = [{pipeline_mode = #tpu.pipeline_mode<synchronous>, transform_indices = @transform_0, window_bounds = array<i64: 2, 12, 5>}, {pipeline_mode = #tpu.pipeline_mode<synchronous>, transform_indices = @transform_1, window_bounds = array<i64: 2, 8, 4>}, {pipeline_mode = #tpu.pipeline_mode<synchronous>, transform_indices = @transform_2, window_bounds = array<i64: 2, 1, 3>}, {pipeline_mode = #tpu.pipeline_mode<synchronous>, transform_indices = @transform_3, window_bounds = array<i64: 1200, 128>}, {pipeline_mode = #tpu.pipeline_mode<synchronous>, transform_indices = @transform_4, window_bounds = array<i64: 2, 8, 32>}]} {
    %c0 = arith.constant 0 : index
    %c0_0 = arith.constant 0 : index
    %c0_1 = arith.constant 0 : index
    %0 = vector.load %arg3[%c0, %c0_0, %c0_1] : memref<2x1x3xf32, #tpu.memory_space<vmem>>, vector<1x1x3xf32>
    %1 = vector.shape_cast %0 : vector<1x1x3xf32> to vector<1x3xf32>
    %c0_2 = arith.constant 0 : index
    %c0_3 = arith.constant 0 : index
    %c0_4 = arith.constant 0 : index
    %2 = vector.load %arg1[%c0_2, %c0_3, %c0_4] : memref<2x12x5xf32, #tpu.memory_space<vmem>>, vector<1x12x5xf32>
    %3 = vector.shape_cast %2 : vector<1x12x5xf32> to vector<12x5xf32>
    %c0_5 = arith.constant 0 : index
    %c0_6 = arith.constant 0 : index
    %c0_7 = arith.constant 0 : index
    %4 = vector.load %arg2[%c0_5, %c0_6, %c0_7] : memref<2x8x4xf32, #tpu.memory_space<vmem>>, vector<1x8x4xf32>
    %5 = vector.shape_cast %4 : vector<1x8x4xf32> to vector<8x4xf32>
    %c1184 = arith.constant 1184 : index
    %c0_8 = arith.constant 0 : index
    %6 = vector.load %arg4[%c1184, %c0_8] : memref<1200x128xf32, #tpu.memory_space<vmem>>, vector<8x12xf32>
    %cst = arith.constant dense<0.000000e+00> : vector<8x5xf32>
    %7 = tpu.matmul %6, %3, %cst {dimension_numbers = #tpu.dot_dimension_numbers<[1], [0], [0], [1], [0, 0, 1, 1], [], []>} : vector<8x12xf32>, vector<12x5xf32>, vector<8x5xf32> -> vector<8x5xf32>
    %c1192 = arith.constant 1192 : index
    %c0_9 = arith.constant 0 : index
    %8 = vector.load %arg4[%c1192, %c0_9] : memref<1200x128xf32, #tpu.memory_space<vmem>>, vector<8x5xf32>
    %9 = arith.addf %7, %8 : vector<8x5xf32>
    %c1136 = arith.constant 1136 : index
    %c0_10 = arith.constant 0 : index
    %10 = vector.load %arg4[%c1136, %c0_10] : memref<1200x128xf32, #tpu.memory_space<vmem>>, vector<3x32xf32>
    %cst_11 = arith.constant dense<0.000000e+00> : vector<1x32xf32>
    %11 = tpu.matmul %1, %10, %cst_11 {dimension_numbers = #tpu.dot_dimension_numbers<[1], [0], [0], [1], [0, 0, 1, 1], [], []>} : vector<1x3xf32>, vector<3x32xf32>, vector<1x32xf32> -> vector<1x32xf32>
    %c1168 = arith.constant 1168 : index
    %c0_12 = arith.constant 0 : index
    %12 = vector.load %arg4[%c1168, %c0_12] : memref<1200x128xf32, #tpu.memory_space<vmem>>, vector<1x32xf32>
    %13 = arith.addf %11, %12 : vector<1x32xf32>
    %c1096 = arith.constant 1096 : index
    %c0_13 = arith.constant 0 : index
    %14 = vector.load %arg4[%c1096, %c0_13] : memref<1200x128xf32, #tpu.memory_space<vmem>>, vector<3x32xf32>
    %cst_14 = arith.constant dense<0.000000e+00> : vector<1x32xf32>
    %15 = tpu.matmul %1, %14, %cst_14 {dimension_numbers = #tpu.dot_dimension_numbers<[1], [0], [0], [1], [0, 0, 1, 1], [], []>} : vector<1x3xf32>, vector<3x32xf32>, vector<1x32xf32> -> vector<1x32xf32>
    %c1144 = arith.constant 1144 : index
    %c0_15 = arith.constant 0 : index
    %16 = vector.load %arg4[%c1144, %c0_15] : memref<1200x128xf32, #tpu.memory_space<vmem>>, vector<1x32xf32>
    %17 = arith.addf %15, %16 : vector<1x32xf32>
    %cst_16 = arith.constant 0.000000e+00 : f32
    %18 = vector.broadcast %cst_16 : f32 to vector<1x32xf32>
    %19 = arith.maximumf %17, %18 : vector<1x32xf32>
    %c1104 = arith.constant 1104 : index
    %c0_17 = arith.constant 0 : index
    %20 = vector.load %arg4[%c1104, %c0_17] : memref<1200x128xf32, #tpu.memory_space<vmem>>, vector<32x32xf32>
    %cst_18 = arith.constant dense<0.000000e+00> : vector<1x32xf32>
    %21 = tpu.matmul %19, %20, %cst_18 {dimension_numbers = #tpu.dot_dimension_numbers<[1], [0], [0], [1], [0, 0, 1, 1], [], []>} : vector<1x32xf32>, vector<32x32xf32>, vector<1x32xf32> -> vector<1x32xf32>
    %c1152 = arith.constant 1152 : index
    %c0_19 = arith.constant 0 : index
    %22 = vector.load %arg4[%c1152, %c0_19] : memref<1200x128xf32, #tpu.memory_space<vmem>>, vector<1x32xf32>
    %23 = arith.addf %21, %22 : vector<1x32xf32>
    %24 = arith.addf %13, %23 : vector<1x32xf32>
    %c1176 = arith.constant 1176 : index
    %c0_20 = arith.constant 0 : index
    %25 = vector.load %arg4[%c1176, %c0_20] : memref<1200x128xf32, #tpu.memory_space<vmem>>, vector<1x32xf32>
    %c1160 = arith.constant 1160 : index
    %c0_21 = arith.constant 0 : index
    %26 = vector.load %arg4[%c1160, %c0_21] : memref<1200x128xf32, #tpu.memory_space<vmem>>, vector<1x32xf32>
    %27 = vector.shape_cast %24 : vector<1x32xf32> to vector<1x1x32xf32>
    %cst_22 = arith.constant dense<0.000000e+00> : vector<1xf32>
    %28 = vector.multi_reduction <add>, %27, %cst_22 [1, 2] : vector<1x1x32xf32> to vector<1xf32>
    %29 = vector.shape_cast %28 : vector<1xf32> to vector<1x1x1xf32>
    %30 = vector.extract %29[0, 0, 0] : f32 from vector<1x1x1xf32>
    %31 = arith.mulf %24, %24 : vector<1x32xf32>
    %32 = vector.shape_cast %31 : vector<1x32xf32> to vector<1x1x32xf32>
    %cst_23 = arith.constant dense<0.000000e+00> : vector<1xf32>
    %33 = vector.multi_reduction <add>, %32, %cst_23 [1, 2] : vector<1x1x32xf32> to vector<1xf32>
    %34 = vector.shape_cast %33 : vector<1xf32> to vector<1x1x1xf32>
    %35 = vector.extract %34[0, 0, 0] : f32 from vector<1x1x1xf32>
    %cst_24 = arith.constant 3.125000e-02 : f32
    %36 = arith.mulf %30, %cst_24 : f32
    %cst_25 = arith.constant 3.125000e-02 : f32
    %37 = arith.mulf %35, %cst_25 : f32
    %38 = arith.mulf %36, %36 : f32
    %39 = arith.subf %37, %38 : f32
    %40 = vector.broadcast %36 : f32 to vector<1x32xf32>
    %41 = arith.subf %24, %40 : vector<1x32xf32>
    %cst_26 = arith.constant 9.99999974E-6 : f32
    %42 = arith.addf %39, %cst_26 : f32
    %43 = math.rsqrt %42 : f32
    %44 = vector.broadcast %43 : f32 to vector<1x32xf32>
    %45 = arith.mulf %41, %44 : vector<1x32xf32>
    %46 = arith.mulf %45, %25 : vector<1x32xf32>
    %47 = arith.addf %46, %26 : vector<1x32xf32>
    %c944 = arith.constant 944 : index
    %c0_27 = arith.constant 0 : index
    %48 = vector.load %arg4[%c944, %c0_27] : memref<1200x128xf32, #tpu.memory_space<vmem>>, vector<32x32xf32>
    %cst_28 = arith.constant dense<0.000000e+00> : vector<1x32xf32>
    %49 = tpu.matmul %47, %48, %cst_28 {dimension_numbers = #tpu.dot_dimension_numbers<[1], [0], [0], [1], [0, 0, 1, 1], [], []>} : vector<1x32xf32>, vector<32x32xf32>, vector<1x32xf32> -> vector<1x32xf32>
    %c1016 = arith.constant 1016 : index
    %c0_29 = arith.constant 0 : index
    %50 = vector.load %arg4[%c1016, %c0_29] : memref<1200x128xf32, #tpu.memory_space<vmem>>, vector<32x32xf32>
    %cst_30 = arith.constant dense<0.000000e+00> : vector<1x32xf32>
    %51 = tpu.matmul %47, %50, %cst_30 {dimension_numbers = #tpu.dot_dimension_numbers<[1], [0], [0], [1], [0, 0, 1, 1], [], []>} : vector<1x32xf32>, vector<32x32xf32>, vector<1x32xf32> -> vector<1x32xf32>
    %c1048 = arith.constant 1048 : index
    %c0_31 = arith.constant 0 : index
    %52 = vector.load %arg4[%c1048, %c0_31] : memref<1200x128xf32, #tpu.memory_space<vmem>>, vector<5x32xf32>
    %cst_32 = arith.constant dense<0.000000e+00> : vector<8x32xf32>
    %53 = tpu.matmul %9, %52, %cst_32 {dimension_numbers = #tpu.dot_dimension_numbers<[1], [0], [0], [1], [0, 0, 1, 1], [], []>} : vector<8x5xf32>, vector<5x32xf32>, vector<8x32xf32> -> vector<8x32xf32>
    %54 = vector.broadcast %51 : vector<1x32xf32> to vector<8x32xf32>
    %55 = arith.addf %53, %54 : vector<8x32xf32>
    %c1080 = arith.constant 1080 : index
    %c0_33 = arith.constant 0 : index
    %56 = vector.load %arg4[%c1080, %c0_33] : memref<1200x128xf32, #tpu.memory_space<vmem>>, vector<8x32xf32>
    %57 = arith.addf %55, %56 : vector<8x32xf32>
    %c976 = arith.constant 976 : index
    %c0_34 = arith.constant 0 : index
    %58 = vector.load %arg4[%c976, %c0_34] : memref<1200x128xf32, #tpu.memory_space<vmem>>, vector<5x32xf32>
    %cst_35 = arith.constant dense<0.000000e+00> : vector<8x32xf32>
    %59 = tpu.matmul %9, %58, %cst_35 {dimension_numbers = #tpu.dot_dimension_numbers<[1], [0], [0], [1], [0, 0, 1, 1], [], []>} : vector<8x5xf32>, vector<5x32xf32>, vector<8x32xf32> -> vector<8x32xf32>
    %60 = vector.broadcast %49 : vector<1x32xf32> to vector<8x32xf32>
    %61 = arith.addf %59, %60 : vector<8x32xf32>
    %c1056 = arith.constant 1056 : index
    %c0_36 = arith.constant 0 : index
    %62 = vector.load %arg4[%c1056, %c0_36] : memref<1200x128xf32, #tpu.memory_space<vmem>>, vector<8x32xf32>
    %63 = arith.addf %61, %62 : vector<8x32xf32>
    %cst_37 = arith.constant 0.000000e+00 : f32
    %64 = vector.broadcast %cst_37 : f32 to vector<8x32xf32>
    %65 = arith.maximumf %63, %64 : vector<8x32xf32>
    %c984 = arith.constant 984 : index
    %c0_38 = arith.constant 0 : index
    %66 = vector.load %arg4[%c984, %c0_38] : memref<1200x128xf32, #tpu.memory_space<vmem>>, vector<32x32xf32>
    %cst_39 = arith.constant dense<0.000000e+00> : vector<8x32xf32>
    %67 = tpu.matmul %65, %66, %cst_39 {dimension_numbers = #tpu.dot_dimension_numbers<[1], [0], [0], [1], [0, 0, 1, 1], [], []>} : vector<8x32xf32>, vector<32x32xf32>, vector<8x32xf32> -> vector<8x32xf32>
    %c1064 = arith.constant 1064 : index
    %c0_40 = arith.constant 0 : index
    %68 = vector.load %arg4[%c1064, %c0_40] : memref<1200x128xf32, #tpu.memory_space<vmem>>, vector<8x32xf32>
    %69 = arith.addf %67, %68 : vector<8x32xf32>
    %70 = arith.addf %57, %69 : vector<8x32xf32>
    %c1088 = arith.constant 1088 : index
    %c0_41 = arith.constant 0 : index
    %71 = vector.load %arg4[%c1088, %c0_41] : memref<1200x128xf32, #tpu.memory_space<vmem>>, vector<8x32xf32>
    %c1072 = arith.constant 1072 : index
    %c0_42 = arith.constant 0 : index
    %72 = vector.load %arg4[%c1072, %c0_42] : memref<1200x128xf32, #tpu.memory_space<vmem>>, vector<8x32xf32>
    %73 = vector.shape_cast %70 : vector<8x32xf32> to vector<1x8x32xf32>
    %cst_43 = arith.constant dense<0.000000e+00> : vector<1xf32>
    %74 = vector.multi_reduction <add>, %73, %cst_43 [1, 2] : vector<1x8x32xf32> to vector<1xf32>
    %75 = vector.shape_cast %74 : vector<1xf32> to vector<1x1x1xf32>
    %76 = vector.extract %75[0, 0, 0] : f32 from vector<1x1x1xf32>
    %77 = arith.mulf %70, %70 : vector<8x32xf32>
    %78 = vector.shape_cast %77 : vector<8x32xf32> to vector<1x8x32xf32>
    %cst_44 = arith.constant dense<0.000000e+00> : vector<1xf32>
    %79 = vector.multi_reduction <add>, %78, %cst_44 [1, 2] : vector<1x8x32xf32> to vector<1xf32>
    %80 = vector.shape_cast %79 : vector<1xf32> to vector<1x1x1xf32>
    %81 = vector.extract %80[0, 0, 0] : f32 from vector<1x1x1xf32>
    %cst_45 = arith.constant 3.906250e-03 : f32
    %82 = arith.mulf %76, %cst_45 : f32
    %cst_46 = arith.constant 3.906250e-03 : f32
    %83 = arith.mulf %81, %cst_46 : f32
    %84 = arith.mulf %82, %82 : f32
    %85 = arith.subf %83, %84 : f32
    %86 = vector.broadcast %82 : f32 to vector<8x32xf32>
    %87 = arith.subf %70, %86 : vector<8x32xf32>
    %cst_47 = arith.constant 9.99999974E-6 : f32
    %88 = arith.addf %85, %cst_47 : f32
    %89 = math.rsqrt %88 : f32
    %90 = vector.broadcast %89 : f32 to vector<8x32xf32>
    %91 = arith.mulf %87, %90 : vector<8x32xf32>
    %92 = arith.mulf %91, %71 : vector<8x32xf32>
    %93 = arith.addf %92, %72 : vector<8x32xf32>
    %c896 = arith.constant 896 : index
    %c0_48 = arith.constant 0 : index
    %94 = vector.load %arg4[%c896, %c0_48] : memref<1200x128xf32, #tpu.memory_space<vmem>>, vector<3x32xf32>
    %cst_49 = arith.constant dense<0.000000e+00> : vector<1x32xf32>
    %95 = tpu.matmul %1, %94, %cst_49 {dimension_numbers = #tpu.dot_dimension_numbers<[1], [0], [0], [1], [0, 0, 1, 1], [], []>} : vector<1x3xf32>, vector<3x32xf32>, vector<1x32xf32> -> vector<1x32xf32>
    %c928 = arith.constant 928 : index
    %c0_50 = arith.constant 0 : index
    %96 = vector.load %arg4[%c928, %c0_50] : memref<1200x128xf32, #tpu.memory_space<vmem>>, vector<1x32xf32>
    %97 = arith.addf %95, %96 : vector<1x32xf32>
    %c856 = arith.constant 856 : index
    %c0_51 = arith.constant 0 : index
    %98 = vector.load %arg4[%c856, %c0_51] : memref<1200x128xf32, #tpu.memory_space<vmem>>, vector<3x32xf32>
    %cst_52 = arith.constant dense<0.000000e+00> : vector<1x32xf32>
    %99 = tpu.matmul %1, %98, %cst_52 {dimension_numbers = #tpu.dot_dimension_numbers<[1], [0], [0], [1], [0, 0, 1, 1], [], []>} : vector<1x3xf32>, vector<3x32xf32>, vector<1x32xf32> -> vector<1x32xf32>
    %c904 = arith.constant 904 : index
    %c0_53 = arith.constant 0 : index
    %100 = vector.load %arg4[%c904, %c0_53] : memref<1200x128xf32, #tpu.memory_space<vmem>>, vector<1x32xf32>
    %101 = arith.addf %99, %100 : vector<1x32xf32>
    %cst_54 = arith.constant 0.000000e+00 : f32
    %102 = vector.broadcast %cst_54 : f32 to vector<1x32xf32>
    %103 = arith.maximumf %101, %102 : vector<1x32xf32>
    %c864 = arith.constant 864 : index
    %c0_55 = arith.constant 0 : index
    %104 = vector.load %arg4[%c864, %c0_55] : memref<1200x128xf32, #tpu.memory_space<vmem>>, vector<32x32xf32>
    %cst_56 = arith.constant dense<0.000000e+00> : vector<1x32xf32>
    %105 = tpu.matmul %103, %104, %cst_56 {dimension_numbers = #tpu.dot_dimension_numbers<[1], [0], [0], [1], [0, 0, 1, 1], [], []>} : vector<1x32xf32>, vector<32x32xf32>, vector<1x32xf32> -> vector<1x32xf32>
    %c912 = arith.constant 912 : index
    %c0_57 = arith.constant 0 : index
    %106 = vector.load %arg4[%c912, %c0_57] : memref<1200x128xf32, #tpu.memory_space<vmem>>, vector<1x32xf32>
    %107 = arith.addf %105, %106 : vector<1x32xf32>
    %108 = arith.addf %97, %107 : vector<1x32xf32>
    %c936 = arith.constant 936 : index
    %c0_58 = arith.constant 0 : index
    %109 = vector.load %arg4[%c936, %c0_58] : memref<1200x128xf32, #tpu.memory_space<vmem>>, vector<1x32xf32>
    %c920 = arith.constant 920 : index
    %c0_59 = arith.constant 0 : index
    %110 = vector.load %arg4[%c920, %c0_59] : memref<1200x128xf32, #tpu.memory_space<vmem>>, vector<1x32xf32>
    %111 = vector.shape_cast %108 : vector<1x32xf32> to vector<1x1x32xf32>
    %cst_60 = arith.constant dense<0.000000e+00> : vector<1xf32>
    %112 = vector.multi_reduction <add>, %111, %cst_60 [1, 2] : vector<1x1x32xf32> to vector<1xf32>
    %113 = vector.shape_cast %112 : vector<1xf32> to vector<1x1x1xf32>
    %114 = vector.extract %113[0, 0, 0] : f32 from vector<1x1x1xf32>
    %115 = arith.mulf %108, %108 : vector<1x32xf32>
    %116 = vector.shape_cast %115 : vector<1x32xf32> to vector<1x1x32xf32>
    %cst_61 = arith.constant dense<0.000000e+00> : vector<1xf32>
    %117 = vector.multi_reduction <add>, %116, %cst_61 [1, 2] : vector<1x1x32xf32> to vector<1xf32>
    %118 = vector.shape_cast %117 : vector<1xf32> to vector<1x1x1xf32>
    %119 = vector.extract %118[0, 0, 0] : f32 from vector<1x1x1xf32>
    %cst_62 = arith.constant 3.125000e-02 : f32
    %120 = arith.mulf %114, %cst_62 : f32
    %cst_63 = arith.constant 3.125000e-02 : f32
    %121 = arith.mulf %119, %cst_63 : f32
    %122 = arith.mulf %120, %120 : f32
    %123 = arith.subf %121, %122 : f32
    %124 = vector.broadcast %120 : f32 to vector<1x32xf32>
    %125 = arith.subf %108, %124 : vector<1x32xf32>
    %cst_64 = arith.constant 9.99999974E-6 : f32
    %126 = arith.addf %123, %cst_64 : f32
    %127 = math.rsqrt %126 : f32
    %128 = vector.broadcast %127 : f32 to vector<1x32xf32>
    %129 = arith.mulf %125, %128 : vector<1x32xf32>
    %130 = arith.mulf %129, %109 : vector<1x32xf32>
    %131 = arith.addf %130, %110 : vector<1x32xf32>
    %c704 = arith.constant 704 : index
    %c0_65 = arith.constant 0 : index
    %132 = vector.load %arg4[%c704, %c0_65] : memref<1200x128xf32, #tpu.memory_space<vmem>>, vector<32x32xf32>
    %cst_66 = arith.constant dense<0.000000e+00> : vector<1x32xf32>
    %133 = tpu.matmul %131, %132, %cst_66 {dimension_numbers = #tpu.dot_dimension_numbers<[1], [0], [0], [1], [0, 0, 1, 1], [], []>} : vector<1x32xf32>, vector<32x32xf32>, vector<1x32xf32> -> vector<1x32xf32>
    %c776 = arith.constant 776 : index
    %c0_67 = arith.constant 0 : index
    %134 = vector.load %arg4[%c776, %c0_67] : memref<1200x128xf32, #tpu.memory_space<vmem>>, vector<32x32xf32>
    %cst_68 = arith.constant dense<0.000000e+00> : vector<1x32xf32>
    %135 = tpu.matmul %131, %134, %cst_68 {dimension_numbers = #tpu.dot_dimension_numbers<[1], [0], [0], [1], [0, 0, 1, 1], [], []>} : vector<1x32xf32>, vector<32x32xf32>, vector<1x32xf32> -> vector<1x32xf32>
    %c808 = arith.constant 808 : index
    %c0_69 = arith.constant 0 : index
    %136 = vector.load %arg4[%c808, %c0_69] : memref<1200x128xf32, #tpu.memory_space<vmem>>, vector<4x32xf32>
    %cst_70 = arith.constant dense<0.000000e+00> : vector<8x32xf32>
    %137 = tpu.matmul %5, %136, %cst_70 {dimension_numbers = #tpu.dot_dimension_numbers<[1], [0], [0], [1], [0, 0, 1, 1], [], []>} : vector<8x4xf32>, vector<4x32xf32>, vector<8x32xf32> -> vector<8x32xf32>
    %138 = vector.broadcast %135 : vector<1x32xf32> to vector<8x32xf32>
    %139 = arith.addf %137, %138 : vector<8x32xf32>
    %c840 = arith.constant 840 : index
    %c0_71 = arith.constant 0 : index
    %140 = vector.load %arg4[%c840, %c0_71] : memref<1200x128xf32, #tpu.memory_space<vmem>>, vector<8x32xf32>
    %141 = arith.addf %139, %140 : vector<8x32xf32>
    %c736 = arith.constant 736 : index
    %c0_72 = arith.constant 0 : index
    %142 = vector.load %arg4[%c736, %c0_72] : memref<1200x128xf32, #tpu.memory_space<vmem>>, vector<4x32xf32>
    %cst_73 = arith.constant dense<0.000000e+00> : vector<8x32xf32>
    %143 = tpu.matmul %5, %142, %cst_73 {dimension_numbers = #tpu.dot_dimension_numbers<[1], [0], [0], [1], [0, 0, 1, 1], [], []>} : vector<8x4xf32>, vector<4x32xf32>, vector<8x32xf32> -> vector<8x32xf32>
    %144 = vector.broadcast %133 : vector<1x32xf32> to vector<8x32xf32>
    %145 = arith.addf %143, %144 : vector<8x32xf32>
    %c816 = arith.constant 816 : index
    %c0_74 = arith.constant 0 : index
    %146 = vector.load %arg4[%c816, %c0_74] : memref<1200x128xf32, #tpu.memory_space<vmem>>, vector<8x32xf32>
    %147 = arith.addf %145, %146 : vector<8x32xf32>
    %cst_75 = arith.constant 0.000000e+00 : f32
    %148 = vector.broadcast %cst_75 : f32 to vector<8x32xf32>
    %149 = arith.maximumf %147, %148 : vector<8x32xf32>
    %c744 = arith.constant 744 : index
    %c0_76 = arith.constant 0 : index
    %150 = vector.load %arg4[%c744, %c0_76] : memref<1200x128xf32, #tpu.memory_space<vmem>>, vector<32x32xf32>
    %cst_77 = arith.constant dense<0.000000e+00> : vector<8x32xf32>
    %151 = tpu.matmul %149, %150, %cst_77 {dimension_numbers = #tpu.dot_dimension_numbers<[1], [0], [0], [1], [0, 0, 1, 1], [], []>} : vector<8x32xf32>, vector<32x32xf32>, vector<8x32xf32> -> vector<8x32xf32>
    %c824 = arith.constant 824 : index
    %c0_78 = arith.constant 0 : index
    %152 = vector.load %arg4[%c824, %c0_78] : memref<1200x128xf32, #tpu.memory_space<vmem>>, vector<8x32xf32>
    %153 = arith.addf %151, %152 : vector<8x32xf32>
    %154 = arith.addf %141, %153 : vector<8x32xf32>
    %c848 = arith.constant 848 : index
    %c0_79 = arith.constant 0 : index
    %155 = vector.load %arg4[%c848, %c0_79] : memref<1200x128xf32, #tpu.memory_space<vmem>>, vector<8x32xf32>
    %c832 = arith.constant 832 : index
    %c0_80 = arith.constant 0 : index
    %156 = vector.load %arg4[%c832, %c0_80] : memref<1200x128xf32, #tpu.memory_space<vmem>>, vector<8x32xf32>
    %157 = vector.shape_cast %154 : vector<8x32xf32> to vector<1x8x32xf32>
    %cst_81 = arith.constant dense<0.000000e+00> : vector<1xf32>
    %158 = vector.multi_reduction <add>, %157, %cst_81 [1, 2] : vector<1x8x32xf32> to vector<1xf32>
    %159 = vector.shape_cast %158 : vector<1xf32> to vector<1x1x1xf32>
    %160 = vector.extract %159[0, 0, 0] : f32 from vector<1x1x1xf32>
    %161 = arith.mulf %154, %154 : vector<8x32xf32>
    %162 = vector.shape_cast %161 : vector<8x32xf32> to vector<1x8x32xf32>
    %cst_82 = arith.constant dense<0.000000e+00> : vector<1xf32>
    %163 = vector.multi_reduction <add>, %162, %cst_82 [1, 2] : vector<1x8x32xf32> to vector<1xf32>
    %164 = vector.shape_cast %163 : vector<1xf32> to vector<1x1x1xf32>
    %165 = vector.extract %164[0, 0, 0] : f32 from vector<1x1x1xf32>
    %cst_83 = arith.constant 3.906250e-03 : f32
    %166 = arith.mulf %160, %cst_83 : f32
    %cst_84 = arith.constant 3.906250e-03 : f32
    %167 = arith.mulf %165, %cst_84 : f32
    %168 = arith.mulf %166, %166 : f32
    %169 = arith.subf %167, %168 : f32
    %170 = vector.broadcast %166 : f32 to vector<8x32xf32>
    %171 = arith.subf %154, %170 : vector<8x32xf32>
    %cst_85 = arith.constant 9.99999974E-6 : f32
    %172 = arith.addf %169, %cst_85 : f32
    %173 = math.rsqrt %172 : f32
    %174 = vector.broadcast %173 : f32 to vector<8x32xf32>
    %175 = arith.mulf %171, %174 : vector<8x32xf32>
    %176 = arith.mulf %175, %155 : vector<8x32xf32>
    %177 = arith.addf %176, %156 : vector<8x32xf32>
    %178 = tpu.concatenate %93, %177 in 1 : vector<8x32xf32>, vector<8x32xf32> -> vector<8x64xf32>
    %c352 = arith.constant 352 : index
    %c0_86 = arith.constant 0 : index
    %179 = vector.load %arg4[%c352, %c0_86] : memref<1200x128xf32, #tpu.memory_space<vmem>>, vector<8x8xf32>
    %cst_87 = arith.constant dense<0.000000e+00> : vector<8x64xf32>
    %180 = tpu.matmul %179, %178, %cst_87 {dimension_numbers = #tpu.dot_dimension_numbers<[1], [0], [0], [1], [0, 0, 1, 1], [], []>} : vector<8x8xf32>, vector<8x64xf32>, vector<8x64xf32> -> vector<8x64xf32>
    %c360 = arith.constant 360 : index
    %c0_88 = arith.constant 0 : index
    %181 = vector.load %arg4[%c360, %c0_88] : memref<1200x128xf32, #tpu.memory_space<vmem>>, vector<8x64xf32>
    %182 = arith.addf %180, %181 : vector<8x64xf32>
    %cst_89 = arith.constant 0.000000e+00 : f32
    %183 = vector.broadcast %cst_89 : f32 to vector<8x64xf32>
    %184 = arith.maximumf %182, %183 : vector<8x64xf32>
    %185 = arith.addf %178, %184 : vector<8x64xf32>
    %c376 = arith.constant 376 : index
    %c0_90 = arith.constant 0 : index
    %186 = vector.load %arg4[%c376, %c0_90] : memref<1200x128xf32, #tpu.memory_space<vmem>>, vector<8x64xf32>
    %c368 = arith.constant 368 : index
    %c0_91 = arith.constant 0 : index
    %187 = vector.load %arg4[%c368, %c0_91] : memref<1200x128xf32, #tpu.memory_space<vmem>>, vector<8x64xf32>
    %188 = vector.shape_cast %185 : vector<8x64xf32> to vector<1x8x64xf32>
    %cst_92 = arith.constant dense<0.000000e+00> : vector<1xf32>
    %189 = vector.multi_reduction <add>, %188, %cst_92 [1, 2] : vector<1x8x64xf32> to vector<1xf32>
    %190 = vector.shape_cast %189 : vector<1xf32> to vector<1x1x1xf32>
    %191 = vector.extract %190[0, 0, 0] : f32 from vector<1x1x1xf32>
    %192 = arith.mulf %185, %185 : vector<8x64xf32>
    %193 = vector.shape_cast %192 : vector<8x64xf32> to vector<1x8x64xf32>
    %cst_93 = arith.constant dense<0.000000e+00> : vector<1xf32>
    %194 = vector.multi_reduction <add>, %193, %cst_93 [1, 2] : vector<1x8x64xf32> to vector<1xf32>
    %195 = vector.shape_cast %194 : vector<1xf32> to vector<1x1x1xf32>
    %196 = vector.extract %195[0, 0, 0] : f32 from vector<1x1x1xf32>
    %cst_94 = arith.constant 0.001953125 : f32
    %197 = arith.mulf %191, %cst_94 : f32
    %cst_95 = arith.constant 0.001953125 : f32
    %198 = arith.mulf %196, %cst_95 : f32
    %199 = arith.mulf %197, %197 : f32
    %200 = arith.subf %198, %199 : f32
    %201 = vector.broadcast %197 : f32 to vector<8x64xf32>
    %202 = arith.subf %185, %201 : vector<8x64xf32>
    %cst_96 = arith.constant 9.99999974E-6 : f32
    %203 = arith.addf %200, %cst_96 : f32
    %204 = math.rsqrt %203 : f32
    %205 = vector.broadcast %204 : f32 to vector<8x64xf32>
    %206 = arith.mulf %202, %205 : vector<8x64xf32>
    %207 = arith.mulf %206, %186 : vector<8x64xf32>
    %208 = arith.addf %207, %187 : vector<8x64xf32>
    %c304 = arith.constant 304 : index
    %c0_97 = arith.constant 0 : index
    %209 = vector.load %arg4[%c304, %c0_97] : memref<1200x128xf32, #tpu.memory_space<vmem>>, vector<3x32xf32>
    %cst_98 = arith.constant dense<0.000000e+00> : vector<1x32xf32>
    %210 = tpu.matmul %1, %209, %cst_98 {dimension_numbers = #tpu.dot_dimension_numbers<[1], [0], [0], [1], [0, 0, 1, 1], [], []>} : vector<1x3xf32>, vector<3x32xf32>, vector<1x32xf32> -> vector<1x32xf32>
    %c336 = arith.constant 336 : index
    %c0_99 = arith.constant 0 : index
    %211 = vector.load %arg4[%c336, %c0_99] : memref<1200x128xf32, #tpu.memory_space<vmem>>, vector<1x32xf32>
    %212 = arith.addf %210, %211 : vector<1x32xf32>
    %c264 = arith.constant 264 : index
    %c0_100 = arith.constant 0 : index
    %213 = vector.load %arg4[%c264, %c0_100] : memref<1200x128xf32, #tpu.memory_space<vmem>>, vector<3x32xf32>
    %cst_101 = arith.constant dense<0.000000e+00> : vector<1x32xf32>
    %214 = tpu.matmul %1, %213, %cst_101 {dimension_numbers = #tpu.dot_dimension_numbers<[1], [0], [0], [1], [0, 0, 1, 1], [], []>} : vector<1x3xf32>, vector<3x32xf32>, vector<1x32xf32> -> vector<1x32xf32>
    %c312 = arith.constant 312 : index
    %c0_102 = arith.constant 0 : index
    %215 = vector.load %arg4[%c312, %c0_102] : memref<1200x128xf32, #tpu.memory_space<vmem>>, vector<1x32xf32>
    %216 = arith.addf %214, %215 : vector<1x32xf32>
    %cst_103 = arith.constant 0.000000e+00 : f32
    %217 = vector.broadcast %cst_103 : f32 to vector<1x32xf32>
    %218 = arith.maximumf %216, %217 : vector<1x32xf32>
    %c272 = arith.constant 272 : index
    %c0_104 = arith.constant 0 : index
    %219 = vector.load %arg4[%c272, %c0_104] : memref<1200x128xf32, #tpu.memory_space<vmem>>, vector<32x32xf32>
    %cst_105 = arith.constant dense<0.000000e+00> : vector<1x32xf32>
    %220 = tpu.matmul %218, %219, %cst_105 {dimension_numbers = #tpu.dot_dimension_numbers<[1], [0], [0], [1], [0, 0, 1, 1], [], []>} : vector<1x32xf32>, vector<32x32xf32>, vector<1x32xf32> -> vector<1x32xf32>
    %c320 = arith.constant 320 : index
    %c0_106 = arith.constant 0 : index
    %221 = vector.load %arg4[%c320, %c0_106] : memref<1200x128xf32, #tpu.memory_space<vmem>>, vector<1x32xf32>
    %222 = arith.addf %220, %221 : vector<1x32xf32>
    %223 = arith.addf %212, %222 : vector<1x32xf32>
    %c344 = arith.constant 344 : index
    %c0_107 = arith.constant 0 : index
    %224 = vector.load %arg4[%c344, %c0_107] : memref<1200x128xf32, #tpu.memory_space<vmem>>, vector<1x32xf32>
    %c328 = arith.constant 328 : index
    %c0_108 = arith.constant 0 : index
    %225 = vector.load %arg4[%c328, %c0_108] : memref<1200x128xf32, #tpu.memory_space<vmem>>, vector<1x32xf32>
    %226 = vector.shape_cast %223 : vector<1x32xf32> to vector<1x1x32xf32>
    %cst_109 = arith.constant dense<0.000000e+00> : vector<1xf32>
    %227 = vector.multi_reduction <add>, %226, %cst_109 [1, 2] : vector<1x1x32xf32> to vector<1xf32>
    %228 = vector.shape_cast %227 : vector<1xf32> to vector<1x1x1xf32>
    %229 = vector.extract %228[0, 0, 0] : f32 from vector<1x1x1xf32>
    %230 = arith.mulf %223, %223 : vector<1x32xf32>
    %231 = vector.shape_cast %230 : vector<1x32xf32> to vector<1x1x32xf32>
    %cst_110 = arith.constant dense<0.000000e+00> : vector<1xf32>
    %232 = vector.multi_reduction <add>, %231, %cst_110 [1, 2] : vector<1x1x32xf32> to vector<1xf32>
    %233 = vector.shape_cast %232 : vector<1xf32> to vector<1x1x1xf32>
    %234 = vector.extract %233[0, 0, 0] : f32 from vector<1x1x1xf32>
    %cst_111 = arith.constant 3.125000e-02 : f32
    %235 = arith.mulf %229, %cst_111 : f32
    %cst_112 = arith.constant 3.125000e-02 : f32
    %236 = arith.mulf %234, %cst_112 : f32
    %237 = arith.mulf %235, %235 : f32
    %238 = arith.subf %236, %237 : f32
    %239 = vector.broadcast %235 : f32 to vector<1x32xf32>
    %240 = arith.subf %223, %239 : vector<1x32xf32>
    %cst_113 = arith.constant 9.99999974E-6 : f32
    %241 = arith.addf %238, %cst_113 : f32
    %242 = math.rsqrt %241 : f32
    %243 = vector.broadcast %242 : f32 to vector<1x32xf32>
    %244 = arith.mulf %240, %243 : vector<1x32xf32>
    %245 = arith.mulf %244, %224 : vector<1x32xf32>
    %246 = arith.addf %245, %225 : vector<1x32xf32>
    %c0_114 = arith.constant 0 : index
    %c0_115 = arith.constant 0 : index
    %247 = vector.load %arg4[%c0_114, %c0_115] : memref<1200x128xf32, #tpu.memory_space<vmem>>, vector<32x32xf32>
    %cst_116 = arith.constant dense<0.000000e+00> : vector<1x32xf32>
    %248 = tpu.matmul %246, %247, %cst_116 {dimension_numbers = #tpu.dot_dimension_numbers<[1], [0], [0], [1], [0, 0, 1, 1], [], []>} : vector<1x32xf32>, vector<32x32xf32>, vector<1x32xf32> -> vector<1x32xf32>
    %c128 = arith.constant 128 : index
    %c0_117 = arith.constant 0 : index
    %249 = vector.load %arg4[%c128, %c0_117] : memref<1200x128xf32, #tpu.memory_space<vmem>>, vector<32x32xf32>
    %cst_118 = arith.constant dense<0.000000e+00> : vector<1x32xf32>
    %250 = tpu.matmul %246, %249, %cst_118 {dimension_numbers = #tpu.dot_dimension_numbers<[1], [0], [0], [1], [0, 0, 1, 1], [], []>} : vector<1x32xf32>, vector<32x32xf32>, vector<1x32xf32> -> vector<1x32xf32>
    %c160 = arith.constant 160 : index
    %c0_119 = arith.constant 0 : index
    %251 = vector.load %arg4[%c160, %c0_119] : memref<1200x128xf32, #tpu.memory_space<vmem>>, vector<64x32xf32>
    %cst_120 = arith.constant dense<0.000000e+00> : vector<8x32xf32>
    %252 = tpu.matmul %208, %251, %cst_120 {dimension_numbers = #tpu.dot_dimension_numbers<[1], [0], [0], [1], [0, 0, 1, 1], [], []>} : vector<8x64xf32>, vector<64x32xf32>, vector<8x32xf32> -> vector<8x32xf32>
    %253 = vector.broadcast %250 : vector<1x32xf32> to vector<8x32xf32>
    %254 = arith.addf %252, %253 : vector<8x32xf32>
    %c248 = arith.constant 248 : index
    %c0_121 = arith.constant 0 : index
    %255 = vector.load %arg4[%c248, %c0_121] : memref<1200x128xf32, #tpu.memory_space<vmem>>, vector<8x32xf32>
    %256 = arith.addf %254, %255 : vector<8x32xf32>
    %c32 = arith.constant 32 : index
    %c0_122 = arith.constant 0 : index
    %257 = vector.load %arg4[%c32, %c0_122] : memref<1200x128xf32, #tpu.memory_space<vmem>>, vector<64x32xf32>
    %cst_123 = arith.constant dense<0.000000e+00> : vector<8x32xf32>
    %258 = tpu.matmul %208, %257, %cst_123 {dimension_numbers = #tpu.dot_dimension_numbers<[1], [0], [0], [1], [0, 0, 1, 1], [], []>} : vector<8x64xf32>, vector<64x32xf32>, vector<8x32xf32> -> vector<8x32xf32>
    %259 = vector.broadcast %248 : vector<1x32xf32> to vector<8x32xf32>
    %260 = arith.addf %258, %259 : vector<8x32xf32>
    %c224 = arith.constant 224 : index
    %c0_124 = arith.constant 0 : index
    %261 = vector.load %arg4[%c224, %c0_124] : memref<1200x128xf32, #tpu.memory_space<vmem>>, vector<8x32xf32>
    %262 = arith.addf %260, %261 : vector<8x32xf32>
    %cst_125 = arith.constant 0.000000e+00 : f32
    %263 = vector.broadcast %cst_125 : f32 to vector<8x32xf32>
    %264 = arith.maximumf %262, %263 : vector<8x32xf32>
    %c96 = arith.constant 96 : index
    %c0_126 = arith.constant 0 : index
    %265 = vector.load %arg4[%c96, %c0_126] : memref<1200x128xf32, #tpu.memory_space<vmem>>, vector<32x32xf32>
    %cst_127 = arith.constant dense<0.000000e+00> : vector<8x32xf32>
    %266 = tpu.matmul %264, %265, %cst_127 {dimension_numbers = #tpu.dot_dimension_numbers<[1], [0], [0], [1], [0, 0, 1, 1], [], []>} : vector<8x32xf32>, vector<32x32xf32>, vector<8x32xf32> -> vector<8x32xf32>
    %c232 = arith.constant 232 : index
    %c0_128 = arith.constant 0 : index
    %267 = vector.load %arg4[%c232, %c0_128] : memref<1200x128xf32, #tpu.memory_space<vmem>>, vector<8x32xf32>
    %268 = arith.addf %266, %267 : vector<8x32xf32>
    %269 = arith.addf %256, %268 : vector<8x32xf32>
    %c256 = arith.constant 256 : index
    %c0_129 = arith.constant 0 : index
    %270 = vector.load %arg4[%c256, %c0_129] : memref<1200x128xf32, #tpu.memory_space<vmem>>, vector<8x32xf32>
    %c240 = arith.constant 240 : index
    %c0_130 = arith.constant 0 : index
    %271 = vector.load %arg4[%c240, %c0_130] : memref<1200x128xf32, #tpu.memory_space<vmem>>, vector<8x32xf32>
    %272 = vector.shape_cast %269 : vector<8x32xf32> to vector<1x8x32xf32>
    %cst_131 = arith.constant dense<0.000000e+00> : vector<1xf32>
    %273 = vector.multi_reduction <add>, %272, %cst_131 [1, 2] : vector<1x8x32xf32> to vector<1xf32>
    %274 = vector.shape_cast %273 : vector<1xf32> to vector<1x1x1xf32>
    %275 = vector.extract %274[0, 0, 0] : f32 from vector<1x1x1xf32>
    %276 = arith.mulf %269, %269 : vector<8x32xf32>
    %277 = vector.shape_cast %276 : vector<8x32xf32> to vector<1x8x32xf32>
    %cst_132 = arith.constant dense<0.000000e+00> : vector<1xf32>
    %278 = vector.multi_reduction <add>, %277, %cst_132 [1, 2] : vector<1x8x32xf32> to vector<1xf32>
    %279 = vector.shape_cast %278 : vector<1xf32> to vector<1x1x1xf32>
    %280 = vector.extract %279[0, 0, 0] : f32 from vector<1x1x1xf32>
    %cst_133 = arith.constant 3.906250e-03 : f32
    %281 = arith.mulf %275, %cst_133 : f32
    %cst_134 = arith.constant 3.906250e-03 : f32
    %282 = arith.mulf %280, %cst_134 : f32
    %283 = arith.mulf %281, %281 : f32
    %284 = arith.subf %282, %283 : f32
    %285 = vector.broadcast %281 : f32 to vector<8x32xf32>
    %286 = arith.subf %269, %285 : vector<8x32xf32>
    %cst_135 = arith.constant 9.99999974E-6 : f32
    %287 = arith.addf %284, %cst_135 : f32
    %288 = math.rsqrt %287 : f32
    %289 = vector.broadcast %288 : f32 to vector<8x32xf32>
    %290 = arith.mulf %286, %289 : vector<8x32xf32>
    %291 = arith.mulf %290, %270 : vector<8x32xf32>
    %292 = arith.addf %291, %271 : vector<8x32xf32>
    %c672 = arith.constant 672 : index
    %c0_136 = arith.constant 0 : index
    %293 = vector.load %arg4[%c672, %c0_136] : memref<1200x128xf32, #tpu.memory_space<vmem>>, vector<8x8xf32>
    %cst_137 = arith.constant dense<0.000000e+00> : vector<8x32xf32>
    %294 = tpu.matmul %293, %292, %cst_137 {dimension_numbers = #tpu.dot_dimension_numbers<[1], [0], [0], [1], [0, 0, 1, 1], [], []>} : vector<8x8xf32>, vector<8x32xf32>, vector<8x32xf32> -> vector<8x32xf32>
    %c680 = arith.constant 680 : index
    %c0_138 = arith.constant 0 : index
    %295 = vector.load %arg4[%c680, %c0_138] : memref<1200x128xf32, #tpu.memory_space<vmem>>, vector<8x32xf32>
    %296 = arith.addf %294, %295 : vector<8x32xf32>
    %cst_139 = arith.constant 0.000000e+00 : f32
    %297 = vector.broadcast %cst_139 : f32 to vector<8x32xf32>
    %298 = arith.maximumf %296, %297 : vector<8x32xf32>
    %299 = arith.addf %292, %298 : vector<8x32xf32>
    %c696 = arith.constant 696 : index
    %c0_140 = arith.constant 0 : index
    %300 = vector.load %arg4[%c696, %c0_140] : memref<1200x128xf32, #tpu.memory_space<vmem>>, vector<8x32xf32>
    %c688 = arith.constant 688 : index
    %c0_141 = arith.constant 0 : index
    %301 = vector.load %arg4[%c688, %c0_141] : memref<1200x128xf32, #tpu.memory_space<vmem>>, vector<8x32xf32>
    %302 = vector.shape_cast %299 : vector<8x32xf32> to vector<1x8x32xf32>
    %cst_142 = arith.constant dense<0.000000e+00> : vector<1xf32>
    %303 = vector.multi_reduction <add>, %302, %cst_142 [1, 2] : vector<1x8x32xf32> to vector<1xf32>
    %304 = vector.shape_cast %303 : vector<1xf32> to vector<1x1x1xf32>
    %305 = vector.extract %304[0, 0, 0] : f32 from vector<1x1x1xf32>
    %306 = arith.mulf %299, %299 : vector<8x32xf32>
    %307 = vector.shape_cast %306 : vector<8x32xf32> to vector<1x8x32xf32>
    %cst_143 = arith.constant dense<0.000000e+00> : vector<1xf32>
    %308 = vector.multi_reduction <add>, %307, %cst_143 [1, 2] : vector<1x8x32xf32> to vector<1xf32>
    %309 = vector.shape_cast %308 : vector<1xf32> to vector<1x1x1xf32>
    %310 = vector.extract %309[0, 0, 0] : f32 from vector<1x1x1xf32>
    %cst_144 = arith.constant 3.906250e-03 : f32
    %311 = arith.mulf %305, %cst_144 : f32
    %cst_145 = arith.constant 3.906250e-03 : f32
    %312 = arith.mulf %310, %cst_145 : f32
    %313 = arith.mulf %311, %311 : f32
    %314 = arith.subf %312, %313 : f32
    %315 = vector.broadcast %311 : f32 to vector<8x32xf32>
    %316 = arith.subf %299, %315 : vector<8x32xf32>
    %cst_146 = arith.constant 9.99999974E-6 : f32
    %317 = arith.addf %314, %cst_146 : f32
    %318 = math.rsqrt %317 : f32
    %319 = vector.broadcast %318 : f32 to vector<8x32xf32>
    %320 = arith.mulf %316, %319 : vector<8x32xf32>
    %321 = arith.mulf %320, %300 : vector<8x32xf32>
    %322 = arith.addf %321, %301 : vector<8x32xf32>
    %c624 = arith.constant 624 : index
    %c0_147 = arith.constant 0 : index
    %323 = vector.load %arg4[%c624, %c0_147] : memref<1200x128xf32, #tpu.memory_space<vmem>>, vector<3x32xf32>
    %cst_148 = arith.constant dense<0.000000e+00> : vector<1x32xf32>
    %324 = tpu.matmul %1, %323, %cst_148 {dimension_numbers = #tpu.dot_dimension_numbers<[1], [0], [0], [1], [0, 0, 1, 1], [], []>} : vector<1x3xf32>, vector<3x32xf32>, vector<1x32xf32> -> vector<1x32xf32>
    %c656 = arith.constant 656 : index
    %c0_149 = arith.constant 0 : index
    %325 = vector.load %arg4[%c656, %c0_149] : memref<1200x128xf32, #tpu.memory_space<vmem>>, vector<1x32xf32>
    %326 = arith.addf %324, %325 : vector<1x32xf32>
    %c584 = arith.constant 584 : index
    %c0_150 = arith.constant 0 : index
    %327 = vector.load %arg4[%c584, %c0_150] : memref<1200x128xf32, #tpu.memory_space<vmem>>, vector<3x32xf32>
    %cst_151 = arith.constant dense<0.000000e+00> : vector<1x32xf32>
    %328 = tpu.matmul %1, %327, %cst_151 {dimension_numbers = #tpu.dot_dimension_numbers<[1], [0], [0], [1], [0, 0, 1, 1], [], []>} : vector<1x3xf32>, vector<3x32xf32>, vector<1x32xf32> -> vector<1x32xf32>
    %c632 = arith.constant 632 : index
    %c0_152 = arith.constant 0 : index
    %329 = vector.load %arg4[%c632, %c0_152] : memref<1200x128xf32, #tpu.memory_space<vmem>>, vector<1x32xf32>
    %330 = arith.addf %328, %329 : vector<1x32xf32>
    %cst_153 = arith.constant 0.000000e+00 : f32
    %331 = vector.broadcast %cst_153 : f32 to vector<1x32xf32>
    %332 = arith.maximumf %330, %331 : vector<1x32xf32>
    %c592 = arith.constant 592 : index
    %c0_154 = arith.constant 0 : index
    %333 = vector.load %arg4[%c592, %c0_154] : memref<1200x128xf32, #tpu.memory_space<vmem>>, vector<32x32xf32>
    %cst_155 = arith.constant dense<0.000000e+00> : vector<1x32xf32>
    %334 = tpu.matmul %332, %333, %cst_155 {dimension_numbers = #tpu.dot_dimension_numbers<[1], [0], [0], [1], [0, 0, 1, 1], [], []>} : vector<1x32xf32>, vector<32x32xf32>, vector<1x32xf32> -> vector<1x32xf32>
    %c640 = arith.constant 640 : index
    %c0_156 = arith.constant 0 : index
    %335 = vector.load %arg4[%c640, %c0_156] : memref<1200x128xf32, #tpu.memory_space<vmem>>, vector<1x32xf32>
    %336 = arith.addf %334, %335 : vector<1x32xf32>
    %337 = arith.addf %326, %336 : vector<1x32xf32>
    %c664 = arith.constant 664 : index
    %c0_157 = arith.constant 0 : index
    %338 = vector.load %arg4[%c664, %c0_157] : memref<1200x128xf32, #tpu.memory_space<vmem>>, vector<1x32xf32>
    %c648 = arith.constant 648 : index
    %c0_158 = arith.constant 0 : index
    %339 = vector.load %arg4[%c648, %c0_158] : memref<1200x128xf32, #tpu.memory_space<vmem>>, vector<1x32xf32>
    %340 = vector.shape_cast %337 : vector<1x32xf32> to vector<1x1x32xf32>
    %cst_159 = arith.constant dense<0.000000e+00> : vector<1xf32>
    %341 = vector.multi_reduction <add>, %340, %cst_159 [1, 2] : vector<1x1x32xf32> to vector<1xf32>
    %342 = vector.shape_cast %341 : vector<1xf32> to vector<1x1x1xf32>
    %343 = vector.extract %342[0, 0, 0] : f32 from vector<1x1x1xf32>
    %344 = arith.mulf %337, %337 : vector<1x32xf32>
    %345 = vector.shape_cast %344 : vector<1x32xf32> to vector<1x1x32xf32>
    %cst_160 = arith.constant dense<0.000000e+00> : vector<1xf32>
    %346 = vector.multi_reduction <add>, %345, %cst_160 [1, 2] : vector<1x1x32xf32> to vector<1xf32>
    %347 = vector.shape_cast %346 : vector<1xf32> to vector<1x1x1xf32>
    %348 = vector.extract %347[0, 0, 0] : f32 from vector<1x1x1xf32>
    %cst_161 = arith.constant 3.125000e-02 : f32
    %349 = arith.mulf %343, %cst_161 : f32
    %cst_162 = arith.constant 3.125000e-02 : f32
    %350 = arith.mulf %348, %cst_162 : f32
    %351 = arith.mulf %349, %349 : f32
    %352 = arith.subf %350, %351 : f32
    %353 = vector.broadcast %349 : f32 to vector<1x32xf32>
    %354 = arith.subf %337, %353 : vector<1x32xf32>
    %cst_163 = arith.constant 9.99999974E-6 : f32
    %355 = arith.addf %352, %cst_163 : f32
    %356 = math.rsqrt %355 : f32
    %357 = vector.broadcast %356 : f32 to vector<1x32xf32>
    %358 = arith.mulf %354, %357 : vector<1x32xf32>
    %359 = arith.mulf %358, %338 : vector<1x32xf32>
    %360 = arith.addf %359, %339 : vector<1x32xf32>
    %c384 = arith.constant 384 : index
    %c0_164 = arith.constant 0 : index
    %361 = vector.load %arg4[%c384, %c0_164] : memref<1200x128xf32, #tpu.memory_space<vmem>>, vector<32x32xf32>
    %cst_165 = arith.constant dense<0.000000e+00> : vector<1x32xf32>
    %362 = tpu.matmul %360, %361, %cst_165 {dimension_numbers = #tpu.dot_dimension_numbers<[1], [0], [0], [1], [0, 0, 1, 1], [], []>} : vector<1x32xf32>, vector<32x32xf32>, vector<1x32xf32> -> vector<1x32xf32>
    %c480 = arith.constant 480 : index
    %c0_166 = arith.constant 0 : index
    %363 = vector.load %arg4[%c480, %c0_166] : memref<1200x128xf32, #tpu.memory_space<vmem>>, vector<32x32xf32>
    %cst_167 = arith.constant dense<0.000000e+00> : vector<1x32xf32>
    %364 = tpu.matmul %360, %363, %cst_167 {dimension_numbers = #tpu.dot_dimension_numbers<[1], [0], [0], [1], [0, 0, 1, 1], [], []>} : vector<1x32xf32>, vector<32x32xf32>, vector<1x32xf32> -> vector<1x32xf32>
    %c512 = arith.constant 512 : index
    %c0_168 = arith.constant 0 : index
    %365 = vector.load %arg4[%c512, %c0_168] : memref<1200x128xf32, #tpu.memory_space<vmem>>, vector<32x32xf32>
    %cst_169 = arith.constant dense<0.000000e+00> : vector<8x32xf32>
    %366 = tpu.matmul %322, %365, %cst_169 {dimension_numbers = #tpu.dot_dimension_numbers<[1], [0], [0], [1], [0, 0, 1, 1], [], []>} : vector<8x32xf32>, vector<32x32xf32>, vector<8x32xf32> -> vector<8x32xf32>
    %367 = vector.broadcast %364 : vector<1x32xf32> to vector<8x32xf32>
    %368 = arith.addf %366, %367 : vector<8x32xf32>
    %c568 = arith.constant 568 : index
    %c0_170 = arith.constant 0 : index
    %369 = vector.load %arg4[%c568, %c0_170] : memref<1200x128xf32, #tpu.memory_space<vmem>>, vector<8x32xf32>
    %370 = arith.addf %368, %369 : vector<8x32xf32>
    %c416 = arith.constant 416 : index
    %c0_171 = arith.constant 0 : index
    %371 = vector.load %arg4[%c416, %c0_171] : memref<1200x128xf32, #tpu.memory_space<vmem>>, vector<32x32xf32>
    %cst_172 = arith.constant dense<0.000000e+00> : vector<8x32xf32>
    %372 = tpu.matmul %322, %371, %cst_172 {dimension_numbers = #tpu.dot_dimension_numbers<[1], [0], [0], [1], [0, 0, 1, 1], [], []>} : vector<8x32xf32>, vector<32x32xf32>, vector<8x32xf32> -> vector<8x32xf32>
    %373 = vector.broadcast %362 : vector<1x32xf32> to vector<8x32xf32>
    %374 = arith.addf %372, %373 : vector<8x32xf32>
    %c544 = arith.constant 544 : index
    %c0_173 = arith.constant 0 : index
    %375 = vector.load %arg4[%c544, %c0_173] : memref<1200x128xf32, #tpu.memory_space<vmem>>, vector<8x32xf32>
    %376 = arith.addf %374, %375 : vector<8x32xf32>
    %cst_174 = arith.constant 0.000000e+00 : f32
    %377 = vector.broadcast %cst_174 : f32 to vector<8x32xf32>
    %378 = arith.maximumf %376, %377 : vector<8x32xf32>
    %c448 = arith.constant 448 : index
    %c0_175 = arith.constant 0 : index
    %379 = vector.load %arg4[%c448, %c0_175] : memref<1200x128xf32, #tpu.memory_space<vmem>>, vector<32x32xf32>
    %cst_176 = arith.constant dense<0.000000e+00> : vector<8x32xf32>
    %380 = tpu.matmul %378, %379, %cst_176 {dimension_numbers = #tpu.dot_dimension_numbers<[1], [0], [0], [1], [0, 0, 1, 1], [], []>} : vector<8x32xf32>, vector<32x32xf32>, vector<8x32xf32> -> vector<8x32xf32>
    %c552 = arith.constant 552 : index
    %c0_177 = arith.constant 0 : index
    %381 = vector.load %arg4[%c552, %c0_177] : memref<1200x128xf32, #tpu.memory_space<vmem>>, vector<8x32xf32>
    %382 = arith.addf %380, %381 : vector<8x32xf32>
    %383 = arith.addf %370, %382 : vector<8x32xf32>
    %c576 = arith.constant 576 : index
    %c0_178 = arith.constant 0 : index
    %384 = vector.load %arg4[%c576, %c0_178] : memref<1200x128xf32, #tpu.memory_space<vmem>>, vector<8x32xf32>
    %c560 = arith.constant 560 : index
    %c0_179 = arith.constant 0 : index
    %385 = vector.load %arg4[%c560, %c0_179] : memref<1200x128xf32, #tpu.memory_space<vmem>>, vector<8x32xf32>
    %386 = vector.shape_cast %383 : vector<8x32xf32> to vector<1x8x32xf32>
    %cst_180 = arith.constant dense<0.000000e+00> : vector<1xf32>
    %387 = vector.multi_reduction <add>, %386, %cst_180 [1, 2] : vector<1x8x32xf32> to vector<1xf32>
    %388 = vector.shape_cast %387 : vector<1xf32> to vector<1x1x1xf32>
    %389 = vector.extract %388[0, 0, 0] : f32 from vector<1x1x1xf32>
    %390 = arith.mulf %383, %383 : vector<8x32xf32>
    %391 = vector.shape_cast %390 : vector<8x32xf32> to vector<1x8x32xf32>
    %cst_181 = arith.constant dense<0.000000e+00> : vector<1xf32>
    %392 = vector.multi_reduction <add>, %391, %cst_181 [1, 2] : vector<1x8x32xf32> to vector<1xf32>
    %393 = vector.shape_cast %392 : vector<1xf32> to vector<1x1x1xf32>
    %394 = vector.extract %393[0, 0, 0] : f32 from vector<1x1x1xf32>
    %cst_182 = arith.constant 3.906250e-03 : f32
    %395 = arith.mulf %389, %cst_182 : f32
    %cst_183 = arith.constant 3.906250e-03 : f32
    %396 = arith.mulf %394, %cst_183 : f32
    %397 = arith.mulf %395, %395 : f32
    %398 = arith.subf %396, %397 : f32
    %399 = vector.broadcast %395 : f32 to vector<8x32xf32>
    %400 = arith.subf %383, %399 : vector<8x32xf32>
    %cst_184 = arith.constant 9.99999974E-6 : f32
    %401 = arith.addf %398, %cst_184 : f32
    %402 = math.rsqrt %401 : f32
    %403 = vector.broadcast %402 : f32 to vector<8x32xf32>
    %404 = arith.mulf %400, %403 : vector<8x32xf32>
    %405 = arith.mulf %404, %384 : vector<8x32xf32>
    %406 = arith.addf %405, %385 : vector<8x32xf32>
    %c0_185 = arith.constant 0 : index
    %c0_186 = arith.constant 0 : index
    %c0_187 = arith.constant 0 : index
    %407 = vector.load %arg5[%c0_185, %c0_186, %c0_187] : memref<2x8x32xf32, #tpu.memory_space<vmem>>, vector<1x8x32xf32>
    %408 = vector.shape_cast %407 : vector<1x8x32xf32> to vector<8x32xf32>
    %409 = vector.shape_cast %406 : vector<8x32xf32> to vector<1x8x32xf32>
    tpu.vector_store %arg5[%c0_185, %c0_186, %c0_187], %409 {strides = array<i32>} : memref<2x8x32xf32, #tpu.memory_space<vmem>>, vector<1x8x32xf32>,
    %c1 = arith.constant 1 : index
    %c0_188 = arith.constant 0 : index
    %c0_189 = arith.constant 0 : index
    %410 = vector.load %arg3[%c1, %c0_188, %c0_189] : memref<2x1x3xf32, #tpu.memory_space<vmem>>, vector<1x1x3xf32>
    %411 = vector.shape_cast %410 : vector<1x1x3xf32> to vector<1x3xf32>
    %c1_190 = arith.constant 1 : index
    %c0_191 = arith.constant 0 : index
    %c0_192 = arith.constant 0 : index
    %412 = vector.load %arg1[%c1_190, %c0_191, %c0_192] : memref<2x12x5xf32, #tpu.memory_space<vmem>>, vector<1x12x5xf32>
    %413 = vector.shape_cast %412 : vector<1x12x5xf32> to vector<12x5xf32>
    %c1_193 = arith.constant 1 : index
    %c0_194 = arith.constant 0 : index
    %c0_195 = arith.constant 0 : index
    %414 = vector.load %arg2[%c1_193, %c0_194, %c0_195] : memref<2x8x4xf32, #tpu.memory_space<vmem>>, vector<1x8x4xf32>
    %415 = vector.shape_cast %414 : vector<1x8x4xf32> to vector<8x4xf32>
    %c1184_196 = arith.constant 1184 : index
    %c0_197 = arith.constant 0 : index
    %416 = vector.load %arg4[%c1184_196, %c0_197] : memref<1200x128xf32, #tpu.memory_space<vmem>>, vector<8x12xf32>
    %cst_198 = arith.constant dense<0.000000e+00> : vector<8x5xf32>
    %417 = tpu.matmul %416, %413, %cst_198 {dimension_numbers = #tpu.dot_dimension_numbers<[1], [0], [0], [1], [0, 0, 1, 1], [], []>} : vector<8x12xf32>, vector<12x5xf32>, vector<8x5xf32> -> vector<8x5xf32>
    %c1192_199 = arith.constant 1192 : index
    %c0_200 = arith.constant 0 : index
    %418 = vector.load %arg4[%c1192_199, %c0_200] : memref<1200x128xf32, #tpu.memory_space<vmem>>, vector<8x5xf32>
    %419 = arith.addf %417, %418 : vector<8x5xf32>
    %c1136_201 = arith.constant 1136 : index
    %c0_202 = arith.constant 0 : index
    %420 = vector.load %arg4[%c1136_201, %c0_202] : memref<1200x128xf32, #tpu.memory_space<vmem>>, vector<3x32xf32>
    %cst_203 = arith.constant dense<0.000000e+00> : vector<1x32xf32>
    %421 = tpu.matmul %411, %420, %cst_203 {dimension_numbers = #tpu.dot_dimension_numbers<[1], [0], [0], [1], [0, 0, 1, 1], [], []>} : vector<1x3xf32>, vector<3x32xf32>, vector<1x32xf32> -> vector<1x32xf32>
    %c1168_204 = arith.constant 1168 : index
    %c0_205 = arith.constant 0 : index
    %422 = vector.load %arg4[%c1168_204, %c0_205] : memref<1200x128xf32, #tpu.memory_space<vmem>>, vector<1x32xf32>
    %423 = arith.addf %421, %422 : vector<1x32xf32>
    %c1096_206 = arith.constant 1096 : index
    %c0_207 = arith.constant 0 : index
    %424 = vector.load %arg4[%c1096_206, %c0_207] : memref<1200x128xf32, #tpu.memory_space<vmem>>, vector<3x32xf32>
    %cst_208 = arith.constant dense<0.000000e+00> : vector<1x32xf32>
    %425 = tpu.matmul %411, %424, %cst_208 {dimension_numbers = #tpu.dot_dimension_numbers<[1], [0], [0], [1], [0, 0, 1, 1], [], []>} : vector<1x3xf32>, vector<3x32xf32>, vector<1x32xf32> -> vector<1x32xf32>
    %c1144_209 = arith.constant 1144 : index
    %c0_210 = arith.constant 0 : index
    %426 = vector.load %arg4[%c1144_209, %c0_210] : memref<1200x128xf32, #tpu.memory_space<vmem>>, vector<1x32xf32>
    %427 = arith.addf %425, %426 : vector<1x32xf32>
    %cst_211 = arith.constant 0.000000e+00 : f32
    %428 = vector.broadcast %cst_211 : f32 to vector<1x32xf32>
    %429 = arith.maximumf %427, %428 : vector<1x32xf32>
    %c1104_212 = arith.constant 1104 : index
    %c0_213 = arith.constant 0 : index
    %430 = vector.load %arg4[%c1104_212, %c0_213] : memref<1200x128xf32, #tpu.memory_space<vmem>>, vector<32x32xf32>
    %cst_214 = arith.constant dense<0.000000e+00> : vector<1x32xf32>
    %431 = tpu.matmul %429, %430, %cst_214 {dimension_numbers = #tpu.dot_dimension_numbers<[1], [0], [0], [1], [0, 0, 1, 1], [], []>} : vector<1x32xf32>, vector<32x32xf32>, vector<1x32xf32> -> vector<1x32xf32>
    %c1152_215 = arith.constant 1152 : index
    %c0_216 = arith.constant 0 : index
    %432 = vector.load %arg4[%c1152_215, %c0_216] : memref<1200x128xf32, #tpu.memory_space<vmem>>, vector<1x32xf32>
    %433 = arith.addf %431, %432 : vector<1x32xf32>
    %434 = arith.addf %423, %433 : vector<1x32xf32>
    %c1176_217 = arith.constant 1176 : index
    %c0_218 = arith.constant 0 : index
    %435 = vector.load %arg4[%c1176_217, %c0_218] : memref<1200x128xf32, #tpu.memory_space<vmem>>, vector<1x32xf32>
    %c1160_219 = arith.constant 1160 : index
    %c0_220 = arith.constant 0 : index
    %436 = vector.load %arg4[%c1160_219, %c0_220] : memref<1200x128xf32, #tpu.memory_space<vmem>>, vector<1x32xf32>
    %437 = vector.shape_cast %434 : vector<1x32xf32> to vector<1x1x32xf32>
    %cst_221 = arith.constant dense<0.000000e+00> : vector<1xf32>
    %438 = vector.multi_reduction <add>, %437, %cst_221 [1, 2] : vector<1x1x32xf32> to vector<1xf32>
    %439 = vector.shape_cast %438 : vector<1xf32> to vector<1x1x1xf32>
    %440 = vector.extract %439[0, 0, 0] : f32 from vector<1x1x1xf32>
    %441 = arith.mulf %434, %434 : vector<1x32xf32>
    %442 = vector.shape_cast %441 : vector<1x32xf32> to vector<1x1x32xf32>
    %cst_222 = arith.constant dense<0.000000e+00> : vector<1xf32>
    %443 = vector.multi_reduction <add>, %442, %cst_222 [1, 2] : vector<1x1x32xf32> to vector<1xf32>
    %444 = vector.shape_cast %443 : vector<1xf32> to vector<1x1x1xf32>
    %445 = vector.extract %444[0, 0, 0] : f32 from vector<1x1x1xf32>
    %cst_223 = arith.constant 3.125000e-02 : f32
    %446 = arith.mulf %440, %cst_223 : f32
    %cst_224 = arith.constant 3.125000e-02 : f32
    %447 = arith.mulf %445, %cst_224 : f32
    %448 = arith.mulf %446, %446 : f32
    %449 = arith.subf %447, %448 : f32
    %450 = vector.broadcast %446 : f32 to vector<1x32xf32>
    %451 = arith.subf %434, %450 : vector<1x32xf32>
    %cst_225 = arith.constant 9.99999974E-6 : f32
    %452 = arith.addf %449, %cst_225 : f32
    %453 = math.rsqrt %452 : f32
    %454 = vector.broadcast %453 : f32 to vector<1x32xf32>
    %455 = arith.mulf %451, %454 : vector<1x32xf32>
    %456 = arith.mulf %455, %435 : vector<1x32xf32>
    %457 = arith.addf %456, %436 : vector<1x32xf32>
    %c944_226 = arith.constant 944 : index
    %c0_227 = arith.constant 0 : index
    %458 = vector.load %arg4[%c944_226, %c0_227] : memref<1200x128xf32, #tpu.memory_space<vmem>>, vector<32x32xf32>
    %cst_228 = arith.constant dense<0.000000e+00> : vector<1x32xf32>
    %459 = tpu.matmul %457, %458, %cst_228 {dimension_numbers = #tpu.dot_dimension_numbers<[1], [0], [0], [1], [0, 0, 1, 1], [], []>} : vector<1x32xf32>, vector<32x32xf32>, vector<1x32xf32> -> vector<1x32xf32>
    %c1016_229 = arith.constant 1016 : index
    %c0_230 = arith.constant 0 : index
    %460 = vector.load %arg4[%c1016_229, %c0_230] : memref<1200x128xf32, #tpu.memory_space<vmem>>, vector<32x32xf32>
    %cst_231 = arith.constant dense<0.000000e+00> : vector<1x32xf32>
    %461 = tpu.matmul %457, %460, %cst_231 {dimension_numbers = #tpu.dot_dimension_numbers<[1], [0], [0], [1], [0, 0, 1, 1], [], []>} : vector<1x32xf32>, vector<32x32xf32>, vector<1x32xf32> -> vector<1x32xf32>
    %c1048_232 = arith.constant 1048 : index
    %c0_233 = arith.constant 0 : index
    %462 = vector.load %arg4[%c1048_232, %c0_233] : memref<1200x128xf32, #tpu.memory_space<vmem>>, vector<5x32xf32>
    %cst_234 = arith.constant dense<0.000000e+00> : vector<8x32xf32>
    %463 = tpu.matmul %419, %462, %cst_234 {dimension_numbers = #tpu.dot_dimension_numbers<[1], [0], [0], [1], [0, 0, 1, 1], [], []>} : vector<8x5xf32>, vector<5x32xf32>, vector<8x32xf32> -> vector<8x32xf32>
    %464 = vector.broadcast %461 : vector<1x32xf32> to vector<8x32xf32>
    %465 = arith.addf %463, %464 : vector<8x32xf32>
    %c1080_235 = arith.constant 1080 : index
    %c0_236 = arith.constant 0 : index
    %466 = vector.load %arg4[%c1080_235, %c0_236] : memref<1200x128xf32, #tpu.memory_space<vmem>>, vector<8x32xf32>
    %467 = arith.addf %465, %466 : vector<8x32xf32>
    %c976_237 = arith.constant 976 : index
    %c0_238 = arith.constant 0 : index
    %468 = vector.load %arg4[%c976_237, %c0_238] : memref<1200x128xf32, #tpu.memory_space<vmem>>, vector<5x32xf32>
    %cst_239 = arith.constant dense<0.000000e+00> : vector<8x32xf32>
    %469 = tpu.matmul %419, %468, %cst_239 {dimension_numbers = #tpu.dot_dimension_numbers<[1], [0], [0], [1], [0, 0, 1, 1], [], []>} : vector<8x5xf32>, vector<5x32xf32>, vector<8x32xf32> -> vector<8x32xf32>
    %470 = vector.broadcast %459 : vector<1x32xf32> to vector<8x32xf32>
    %471 = arith.addf %469, %470 : vector<8x32xf32>
    %c1056_240 = arith.constant 1056 : index
    %c0_241 = arith.constant 0 : index
    %472 = vector.load %arg4[%c1056_240, %c0_241] : memref<1200x128xf32, #tpu.memory_space<vmem>>, vector<8x32xf32>
    %473 = arith.addf %471, %472 : vector<8x32xf32>
    %cst_242 = arith.constant 0.000000e+00 : f32
    %474 = vector.broadcast %cst_242 : f32 to vector<8x32xf32>
    %475 = arith.maximumf %473, %474 : vector<8x32xf32>
    %c984_243 = arith.constant 984 : index
    %c0_244 = arith.constant 0 : index
    %476 = vector.load %arg4[%c984_243, %c0_244] : memref<1200x128xf32, #tpu.memory_space<vmem>>, vector<32x32xf32>
    %cst_245 = arith.constant dense<0.000000e+00> : vector<8x32xf32>
    %477 = tpu.matmul %475, %476, %cst_245 {dimension_numbers = #tpu.dot_dimension_numbers<[1], [0], [0], [1], [0, 0, 1, 1], [], []>} : vector<8x32xf32>, vector<32x32xf32>, vector<8x32xf32> -> vector<8x32xf32>
    %c1064_246 = arith.constant 1064 : index
    %c0_247 = arith.constant 0 : index
    %478 = vector.load %arg4[%c1064_246, %c0_247] : memref<1200x128xf32, #tpu.memory_space<vmem>>, vector<8x32xf32>
    %479 = arith.addf %477, %478 : vector<8x32xf32>
    %480 = arith.addf %467, %479 : vector<8x32xf32>
    %c1088_248 = arith.constant 1088 : index
    %c0_249 = arith.constant 0 : index
    %481 = vector.load %arg4[%c1088_248, %c0_249] : memref<1200x128xf32, #tpu.memory_space<vmem>>, vector<8x32xf32>
    %c1072_250 = arith.constant 1072 : index
    %c0_251 = arith.constant 0 : index
    %482 = vector.load %arg4[%c1072_250, %c0_251] : memref<1200x128xf32, #tpu.memory_space<vmem>>, vector<8x32xf32>
    %483 = vector.shape_cast %480 : vector<8x32xf32> to vector<1x8x32xf32>
    %cst_252 = arith.constant dense<0.000000e+00> : vector<1xf32>
    %484 = vector.multi_reduction <add>, %483, %cst_252 [1, 2] : vector<1x8x32xf32> to vector<1xf32>
    %485 = vector.shape_cast %484 : vector<1xf32> to vector<1x1x1xf32>
    %486 = vector.extract %485[0, 0, 0] : f32 from vector<1x1x1xf32>
    %487 = arith.mulf %480, %480 : vector<8x32xf32>
    %488 = vector.shape_cast %487 : vector<8x32xf32> to vector<1x8x32xf32>
    %cst_253 = arith.constant dense<0.000000e+00> : vector<1xf32>
    %489 = vector.multi_reduction <add>, %488, %cst_253 [1, 2] : vector<1x8x32xf32> to vector<1xf32>
    %490 = vector.shape_cast %489 : vector<1xf32> to vector<1x1x1xf32>
    %491 = vector.extract %490[0, 0, 0] : f32 from vector<1x1x1xf32>
    %cst_254 = arith.constant 3.906250e-03 : f32
    %492 = arith.mulf %486, %cst_254 : f32
    %cst_255 = arith.constant 3.906250e-03 : f32
    %493 = arith.mulf %491, %cst_255 : f32
    %494 = arith.mulf %492, %492 : f32
    %495 = arith.subf %493, %494 : f32
    %496 = vector.broadcast %492 : f32 to vector<8x32xf32>
    %497 = arith.subf %480, %496 : vector<8x32xf32>
    %cst_256 = arith.constant 9.99999974E-6 : f32
    %498 = arith.addf %495, %cst_256 : f32
    %499 = math.rsqrt %498 : f32
    %500 = vector.broadcast %499 : f32 to vector<8x32xf32>
    %501 = arith.mulf %497, %500 : vector<8x32xf32>
    %502 = arith.mulf %501, %481 : vector<8x32xf32>
    %503 = arith.addf %502, %482 : vector<8x32xf32>
    %c896_257 = arith.constant 896 : index
    %c0_258 = arith.constant 0 : index
    %504 = vector.load %arg4[%c896_257, %c0_258] : memref<1200x128xf32, #tpu.memory_space<vmem>>, vector<3x32xf32>
    %cst_259 = arith.constant dense<0.000000e+00> : vector<1x32xf32>
    %505 = tpu.matmul %411, %504, %cst_259 {dimension_numbers = #tpu.dot_dimension_numbers<[1], [0], [0], [1], [0, 0, 1, 1], [], []>} : vector<1x3xf32>, vector<3x32xf32>, vector<1x32xf32> -> vector<1x32xf32>
    %c928_260 = arith.constant 928 : index
    %c0_261 = arith.constant 0 : index
    %506 = vector.load %arg4[%c928_260, %c0_261] : memref<1200x128xf32, #tpu.memory_space<vmem>>, vector<1x32xf32>
    %507 = arith.addf %505, %506 : vector<1x32xf32>
    %c856_262 = arith.constant 856 : index
    %c0_263 = arith.constant 0 : index
    %508 = vector.load %arg4[%c856_262, %c0_263] : memref<1200x128xf32, #tpu.memory_space<vmem>>, vector<3x32xf32>
    %cst_264 = arith.constant dense<0.000000e+00> : vector<1x32xf32>
    %509 = tpu.matmul %411, %508, %cst_264 {dimension_numbers = #tpu.dot_dimension_numbers<[1], [0], [0], [1], [0, 0, 1, 1], [], []>} : vector<1x3xf32>, vector<3x32xf32>, vector<1x32xf32> -> vector<1x32xf32>
    %c904_265 = arith.constant 904 : index
    %c0_266 = arith.constant 0 : index
    %510 = vector.load %arg4[%c904_265, %c0_266] : memref<1200x128xf32, #tpu.memory_space<vmem>>, vector<1x32xf32>
    %511 = arith.addf %509, %510 : vector<1x32xf32>
    %cst_267 = arith.constant 0.000000e+00 : f32
    %512 = vector.broadcast %cst_267 : f32 to vector<1x32xf32>
    %513 = arith.maximumf %511, %512 : vector<1x32xf32>
    %c864_268 = arith.constant 864 : index
    %c0_269 = arith.constant 0 : index
    %514 = vector.load %arg4[%c864_268, %c0_269] : memref<1200x128xf32, #tpu.memory_space<vmem>>, vector<32x32xf32>
    %cst_270 = arith.constant dense<0.000000e+00> : vector<1x32xf32>
    %515 = tpu.matmul %513, %514, %cst_270 {dimension_numbers = #tpu.dot_dimension_numbers<[1], [0], [0], [1], [0, 0, 1, 1], [], []>} : vector<1x32xf32>, vector<32x32xf32>, vector<1x32xf32> -> vector<1x32xf32>
    %c912_271 = arith.constant 912 : index
    %c0_272 = arith.constant 0 : index
    %516 = vector.load %arg4[%c912_271, %c0_272] : memref<1200x128xf32, #tpu.memory_space<vmem>>, vector<1x32xf32>
    %517 = arith.addf %515, %516 : vector<1x32xf32>
    %518 = arith.addf %507, %517 : vector<1x32xf32>
    %c936_273 = arith.constant 936 : index
    %c0_274 = arith.constant 0 : index
    %519 = vector.load %arg4[%c936_273, %c0_274] : memref<1200x128xf32, #tpu.memory_space<vmem>>, vector<1x32xf32>
    %c920_275 = arith.constant 920 : index
    %c0_276 = arith.constant 0 : index
    %520 = vector.load %arg4[%c920_275, %c0_276] : memref<1200x128xf32, #tpu.memory_space<vmem>>, vector<1x32xf32>
    %521 = vector.shape_cast %518 : vector<1x32xf32> to vector<1x1x32xf32>
    %cst_277 = arith.constant dense<0.000000e+00> : vector<1xf32>
    %522 = vector.multi_reduction <add>, %521, %cst_277 [1, 2] : vector<1x1x32xf32> to vector<1xf32>
    %523 = vector.shape_cast %522 : vector<1xf32> to vector<1x1x1xf32>
    %524 = vector.extract %523[0, 0, 0] : f32 from vector<1x1x1xf32>
    %525 = arith.mulf %518, %518 : vector<1x32xf32>
    %526 = vector.shape_cast %525 : vector<1x32xf32> to vector<1x1x32xf32>
    %cst_278 = arith.constant dense<0.000000e+00> : vector<1xf32>
    %527 = vector.multi_reduction <add>, %526, %cst_278 [1, 2] : vector<1x1x32xf32> to vector<1xf32>
    %528 = vector.shape_cast %527 : vector<1xf32> to vector<1x1x1xf32>
    %529 = vector.extract %528[0, 0, 0] : f32 from vector<1x1x1xf32>
    %cst_279 = arith.constant 3.125000e-02 : f32
    %530 = arith.mulf %524, %cst_279 : f32
    %cst_280 = arith.constant 3.125000e-02 : f32
    %531 = arith.mulf %529, %cst_280 : f32
    %532 = arith.mulf %530, %530 : f32
    %533 = arith.subf %531, %532 : f32
    %534 = vector.broadcast %530 : f32 to vector<1x32xf32>
    %535 = arith.subf %518, %534 : vector<1x32xf32>
    %cst_281 = arith.constant 9.99999974E-6 : f32
    %536 = arith.addf %533, %cst_281 : f32
    %537 = math.rsqrt %536 : f32
    %538 = vector.broadcast %537 : f32 to vector<1x32xf32>
    %539 = arith.mulf %535, %538 : vector<1x32xf32>
    %540 = arith.mulf %539, %519 : vector<1x32xf32>
    %541 = arith.addf %540, %520 : vector<1x32xf32>
    %c704_282 = arith.constant 704 : index
    %c0_283 = arith.constant 0 : index
    %542 = vector.load %arg4[%c704_282, %c0_283] : memref<1200x128xf32, #tpu.memory_space<vmem>>, vector<32x32xf32>
    %cst_284 = arith.constant dense<0.000000e+00> : vector<1x32xf32>
    %543 = tpu.matmul %541, %542, %cst_284 {dimension_numbers = #tpu.dot_dimension_numbers<[1], [0], [0], [1], [0, 0, 1, 1], [], []>} : vector<1x32xf32>, vector<32x32xf32>, vector<1x32xf32> -> vector<1x32xf32>
    %c776_285 = arith.constant 776 : index
    %c0_286 = arith.constant 0 : index
    %544 = vector.load %arg4[%c776_285, %c0_286] : memref<1200x128xf32, #tpu.memory_space<vmem>>, vector<32x32xf32>
    %cst_287 = arith.constant dense<0.000000e+00> : vector<1x32xf32>
    %545 = tpu.matmul %541, %544, %cst_287 {dimension_numbers = #tpu.dot_dimension_numbers<[1], [0], [0], [1], [0, 0, 1, 1], [], []>} : vector<1x32xf32>, vector<32x32xf32>, vector<1x32xf32> -> vector<1x32xf32>
    %c808_288 = arith.constant 808 : index
    %c0_289 = arith.constant 0 : index
    %546 = vector.load %arg4[%c808_288, %c0_289] : memref<1200x128xf32, #tpu.memory_space<vmem>>, vector<4x32xf32>
    %cst_290 = arith.constant dense<0.000000e+00> : vector<8x32xf32>
    %547 = tpu.matmul %415, %546, %cst_290 {dimension_numbers = #tpu.dot_dimension_numbers<[1], [0], [0], [1], [0, 0, 1, 1], [], []>} : vector<8x4xf32>, vector<4x32xf32>, vector<8x32xf32> -> vector<8x32xf32>
    %548 = vector.broadcast %545 : vector<1x32xf32> to vector<8x32xf32>
    %549 = arith.addf %547, %548 : vector<8x32xf32>
    %c840_291 = arith.constant 840 : index
    %c0_292 = arith.constant 0 : index
    %550 = vector.load %arg4[%c840_291, %c0_292] : memref<1200x128xf32, #tpu.memory_space<vmem>>, vector<8x32xf32>
    %551 = arith.addf %549, %550 : vector<8x32xf32>
    %c736_293 = arith.constant 736 : index
    %c0_294 = arith.constant 0 : index
    %552 = vector.load %arg4[%c736_293, %c0_294] : memref<1200x128xf32, #tpu.memory_space<vmem>>, vector<4x32xf32>
    %cst_295 = arith.constant dense<0.000000e+00> : vector<8x32xf32>
    %553 = tpu.matmul %415, %552, %cst_295 {dimension_numbers = #tpu.dot_dimension_numbers<[1], [0], [0], [1], [0, 0, 1, 1], [], []>} : vector<8x4xf32>, vector<4x32xf32>, vector<8x32xf32> -> vector<8x32xf32>
    %554 = vector.broadcast %543 : vector<1x32xf32> to vector<8x32xf32>
    %555 = arith.addf %553, %554 : vector<8x32xf32>
    %c816_296 = arith.constant 816 : index
    %c0_297 = arith.constant 0 : index
    %556 = vector.load %arg4[%c816_296, %c0_297] : memref<1200x128xf32, #tpu.memory_space<vmem>>, vector<8x32xf32>
    %557 = arith.addf %555, %556 : vector<8x32xf32>
    %cst_298 = arith.constant 0.000000e+00 : f32
    %558 = vector.broadcast %cst_298 : f32 to vector<8x32xf32>
    %559 = arith.maximumf %557, %558 : vector<8x32xf32>
    %c744_299 = arith.constant 744 : index
    %c0_300 = arith.constant 0 : index
    %560 = vector.load %arg4[%c744_299, %c0_300] : memref<1200x128xf32, #tpu.memory_space<vmem>>, vector<32x32xf32>
    %cst_301 = arith.constant dense<0.000000e+00> : vector<8x32xf32>
    %561 = tpu.matmul %559, %560, %cst_301 {dimension_numbers = #tpu.dot_dimension_numbers<[1], [0], [0], [1], [0, 0, 1, 1], [], []>} : vector<8x32xf32>, vector<32x32xf32>, vector<8x32xf32> -> vector<8x32xf32>
    %c824_302 = arith.constant 824 : index
    %c0_303 = arith.constant 0 : index
    %562 = vector.load %arg4[%c824_302, %c0_303] : memref<1200x128xf32, #tpu.memory_space<vmem>>, vector<8x32xf32>
    %563 = arith.addf %561, %562 : vector<8x32xf32>
    %564 = arith.addf %551, %563 : vector<8x32xf32>
    %c848_304 = arith.constant 848 : index
    %c0_305 = arith.constant 0 : index
    %565 = vector.load %arg4[%c848_304, %c0_305] : memref<1200x128xf32, #tpu.memory_space<vmem>>, vector<8x32xf32>
    %c832_306 = arith.constant 832 : index
    %c0_307 = arith.constant 0 : index
    %566 = vector.load %arg4[%c832_306, %c0_307] : memref<1200x128xf32, #tpu.memory_space<vmem>>, vector<8x32xf32>
    %567 = vector.shape_cast %564 : vector<8x32xf32> to vector<1x8x32xf32>
    %cst_308 = arith.constant dense<0.000000e+00> : vector<1xf32>
    %568 = vector.multi_reduction <add>, %567, %cst_308 [1, 2] : vector<1x8x32xf32> to vector<1xf32>
    %569 = vector.shape_cast %568 : vector<1xf32> to vector<1x1x1xf32>
    %570 = vector.extract %569[0, 0, 0] : f32 from vector<1x1x1xf32>
    %571 = arith.mulf %564, %564 : vector<8x32xf32>
    %572 = vector.shape_cast %571 : vector<8x32xf32> to vector<1x8x32xf32>
    %cst_309 = arith.constant dense<0.000000e+00> : vector<1xf32>
    %573 = vector.multi_reduction <add>, %572, %cst_309 [1, 2] : vector<1x8x32xf32> to vector<1xf32>
    %574 = vector.shape_cast %573 : vector<1xf32> to vector<1x1x1xf32>
    %575 = vector.extract %574[0, 0, 0] : f32 from vector<1x1x1xf32>
    %cst_310 = arith.constant 3.906250e-03 : f32
    %576 = arith.mulf %570, %cst_310 : f32
    %cst_311 = arith.constant 3.906250e-03 : f32
    %577 = arith.mulf %575, %cst_311 : f32
    %578 = arith.mulf %576, %576 : f32
    %579 = arith.subf %577, %578 : f32
    %580 = vector.broadcast %576 : f32 to vector<8x32xf32>
    %581 = arith.subf %564, %580 : vector<8x32xf32>
    %cst_312 = arith.constant 9.99999974E-6 : f32
    %582 = arith.addf %579, %cst_312 : f32
    %583 = math.rsqrt %582 : f32
    %584 = vector.broadcast %583 : f32 to vector<8x32xf32>
    %585 = arith.mulf %581, %584 : vector<8x32xf32>
    %586 = arith.mulf %585, %565 : vector<8x32xf32>
    %587 = arith.addf %586, %566 : vector<8x32xf32>
    %588 = tpu.concatenate %503, %587 in 1 : vector<8x32xf32>, vector<8x32xf32> -> vector<8x64xf32>
    %c352_313 = arith.constant 352 : index
    %c0_314 = arith.constant 0 : index
    %589 = vector.load %arg4[%c352_313, %c0_314] : memref<1200x128xf32, #tpu.memory_space<vmem>>, vector<8x8xf32>
    %cst_315 = arith.constant dense<0.000000e+00> : vector<8x64xf32>
    %590 = tpu.matmul %589, %588, %cst_315 {dimension_numbers = #tpu.dot_dimension_numbers<[1], [0], [0], [1], [0, 0, 1, 1], [], []>} : vector<8x8xf32>, vector<8x64xf32>, vector<8x64xf32> -> vector<8x64xf32>
    %c360_316 = arith.constant 360 : index
    %c0_317 = arith.constant 0 : index
    %591 = vector.load %arg4[%c360_316, %c0_317] : memref<1200x128xf32, #tpu.memory_space<vmem>>, vector<8x64xf32>
    %592 = arith.addf %590, %591 : vector<8x64xf32>
    %cst_318 = arith.constant 0.000000e+00 : f32
    %593 = vector.broadcast %cst_318 : f32 to vector<8x64xf32>
    %594 = arith.maximumf %592, %593 : vector<8x64xf32>
    %595 = arith.addf %588, %594 : vector<8x64xf32>
    %c376_319 = arith.constant 376 : index
    %c0_320 = arith.constant 0 : index
    %596 = vector.load %arg4[%c376_319, %c0_320] : memref<1200x128xf32, #tpu.memory_space<vmem>>, vector<8x64xf32>
    %c368_321 = arith.constant 368 : index
    %c0_322 = arith.constant 0 : index
    %597 = vector.load %arg4[%c368_321, %c0_322] : memref<1200x128xf32, #tpu.memory_space<vmem>>, vector<8x64xf32>
    %598 = vector.shape_cast %595 : vector<8x64xf32> to vector<1x8x64xf32>
    %cst_323 = arith.constant dense<0.000000e+00> : vector<1xf32>
    %599 = vector.multi_reduction <add>, %598, %cst_323 [1, 2] : vector<1x8x64xf32> to vector<1xf32>
    %600 = vector.shape_cast %599 : vector<1xf32> to vector<1x1x1xf32>
    %601 = vector.extract %600[0, 0, 0] : f32 from vector<1x1x1xf32>
    %602 = arith.mulf %595, %595 : vector<8x64xf32>
    %603 = vector.shape_cast %602 : vector<8x64xf32> to vector<1x8x64xf32>
    %cst_324 = arith.constant dense<0.000000e+00> : vector<1xf32>
    %604 = vector.multi_reduction <add>, %603, %cst_324 [1, 2] : vector<1x8x64xf32> to vector<1xf32>
    %605 = vector.shape_cast %604 : vector<1xf32> to vector<1x1x1xf32>
    %606 = vector.extract %605[0, 0, 0] : f32 from vector<1x1x1xf32>
    %cst_325 = arith.constant 0.001953125 : f32
    %607 = arith.mulf %601, %cst_325 : f32
    %cst_326 = arith.constant 0.001953125 : f32
    %608 = arith.mulf %606, %cst_326 : f32
    %609 = arith.mulf %607, %607 : f32
    %610 = arith.subf %608, %609 : f32
    %611 = vector.broadcast %607 : f32 to vector<8x64xf32>
    %612 = arith.subf %595, %611 : vector<8x64xf32>
    %cst_327 = arith.constant 9.99999974E-6 : f32
    %613 = arith.addf %610, %cst_327 : f32
    %614 = math.rsqrt %613 : f32
    %615 = vector.broadcast %614 : f32 to vector<8x64xf32>
    %616 = arith.mulf %612, %615 : vector<8x64xf32>
    %617 = arith.mulf %616, %596 : vector<8x64xf32>
    %618 = arith.addf %617, %597 : vector<8x64xf32>
    %c304_328 = arith.constant 304 : index
    %c0_329 = arith.constant 0 : index
    %619 = vector.load %arg4[%c304_328, %c0_329] : memref<1200x128xf32, #tpu.memory_space<vmem>>, vector<3x32xf32>
    %cst_330 = arith.constant dense<0.000000e+00> : vector<1x32xf32>
    %620 = tpu.matmul %411, %619, %cst_330 {dimension_numbers = #tpu.dot_dimension_numbers<[1], [0], [0], [1], [0, 0, 1, 1], [], []>} : vector<1x3xf32>, vector<3x32xf32>, vector<1x32xf32> -> vector<1x32xf32>
    %c336_331 = arith.constant 336 : index
    %c0_332 = arith.constant 0 : index
    %621 = vector.load %arg4[%c336_331, %c0_332] : memref<1200x128xf32, #tpu.memory_space<vmem>>, vector<1x32xf32>
    %622 = arith.addf %620, %621 : vector<1x32xf32>
    %c264_333 = arith.constant 264 : index
    %c0_334 = arith.constant 0 : index
    %623 = vector.load %arg4[%c264_333, %c0_334] : memref<1200x128xf32, #tpu.memory_space<vmem>>, vector<3x32xf32>
    %cst_335 = arith.constant dense<0.000000e+00> : vector<1x32xf32>
    %624 = tpu.matmul %411, %623, %cst_335 {dimension_numbers = #tpu.dot_dimension_numbers<[1], [0], [0], [1], [0, 0, 1, 1], [], []>} : vector<1x3xf32>, vector<3x32xf32>, vector<1x32xf32> -> vector<1x32xf32>
    %c312_336 = arith.constant 312 : index
    %c0_337 = arith.constant 0 : index
    %625 = vector.load %arg4[%c312_336, %c0_337] : memref<1200x128xf32, #tpu.memory_space<vmem>>, vector<1x32xf32>
    %626 = arith.addf %624, %625 : vector<1x32xf32>
    %cst_338 = arith.constant 0.000000e+00 : f32
    %627 = vector.broadcast %cst_338 : f32 to vector<1x32xf32>
    %628 = arith.maximumf %626, %627 : vector<1x32xf32>
    %c272_339 = arith.constant 272 : index
    %c0_340 = arith.constant 0 : index
    %629 = vector.load %arg4[%c272_339, %c0_340] : memref<1200x128xf32, #tpu.memory_space<vmem>>, vector<32x32xf32>
    %cst_341 = arith.constant dense<0.000000e+00> : vector<1x32xf32>
    %630 = tpu.matmul %628, %629, %cst_341 {dimension_numbers = #tpu.dot_dimension_numbers<[1], [0], [0], [1], [0, 0, 1, 1], [], []>} : vector<1x32xf32>, vector<32x32xf32>, vector<1x32xf32> -> vector<1x32xf32>
    %c320_342 = arith.constant 320 : index
    %c0_343 = arith.constant 0 : index
    %631 = vector.load %arg4[%c320_342, %c0_343] : memref<1200x128xf32, #tpu.memory_space<vmem>>, vector<1x32xf32>
    %632 = arith.addf %630, %631 : vector<1x32xf32>
    %633 = arith.addf %622, %632 : vector<1x32xf32>
    %c344_344 = arith.constant 344 : index
    %c0_345 = arith.constant 0 : index
    %634 = vector.load %arg4[%c344_344, %c0_345] : memref<1200x128xf32, #tpu.memory_space<vmem>>, vector<1x32xf32>
    %c328_346 = arith.constant 328 : index
    %c0_347 = arith.constant 0 : index
    %635 = vector.load %arg4[%c328_346, %c0_347] : memref<1200x128xf32, #tpu.memory_space<vmem>>, vector<1x32xf32>
    %636 = vector.shape_cast %633 : vector<1x32xf32> to vector<1x1x32xf32>
    %cst_348 = arith.constant dense<0.000000e+00> : vector<1xf32>
    %637 = vector.multi_reduction <add>, %636, %cst_348 [1, 2] : vector<1x1x32xf32> to vector<1xf32>
    %638 = vector.shape_cast %637 : vector<1xf32> to vector<1x1x1xf32>
    %639 = vector.extract %638[0, 0, 0] : f32 from vector<1x1x1xf32>
    %640 = arith.mulf %633, %633 : vector<1x32xf32>
    %641 = vector.shape_cast %640 : vector<1x32xf32> to vector<1x1x32xf32>
    %cst_349 = arith.constant dense<0.000000e+00> : vector<1xf32>
    %642 = vector.multi_reduction <add>, %641, %cst_349 [1, 2] : vector<1x1x32xf32> to vector<1xf32>
    %643 = vector.shape_cast %642 : vector<1xf32> to vector<1x1x1xf32>
    %644 = vector.extract %643[0, 0, 0] : f32 from vector<1x1x1xf32>
    %cst_350 = arith.constant 3.125000e-02 : f32
    %645 = arith.mulf %639, %cst_350 : f32
    %cst_351 = arith.constant 3.125000e-02 : f32
    %646 = arith.mulf %644, %cst_351 : f32
    %647 = arith.mulf %645, %645 : f32
    %648 = arith.subf %646, %647 : f32
    %649 = vector.broadcast %645 : f32 to vector<1x32xf32>
    %650 = arith.subf %633, %649 : vector<1x32xf32>
    %cst_352 = arith.constant 9.99999974E-6 : f32
    %651 = arith.addf %648, %cst_352 : f32
    %652 = math.rsqrt %651 : f32
    %653 = vector.broadcast %652 : f32 to vector<1x32xf32>
    %654 = arith.mulf %650, %653 : vector<1x32xf32>
    %655 = arith.mulf %654, %634 : vector<1x32xf32>
    %656 = arith.addf %655, %635 : vector<1x32xf32>
    %c0_353 = arith.constant 0 : index
    %c0_354 = arith.constant 0 : index
    %657 = vector.load %arg4[%c0_353, %c0_354] : memref<1200x128xf32, #tpu.memory_space<vmem>>, vector<32x32xf32>
    %cst_355 = arith.constant dense<0.000000e+00> : vector<1x32xf32>
    %658 = tpu.matmul %656, %657, %cst_355 {dimension_numbers = #tpu.dot_dimension_numbers<[1], [0], [0], [1], [0, 0, 1, 1], [], []>} : vector<1x32xf32>, vector<32x32xf32>, vector<1x32xf32> -> vector<1x32xf32>
    %c128_356 = arith.constant 128 : index
    %c0_357 = arith.constant 0 : index
    %659 = vector.load %arg4[%c128_356, %c0_357] : memref<1200x128xf32, #tpu.memory_space<vmem>>, vector<32x32xf32>
    %cst_358 = arith.constant dense<0.000000e+00> : vector<1x32xf32>
    %660 = tpu.matmul %656, %659, %cst_358 {dimension_numbers = #tpu.dot_dimension_numbers<[1], [0], [0], [1], [0, 0, 1, 1], [], []>} : vector<1x32xf32>, vector<32x32xf32>, vector<1x32xf32> -> vector<1x32xf32>
    %c160_359 = arith.constant 160 : index
    %c0_360 = arith.constant 0 : index
    %661 = vector.load %arg4[%c160_359, %c0_360] : memref<1200x128xf32, #tpu.memory_space<vmem>>, vector<64x32xf32>
    %cst_361 = arith.constant dense<0.000000e+00> : vector<8x32xf32>
    %662 = tpu.matmul %618, %661, %cst_361 {dimension_numbers = #tpu.dot_dimension_numbers<[1], [0], [0], [1], [0, 0, 1, 1], [], []>} : vector<8x64xf32>, vector<64x32xf32>, vector<8x32xf32> -> vector<8x32xf32>
    %663 = vector.broadcast %660 : vector<1x32xf32> to vector<8x32xf32>
    %664 = arith.addf %662, %663 : vector<8x32xf32>
    %c248_362 = arith.constant 248 : index
    %c0_363 = arith.constant 0 : index
    %665 = vector.load %arg4[%c248_362, %c0_363] : memref<1200x128xf32, #tpu.memory_space<vmem>>, vector<8x32xf32>
    %666 = arith.addf %664, %665 : vector<8x32xf32>
    %c32_364 = arith.constant 32 : index
    %c0_365 = arith.constant 0 : index
    %667 = vector.load %arg4[%c32_364, %c0_365] : memref<1200x128xf32, #tpu.memory_space<vmem>>, vector<64x32xf32>
    %cst_366 = arith.constant dense<0.000000e+00> : vector<8x32xf32>
    %668 = tpu.matmul %618, %667, %cst_366 {dimension_numbers = #tpu.dot_dimension_numbers<[1], [0], [0], [1], [0, 0, 1, 1], [], []>} : vector<8x64xf32>, vector<64x32xf32>, vector<8x32xf32> -> vector<8x32xf32>
    %669 = vector.broadcast %658 : vector<1x32xf32> to vector<8x32xf32>
    %670 = arith.addf %668, %669 : vector<8x32xf32>
    %c224_367 = arith.constant 224 : index
    %c0_368 = arith.constant 0 : index
    %671 = vector.load %arg4[%c224_367, %c0_368] : memref<1200x128xf32, #tpu.memory_space<vmem>>, vector<8x32xf32>
    %672 = arith.addf %670, %671 : vector<8x32xf32>
    %cst_369 = arith.constant 0.000000e+00 : f32
    %673 = vector.broadcast %cst_369 : f32 to vector<8x32xf32>
    %674 = arith.maximumf %672, %673 : vector<8x32xf32>
    %c96_370 = arith.constant 96 : index
    %c0_371 = arith.constant 0 : index
    %675 = vector.load %arg4[%c96_370, %c0_371] : memref<1200x128xf32, #tpu.memory_space<vmem>>, vector<32x32xf32>
    %cst_372 = arith.constant dense<0.000000e+00> : vector<8x32xf32>
    %676 = tpu.matmul %674, %675, %cst_372 {dimension_numbers = #tpu.dot_dimension_numbers<[1], [0], [0], [1], [0, 0, 1, 1], [], []>} : vector<8x32xf32>, vector<32x32xf32>, vector<8x32xf32> -> vector<8x32xf32>
    %c232_373 = arith.constant 232 : index
    %c0_374 = arith.constant 0 : index
    %677 = vector.load %arg4[%c232_373, %c0_374] : memref<1200x128xf32, #tpu.memory_space<vmem>>, vector<8x32xf32>
    %678 = arith.addf %676, %677 : vector<8x32xf32>
    %679 = arith.addf %666, %678 : vector<8x32xf32>
    %c256_375 = arith.constant 256 : index
    %c0_376 = arith.constant 0 : index
    %680 = vector.load %arg4[%c256_375, %c0_376] : memref<1200x128xf32, #tpu.memory_space<vmem>>, vector<8x32xf32>
    %c240_377 = arith.constant 240 : index
    %c0_378 = arith.constant 0 : index
    %681 = vector.load %arg4[%c240_377, %c0_378] : memref<1200x128xf32, #tpu.memory_space<vmem>>, vector<8x32xf32>
    %682 = vector.shape_cast %679 : vector<8x32xf32> to vector<1x8x32xf32>
    %cst_379 = arith.constant dense<0.000000e+00> : vector<1xf32>
    %683 = vector.multi_reduction <add>, %682, %cst_379 [1, 2] : vector<1x8x32xf32> to vector<1xf32>
    %684 = vector.shape_cast %683 : vector<1xf32> to vector<1x1x1xf32>
    %685 = vector.extract %684[0, 0, 0] : f32 from vector<1x1x1xf32>
    %686 = arith.mulf %679, %679 : vector<8x32xf32>
    %687 = vector.shape_cast %686 : vector<8x32xf32> to vector<1x8x32xf32>
    %cst_380 = arith.constant dense<0.000000e+00> : vector<1xf32>
    %688 = vector.multi_reduction <add>, %687, %cst_380 [1, 2] : vector<1x8x32xf32> to vector<1xf32>
    %689 = vector.shape_cast %688 : vector<1xf32> to vector<1x1x1xf32>
    %690 = vector.extract %689[0, 0, 0] : f32 from vector<1x1x1xf32>
    %cst_381 = arith.constant 3.906250e-03 : f32
    %691 = arith.mulf %685, %cst_381 : f32
    %cst_382 = arith.constant 3.906250e-03 : f32
    %692 = arith.mulf %690, %cst_382 : f32
    %693 = arith.mulf %691, %691 : f32
    %694 = arith.subf %692, %693 : f32
    %695 = vector.broadcast %691 : f32 to vector<8x32xf32>
    %696 = arith.subf %679, %695 : vector<8x32xf32>
    %cst_383 = arith.constant 9.99999974E-6 : f32
    %697 = arith.addf %694, %cst_383 : f32
    %698 = math.rsqrt %697 : f32
    %699 = vector.broadcast %698 : f32 to vector<8x32xf32>
    %700 = arith.mulf %696, %699 : vector<8x32xf32>
    %701 = arith.mulf %700, %680 : vector<8x32xf32>
    %702 = arith.addf %701, %681 : vector<8x32xf32>
    %c672_384 = arith.constant 672 : index
    %c0_385 = arith.constant 0 : index
    %703 = vector.load %arg4[%c672_384, %c0_385] : memref<1200x128xf32, #tpu.memory_space<vmem>>, vector<8x8xf32>
    %cst_386 = arith.constant dense<0.000000e+00> : vector<8x32xf32>
    %704 = tpu.matmul %703, %702, %cst_386 {dimension_numbers = #tpu.dot_dimension_numbers<[1], [0], [0], [1], [0, 0, 1, 1], [], []>} : vector<8x8xf32>, vector<8x32xf32>, vector<8x32xf32> -> vector<8x32xf32>
    %c680_387 = arith.constant 680 : index
    %c0_388 = arith.constant 0 : index
    %705 = vector.load %arg4[%c680_387, %c0_388] : memref<1200x128xf32, #tpu.memory_space<vmem>>, vector<8x32xf32>
    %706 = arith.addf %704, %705 : vector<8x32xf32>
    %cst_389 = arith.constant 0.000000e+00 : f32
    %707 = vector.broadcast %cst_389 : f32 to vector<8x32xf32>
    %708 = arith.maximumf %706, %707 : vector<8x32xf32>
    %709 = arith.addf %702, %708 : vector<8x32xf32>
    %c696_390 = arith.constant 696 : index
    %c0_391 = arith.constant 0 : index
    %710 = vector.load %arg4[%c696_390, %c0_391] : memref<1200x128xf32, #tpu.memory_space<vmem>>, vector<8x32xf32>
    %c688_392 = arith.constant 688 : index
    %c0_393 = arith.constant 0 : index
    %711 = vector.load %arg4[%c688_392, %c0_393] : memref<1200x128xf32, #tpu.memory_space<vmem>>, vector<8x32xf32>
    %712 = vector.shape_cast %709 : vector<8x32xf32> to vector<1x8x32xf32>
    %cst_394 = arith.constant dense<0.000000e+00> : vector<1xf32>
    %713 = vector.multi_reduction <add>, %712, %cst_394 [1, 2] : vector<1x8x32xf32> to vector<1xf32>
    %714 = vector.shape_cast %713 : vector<1xf32> to vector<1x1x1xf32>
    %715 = vector.extract %714[0, 0, 0] : f32 from vector<1x1x1xf32>
    %716 = arith.mulf %709, %709 : vector<8x32xf32>
    %717 = vector.shape_cast %716 : vector<8x32xf32> to vector<1x8x32xf32>
    %cst_395 = arith.constant dense<0.000000e+00> : vector<1xf32>
    %718 = vector.multi_reduction <add>, %717, %cst_395 [1, 2] : vector<1x8x32xf32> to vector<1xf32>
    %719 = vector.shape_cast %718 : vector<1xf32> to vector<1x1x1xf32>
    %720 = vector.extract %719[0, 0, 0] : f32 from vector<1x1x1xf32>
    %cst_396 = arith.constant 3.906250e-03 : f32
    %721 = arith.mulf %715, %cst_396 : f32
    %cst_397 = arith.constant 3.906250e-03 : f32
    %722 = arith.mulf %720, %cst_397 : f32
    %723 = arith.mulf %721, %721 : f32
    %724 = arith.subf %722, %723 : f32
    %725 = vector.broadcast %721 : f32 to vector<8x32xf32>
    %726 = arith.subf %709, %725 : vector<8x32xf32>
    %cst_398 = arith.constant 9.99999974E-6 : f32
    %727 = arith.addf %724, %cst_398 : f32
    %728 = math.rsqrt %727 : f32
    %729 = vector.broadcast %728 : f32 to vector<8x32xf32>
    %730 = arith.mulf %726, %729 : vector<8x32xf32>
    %731 = arith.mulf %730, %710 : vector<8x32xf32>
    %732 = arith.addf %731, %711 : vector<8x32xf32>
    %c624_399 = arith.constant 624 : index
    %c0_400 = arith.constant 0 : index
    %733 = vector.load %arg4[%c624_399, %c0_400] : memref<1200x128xf32, #tpu.memory_space<vmem>>, vector<3x32xf32>
    %cst_401 = arith.constant dense<0.000000e+00> : vector<1x32xf32>
    %734 = tpu.matmul %411, %733, %cst_401 {dimension_numbers = #tpu.dot_dimension_numbers<[1], [0], [0], [1], [0, 0, 1, 1], [], []>} : vector<1x3xf32>, vector<3x32xf32>, vector<1x32xf32> -> vector<1x32xf32>
    %c656_402 = arith.constant 656 : index
    %c0_403 = arith.constant 0 : index
    %735 = vector.load %arg4[%c656_402, %c0_403] : memref<1200x128xf32, #tpu.memory_space<vmem>>, vector<1x32xf32>
    %736 = arith.addf %734, %735 : vector<1x32xf32>
    %c584_404 = arith.constant 584 : index
    %c0_405 = arith.constant 0 : index
    %737 = vector.load %arg4[%c584_404, %c0_405] : memref<1200x128xf32, #tpu.memory_space<vmem>>, vector<3x32xf32>
    %cst_406 = arith.constant dense<0.000000e+00> : vector<1x32xf32>
    %738 = tpu.matmul %411, %737, %cst_406 {dimension_numbers = #tpu.dot_dimension_numbers<[1], [0], [0], [1], [0, 0, 1, 1], [], []>} : vector<1x3xf32>, vector<3x32xf32>, vector<1x32xf32> -> vector<1x32xf32>
    %c632_407 = arith.constant 632 : index
    %c0_408 = arith.constant 0 : index
    %739 = vector.load %arg4[%c632_407, %c0_408] : memref<1200x128xf32, #tpu.memory_space<vmem>>, vector<1x32xf32>
    %740 = arith.addf %738, %739 : vector<1x32xf32>
    %cst_409 = arith.constant 0.000000e+00 : f32
    %741 = vector.broadcast %cst_409 : f32 to vector<1x32xf32>
    %742 = arith.maximumf %740, %741 : vector<1x32xf32>
    %c592_410 = arith.constant 592 : index
    %c0_411 = arith.constant 0 : index
    %743 = vector.load %arg4[%c592_410, %c0_411] : memref<1200x128xf32, #tpu.memory_space<vmem>>, vector<32x32xf32>
    %cst_412 = arith.constant dense<0.000000e+00> : vector<1x32xf32>
    %744 = tpu.matmul %742, %743, %cst_412 {dimension_numbers = #tpu.dot_dimension_numbers<[1], [0], [0], [1], [0, 0, 1, 1], [], []>} : vector<1x32xf32>, vector<32x32xf32>, vector<1x32xf32> -> vector<1x32xf32>
    %c640_413 = arith.constant 640 : index
    %c0_414 = arith.constant 0 : index
    %745 = vector.load %arg4[%c640_413, %c0_414] : memref<1200x128xf32, #tpu.memory_space<vmem>>, vector<1x32xf32>
    %746 = arith.addf %744, %745 : vector<1x32xf32>
    %747 = arith.addf %736, %746 : vector<1x32xf32>
    %c664_415 = arith.constant 664 : index
    %c0_416 = arith.constant 0 : index
    %748 = vector.load %arg4[%c664_415, %c0_416] : memref<1200x128xf32, #tpu.memory_space<vmem>>, vector<1x32xf32>
    %c648_417 = arith.constant 648 : index
    %c0_418 = arith.constant 0 : index
    %749 = vector.load %arg4[%c648_417, %c0_418] : memref<1200x128xf32, #tpu.memory_space<vmem>>, vector<1x32xf32>
    %750 = vector.shape_cast %747 : vector<1x32xf32> to vector<1x1x32xf32>
    %cst_419 = arith.constant dense<0.000000e+00> : vector<1xf32>
    %751 = vector.multi_reduction <add>, %750, %cst_419 [1, 2] : vector<1x1x32xf32> to vector<1xf32>
    %752 = vector.shape_cast %751 : vector<1xf32> to vector<1x1x1xf32>
    %753 = vector.extract %752[0, 0, 0] : f32 from vector<1x1x1xf32>
    %754 = arith.mulf %747, %747 : vector<1x32xf32>
    %755 = vector.shape_cast %754 : vector<1x32xf32> to vector<1x1x32xf32>
    %cst_420 = arith.constant dense<0.000000e+00> : vector<1xf32>
    %756 = vector.multi_reduction <add>, %755, %cst_420 [1, 2] : vector<1x1x32xf32> to vector<1xf32>
    %757 = vector.shape_cast %756 : vector<1xf32> to vector<1x1x1xf32>
    %758 = vector.extract %757[0, 0, 0] : f32 from vector<1x1x1xf32>
    %cst_421 = arith.constant 3.125000e-02 : f32
    %759 = arith.mulf %753, %cst_421 : f32
    %cst_422 = arith.constant 3.125000e-02 : f32
    %760 = arith.mulf %758, %cst_422 : f32
    %761 = arith.mulf %759, %759 : f32
    %762 = arith.subf %760, %761 : f32
    %763 = vector.broadcast %759 : f32 to vector<1x32xf32>
    %764 = arith.subf %747, %763 : vector<1x32xf32>
    %cst_423 = arith.constant 9.99999974E-6 : f32
    %765 = arith.addf %762, %cst_423 : f32
    %766 = math.rsqrt %765 : f32
    %767 = vector.broadcast %766 : f32 to vector<1x32xf32>
    %768 = arith.mulf %764, %767 : vector<1x32xf32>
    %769 = arith.mulf %768, %748 : vector<1x32xf32>
    %770 = arith.addf %769, %749 : vector<1x32xf32>
    %c384_424 = arith.constant 384 : index
    %c0_425 = arith.constant 0 : index
    %771 = vector.load %arg4[%c384_424, %c0_425] : memref<1200x128xf32, #tpu.memory_space<vmem>>, vector<32x32xf32>
    %cst_426 = arith.constant dense<0.000000e+00> : vector<1x32xf32>
    %772 = tpu.matmul %770, %771, %cst_426 {dimension_numbers = #tpu.dot_dimension_numbers<[1], [0], [0], [1], [0, 0, 1, 1], [], []>} : vector<1x32xf32>, vector<32x32xf32>, vector<1x32xf32> -> vector<1x32xf32>
    %c480_427 = arith.constant 480 : index
    %c0_428 = arith.constant 0 : index
    %773 = vector.load %arg4[%c480_427, %c0_428] : memref<1200x128xf32, #tpu.memory_space<vmem>>, vector<32x32xf32>
    %cst_429 = arith.constant dense<0.000000e+00> : vector<1x32xf32>
    %774 = tpu.matmul %770, %773, %cst_429 {dimension_numbers = #tpu.dot_dimension_numbers<[1], [0], [0], [1], [0, 0, 1, 1], [], []>} : vector<1x32xf32>, vector<32x32xf32>, vector<1x32xf32> -> vector<1x32xf32>
    %c512_430 = arith.constant 512 : index
    %c0_431 = arith.constant 0 : index
    %775 = vector.load %arg4[%c512_430, %c0_431] : memref<1200x128xf32, #tpu.memory_space<vmem>>, vector<32x32xf32>
    %cst_432 = arith.constant dense<0.000000e+00> : vector<8x32xf32>
    %776 = tpu.matmul %732, %775, %cst_432 {dimension_numbers = #tpu.dot_dimension_numbers<[1], [0], [0], [1], [0, 0, 1, 1], [], []>} : vector<8x32xf32>, vector<32x32xf32>, vector<8x32xf32> -> vector<8x32xf32>
    %777 = vector.broadcast %774 : vector<1x32xf32> to vector<8x32xf32>
    %778 = arith.addf %776, %777 : vector<8x32xf32>
    %c568_433 = arith.constant 568 : index
    %c0_434 = arith.constant 0 : index
    %779 = vector.load %arg4[%c568_433, %c0_434] : memref<1200x128xf32, #tpu.memory_space<vmem>>, vector<8x32xf32>
    %780 = arith.addf %778, %779 : vector<8x32xf32>
    %c416_435 = arith.constant 416 : index
    %c0_436 = arith.constant 0 : index
    %781 = vector.load %arg4[%c416_435, %c0_436] : memref<1200x128xf32, #tpu.memory_space<vmem>>, vector<32x32xf32>
    %cst_437 = arith.constant dense<0.000000e+00> : vector<8x32xf32>
    %782 = tpu.matmul %732, %781, %cst_437 {dimension_numbers = #tpu.dot_dimension_numbers<[1], [0], [0], [1], [0, 0, 1, 1], [], []>} : vector<8x32xf32>, vector<32x32xf32>, vector<8x32xf32> -> vector<8x32xf32>
    %783 = vector.broadcast %772 : vector<1x32xf32> to vector<8x32xf32>
    %784 = arith.addf %782, %783 : vector<8x32xf32>
    %c544_438 = arith.constant 544 : index
    %c0_439 = arith.constant 0 : index
    %785 = vector.load %arg4[%c544_438, %c0_439] : memref<1200x128xf32, #tpu.memory_space<vmem>>, vector<8x32xf32>
    %786 = arith.addf %784, %785 : vector<8x32xf32>
    %cst_440 = arith.constant 0.000000e+00 : f32
    %787 = vector.broadcast %cst_440 : f32 to vector<8x32xf32>
    %788 = arith.maximumf %786, %787 : vector<8x32xf32>
    %c448_441 = arith.constant 448 : index
    %c0_442 = arith.constant 0 : index
    %789 = vector.load %arg4[%c448_441, %c0_442] : memref<1200x128xf32, #tpu.memory_space<vmem>>, vector<32x32xf32>
    %cst_443 = arith.constant dense<0.000000e+00> : vector<8x32xf32>
    %790 = tpu.matmul %788, %789, %cst_443 {dimension_numbers = #tpu.dot_dimension_numbers<[1], [0], [0], [1], [0, 0, 1, 1], [], []>} : vector<8x32xf32>, vector<32x32xf32>, vector<8x32xf32> -> vector<8x32xf32>
    %c552_444 = arith.constant 552 : index
    %c0_445 = arith.constant 0 : index
    %791 = vector.load %arg4[%c552_444, %c0_445] : memref<1200x128xf32, #tpu.memory_space<vmem>>, vector<8x32xf32>
    %792 = arith.addf %790, %791 : vector<8x32xf32>
    %793 = arith.addf %780, %792 : vector<8x32xf32>
    %c576_446 = arith.constant 576 : index
    %c0_447 = arith.constant 0 : index
    %794 = vector.load %arg4[%c576_446, %c0_447] : memref<1200x128xf32, #tpu.memory_space<vmem>>, vector<8x32xf32>
    %c560_448 = arith.constant 560 : index
    %c0_449 = arith.constant 0 : index
    %795 = vector.load %arg4[%c560_448, %c0_449] : memref<1200x128xf32, #tpu.memory_space<vmem>>, vector<8x32xf32>
    %796 = vector.shape_cast %793 : vector<8x32xf32> to vector<1x8x32xf32>
    %cst_450 = arith.constant dense<0.000000e+00> : vector<1xf32>
    %797 = vector.multi_reduction <add>, %796, %cst_450 [1, 2] : vector<1x8x32xf32> to vector<1xf32>
    %798 = vector.shape_cast %797 : vector<1xf32> to vector<1x1x1xf32>
    %799 = vector.extract %798[0, 0, 0] : f32 from vector<1x1x1xf32>
    %800 = arith.mulf %793, %793 : vector<8x32xf32>
    %801 = vector.shape_cast %800 : vector<8x32xf32> to vector<1x8x32xf32>
    %cst_451 = arith.constant dense<0.000000e+00> : vector<1xf32>
    %802 = vector.multi_reduction <add>, %801, %cst_451 [1, 2] : vector<1x8x32xf32> to vector<1xf32>
    %803 = vector.shape_cast %802 : vector<1xf32> to vector<1x1x1xf32>
    %804 = vector.extract %803[0, 0, 0] : f32 from vector<1x1x1xf32>
    %cst_452 = arith.constant 3.906250e-03 : f32
    %805 = arith.mulf %799, %cst_452 : f32
    %cst_453 = arith.constant 3.906250e-03 : f32
    %806 = arith.mulf %804, %cst_453 : f32
    %807 = arith.mulf %805, %805 : f32
    %808 = arith.subf %806, %807 : f32
    %809 = vector.broadcast %805 : f32 to vector<8x32xf32>
    %810 = arith.subf %793, %809 : vector<8x32xf32>
    %cst_454 = arith.constant 9.99999974E-6 : f32
    %811 = arith.addf %808, %cst_454 : f32
    %812 = math.rsqrt %811 : f32
    %813 = vector.broadcast %812 : f32 to vector<8x32xf32>
    %814 = arith.mulf %810, %813 : vector<8x32xf32>
    %815 = arith.mulf %814, %794 : vector<8x32xf32>
    %816 = arith.addf %815, %795 : vector<8x32xf32>
    %c1_455 = arith.constant 1 : index
    %c0_456 = arith.constant 0 : index
    %c0_457 = arith.constant 0 : index
    %817 = vector.load %arg5[%c1_455, %c0_456, %c0_457] : memref<2x8x32xf32, #tpu.memory_space<vmem>>, vector<1x8x32xf32>
    %818 = vector.shape_cast %817 : vector<1x8x32xf32> to vector<8x32xf32>
    %819 = vector.shape_cast %816 : vector<8x32xf32> to vector<1x8x32xf32>
    tpu.vector_store %arg5[%c1_455, %c0_456, %c0_457], %819 {strides = array<i32>} : memref<2x8x32xf32, #tpu.memory_space<vmem>>, vector<1x8x32xf32>,
    return
  }
  func.func @transform_0(%arg0: i32) -> (i32, i32, i32) {
    %c0_i32 = arith.constant 0 : i32
    %c0_i32_0 = arith.constant 0 : i32
    %c0_i32_1 = arith.constant 0 : i32
    %c0_i32_2 = arith.constant 0 : i32
    return %c0_i32, %c0_i32_0, %c0_i32_1 : i32, i32, i32
  }
  func.func @transform_1(%arg0: i32) -> (i32, i32, i32) {
    %c0_i32 = arith.constant 0 : i32
    %c0_i32_0 = arith.constant 0 : i32
    %c0_i32_1 = arith.constant 0 : i32
    %c0_i32_2 = arith.constant 0 : i32
    return %c0_i32, %c0_i32_0, %c0_i32_1 : i32, i32, i32
  }
  func.func @transform_2(%arg0: i32) -> (i32, i32, i32) {
    %c0_i32 = arith.constant 0 : i32
    %c0_i32_0 = arith.constant 0 : i32
    %c0_i32_1 = arith.constant 0 : i32
    %c0_i32_2 = arith.constant 0 : i32
    return %c0_i32, %c0_i32_0, %c0_i32_1 : i32, i32, i32
  }
  func.func @transform_3(%arg0: i32) -> (i32, i32) {
    %c0_i32 = arith.constant 0 : i32
    %c0_i32_0 = arith.constant 0 : i32
    %c0_i32_1 = arith.constant 0 : i32
    return %c0_i32, %c0_i32_0 : i32, i32
  }
  func.func @transform_4(%arg0: i32) -> (i32, i32, i32) {
    %c0_i32 = arith.constant 0 : i32
    %c0_i32_0 = arith.constant 0 : i32
    %c0_i32_1 = arith.constant 0 : i32
    %c0_i32_2 = arith.constant 0 : i32
    return %c0_i32, %c0_i32_0, %c0_i32_1 : i32, i32, i32
  }
}

</mosaic_0001>

<bundles_post_ra>
// kernel: fwd.1
= control target key start
LH: loop header
LB: loop body
LE: loop exit
PB: predicated region body
PF: predicated region fallthrough
CT: control target
= control target key end

     0   :  { %9 = vsyncpa [#allocation3], 0  ;;  %s8506_s0 = inlined_call_operand.vmem [shape: f32[2,12,5], index: 0, kind: input, shape index: {}]   ;;  %s8507_s1 = inlined_call_operand.vmem [shape: f32[2,8,4], index: 1, kind: input, shape index: {}]   ;;  %s8508_s2 = inlined_call_operand.vmem [shape: f32[2,1,3], index: 2, kind: input, shape index: {}]   ;;  %s8509_s3 = inlined_call_operand.hbm [shape: f32[1200,128], index: 3, kind: input, shape index: {}]   ;;  %s8510_s4 = inlined_call_operand.hbm [shape: f32[2,8,32], index: 4, kind: output, shape index: {}]  }
   0x1   :  { %10 = vsyncpa [#allocation4], 0  ;;  %s7869_s15 = smov [#allocation2]   ;;  %s7821_s19 = scalar_lea.hbm %s8509_s3, 19200 }
   0x2   :  { %s22_s16 = sshll.u32 %s7869_s15, 4  ;;  %p7822_p0 = scmp.ne.s32.totalorder %s8509_s3, %s7821_s19  ;;  %s23_s16 = int_to_ptr.vmem [resolvable:$true] %s22_s16 }
   0x3   :  { %p7825_p1 = scmp.lt.u32.totalorder %s7821_s19, %s8509_s3 }
   0x5   :  { %p7827_p2 = pnand %p7825_p1, %p7822_p0 }
   0x7   :  { %7830 = shalt.err (!%p7827_p2)
}
   0x8   :  { %s7831_s24 = scalar_lea.vmem %s23_s16, 19200  ;;  %p7836_p4 = scmp.lt.s32.totalorder %s23_s16, %s23_s16 }
   0x9   :  { %p7832_p3 = scmp.ne.s32.totalorder %s23_s16, %s7831_s24  ;;  %p7837_p5 = scmp.lt.s32.totalorder %s7831_s24, %s7831_s24 }
   0xb   :  { %p7838_p6 = por %p7837_p5, %p7836_p4 }
   0xd   :  { %p7839_p7 = pnand %p7838_p6, %p7832_p3 }
   0xf   :  { %7842 = shalt.err (!%p7839_p7)
}
  0x10   :  { %s7870_s25 = smov 128   ;;  %s7871_s26 = smov 8  }
  0x11   :  { %28 = dma.hbm_to_vmem [thread:$0]  %s8509_s3, 19200, %s23_s16, [#allocation3], %s7870_s25, %s7870_s25, %s7871_s26  }
  0x12   :  { %7865 = dma.done.wait [#allocation3], 19200  }
  0x13   :  { %7866 = vsyncadd [#allocation3], 4294948096  ;;  %v7872_v0 = vmov 0.0   ;;  %vm7873_vm0 = vmmov 0   ;;  %v7874_v1 = vmov 0.0|0.0   ;;  %vm122_vm1 = vcmask 1042432  }
  0x14   :  { %6687 = vmatprep.subr.mxu1 %v7872_v0  ;;  %6689 = vmatprep.mubr.msk.f32.mxu1 %vm7873_vm0, %v7872_v0  ;;  %vm118_vm2 = vcmask 23552   ;;  %v116_v2 = vld [vmem:[#allocation2 + $0x470] sm:$0x7]  ;;  %v7927_v3 = vld [vmem:[%s8508_s2] sm:$0x1]  ;;  %v273_v6 = vld [vmem:[#allocation2 + $0x458] sm:$0xff] }
  0x15   :  { %7306 = vmatprep.subr.bf16.mxu0 %v7874_v1  ;;  %6684 = vmatprep.mubr.msk.f32.mxu0 %vm7873_vm0, %v7872_v0  ;;  %v196_v4 = vld [vmem:[#allocation2 + $0x448] sm:$0x7]  ;;  %v272_v5 = vld [vmem:[#allocation2 + $0x450] sm:$0xff]  ;;  %v274_v8 = vld [vmem:[#allocation2 + $0x460] sm:$0xff]  ;;  %vm277_vm3 = vcmask 261120   ;;  %vm42_vm4 = vcmask 1043456  }
  0x16   :  { %6688 = vmatpush3.msk.msra.mxu1 %vm122_vm1, %v116_v2  ;;  %v7311_v7 = vpack.c.bf16 %v273_v6, %v272_v5  ;;  %v275_v9 = vld [vmem:[#allocation2 + $0x468] sm:$0xff]  ;;  %v197_v11 = vld [vmem:[#allocation2 + $0x478] sm:$0x1]  ;;  %v33_v16 = vld [vmem:[%s8506_s0] sm:$0xff]  ;;  %vm7875_vm5 = vmmov 1   ;;  %vm38_vm7 = vcmask 97280  }
  0x17   :  { %6690 = vmatmul.mubr.msk.f32.vlgmr.msra.gmra.mrb[0].mxu1 %vm118_vm2, %v7927_v3  ;;  %6692 = vmatprep.subr.mxu1 %v7872_v0  ;;  %v7314_v10 = vpack.c.bf16 %v275_v9, %v274_v8  ;;  %v34_v17 = vld [vmem:[%s8506_s0 + $0x8] sm:$0xf]  ;;  %vm7953_vm6 = vmpackc.low %vm42_vm4, %vm7875_vm5  ;;  %v36_v20 = vld [vmem:[#allocation2 + $0x4a0] sm:$0xff]  ;;  %vm354_vm8 = vcmask 253952   ;;  %vm550_vm9 = vcmask 1044480   ;;  %vm546_vm10 = vcmask 39936  }
  0x18   :  { %6693 = vmatpush3.msk.msra.mxu1 %vm122_vm1, %v196_v4  ;;  %6694 = vmatprep.mubr.msk.f32.mxu1 %vm7873_vm0, %v7872_v0  ;;  %v7307_v18 = vpack.c.bf16 %v34_v17, %v33_v16  ;;  %v117_v21 = vld [vmem:[#allocation2 + $0x490] sm:$0x1]  ;;  %v276_v22 = vld [vmem:[#allocation2 + $0x480] sm:$0x1]  ;;  %v37_v33 = vld [vmem:[#allocation2 + $0x4a8] sm:$0xff]  ;;  %vm1246_vm11 = vcmask 31744  }
  0x19   :  { %7310 = vmatprep.subr.bf16.mxu1 %v7874_v1  ;;  %v7578_v23 = vadd.f32 %v276_v22, %v117_v21  ;;  %v390_v37 = vld [vmem:[#allocation2 + $0x3b0] sm:$0xff]  ;;  %v391_v38 = vld [vmem:[#allocation2 + $0x3b8] sm:$0xff]  ;;  %v392_v46 = vld [vmem:[#allocation2 + $0x3c0] sm:$0xff]  ;;  %vm1529_vm12 = vcmask 64512   ;;  %vm1607_vm13 = vcmask 523264  }
  0x1a   :  { %7309 = vmatpush3.bf16.msk.msra.mxu0 %vm7953_vm6, %v7307_v18  ;;  %v7317_v40 = vpack.c.bf16 %v391_v38, %v390_v37  ;;  %v541_v43 = vld [vmem:[#allocation2 + $0x418] sm:$0x1f]  ;;  %v393_v47 = vld [vmem:[#allocation2 + $0x3c8] sm:$0xff]  ;;  %v626_v51 = vld [vmem:[#allocation2 + $0x3d0] sm:$0x1f] }
  0x1b   :  { %6695 = vmatmul.mubr.msk.f32.vlgmr.msra.gmra.mrb[2].mxu1 %vm118_vm2, %v7927_v3  ;;  %7316 = vmatprep.subr.bf16.mxu0 %v7874_v1  ;;  %v7320_v48 = vpack.c.bf16 %v393_v47, %v392_v46  ;;  %v352_v60 = vld [vmem:[#allocation2 + $0x498] sm:$0x1]  ;;  %v468_v2 = vld [vmem:[#allocation2 + $0x400] sm:$0xff]  ;;  %v353_v4 = vld [vmem:[#allocation2 + $0x488] sm:$0x1] }
  0x1c   :  { %7312 = vmatpush3.bf16.msra.mxu1 %v7311_v7  ;;  %6705 = vmatprep.mubr.msk.f32.mxu1 %vm7873_vm0, %v7872_v0  ;;  %v467_v63 = vld [vmem:[#allocation2 + $0x3f8] sm:$0xff]  ;;  %v469_v8 = vld [vmem:[#allocation2 + $0x408] sm:$0xff]  ;;  %v470_v9 = vld [vmem:[#allocation2 + $0x410] sm:$0xff] }
  0x1d   :  { %7313 = vmatprep.subr.bf16.mxu1 %v7874_v1  ;;  %6685 = vmatmul.mubr.msk.f32.vlgmr.msra.gmra.mrb[0].mxu0 %vm38_vm7, %v36_v20  ;;  %v7323_v6 = vpack.c.bf16 %v468_v2, %v467_v63  ;;  %v708_v16 = vld [vmem:[#allocation2 + $0x3e0] sm:$0xff]  ;;  %v709_v18 = vld [vmem:[#allocation2 + $0x3e8] sm:$0xff]  ;;  %v710_v20 = vld [vmem:[#allocation2 + $0x3f0] sm:$0xff] }
  0x1e   :  { %6716 = vmatprep.mubr.msk.f32.mxu0 %vm7873_vm0, %v7872_v0  ;;  %7318 = vmatpush3.bf16.msra.mxu0 %v7317_v40  ;;  %v7332_v21 = vpack.c.bf16 %v710_v20, %v709_v18  ;;  %v974_v22 = vld [vmem:[#allocation2 + $0x360] sm:$0xff]  ;;  %v899_v40 = vld [vmem:[#allocation2 + $0x388] sm:$0x1]  ;;  %v624_v46 = vld [vmem:[#allocation2 + $0x438] sm:$0xff] }
  0x1f   :  { %7319 = vmatprep.subr.bf16.mxu0 %v7874_v1  ;;  %v8210_v19 = vld [vmem:[%s8508_s2 + $0x1] sm:$0x1] }
  0x20   :  { %7315 = vmatpush3.bf16.msra.mxu1 %v7314_v10  ;;  %v7326_v10 = vpack.c.bf16 %v470_v9, %v469_v8 }
  0x21   :  { %6730 = vmatprep.subr.mxu1 %v7872_v0 }
  0x22   :  { %7321 = vmatpush3.bf16.msra.mxu0 %v7320_v48  ;;  %v711_v48 = vld [vmem:[#allocation2 + $0x428] sm:$0xff] }
  0x23   :  { %7322 = vmatprep.subr.bf16.mxu0 %v7874_v1 }
  0xee   :  { %v267_v12 = vpop.f32.mrb[2].mxu1 }
  0xef   :  { %v268_v13 = vadd.f32 %v267_v12, %v197_v11  ;;  %v6696_v14 = vpop.f32.mrb[3].mxu1  ;;  %v823_v11 = vld [vmem:[#allocation2 + $0x380] sm:$0x7]  ;;  %v898_v12 = vld [vmem:[#allocation2 + $0x358] sm:$0x7] }
  0xf0   :  { %v112_v30 = vpop.f32.mrb[0].mxu0 }
  0xf1   :  { %v271_v15 = vmax.f32 %v268_v13, 0.0  ;;  %v6686_v31 = vpop.f32.mrb[1].mxu0  ;;  %v113_v36 = vadd.f32 %v112_v30, %v37_v33 }
  0xf3   :  { %6706 = vmatmul.mubr.msk.f32.vlgmr.msra.gmra.mrb[0].mxu1 %vm277_vm3, %v271_v15  ;;  %v707_v15 = vld [vmem:[#allocation2 + $0x3d8] sm:$0xff] }
  0xf4   :  { %6732 = vmatprep.mubr.msk.f32.mxu1 %vm7873_vm0, %v7872_v0  ;;  %6731 = vmatpush3.msk.msra.mxu1 %vm550_vm9, %v541_v43  ;;  %v7329_v17 = vpack.c.bf16 %v708_v16, %v707_v15 }
  0xf5   :  { %6735 = vmatprep.subr.mxu1 %v7872_v0 }
  0xf7   :  { %6733 = vmatmul.mubr.msk.f32.vlgmr.msra.gmra.mrb[4].mxu1 %vm546_vm10, %v113_v36 }
  0xf8   :  { %6737 = vmatprep.mubr.msk.f32.mxu1 %vm7873_vm0, %v7872_v0  ;;  %6736 = vmatpush3.msk.msra.mxu1 %vm550_vm9, %v626_v51 }
  0xf9   :  { %7328 = vmatprep.subr.bf16.mxu1 %v7874_v1 }
  0xfb   :  { %6738 = vmatmul.mubr.msk.f32.vlgmr.msra.gmra.mrb[6].mxu1 %vm546_vm10, %v113_v36 }
  0xfc   :  { %6748 = vmatprep.mubr.msk.f32.mxu1 %vm7873_vm0, %v7872_v0  ;;  %7330 = vmatpush3.bf16.msra.mxu1 %v7329_v17 }
  0xfd   :  { %7331 = vmatprep.subr.bf16.mxu1 %v7874_v1 }
 0x100   :  { %7333 = vmatpush3.bf16.msra.mxu1 %v7332_v21 }
 0x101   :  { %7340 = vmatprep.subr.bf16.mxu1 %v7874_v1 }
 0x1c6   :  { %v347_v24 = vpop.f32.mrb[0].mxu1 }
 0x1c7   :  { %v7579_v25 = vadd.f32 %v7578_v23, %v347_v24  ;;  %v6707_v26 = vpop.f32.mrb[1].mxu1  ;;  %v975_v23 = vld [vmem:[#allocation2 + $0x368] sm:$0xff] }
 0x1c8   :  { %v7335_v24 = vpack.c.bf16 %v975_v23, %v974_v22  ;;  %v977_v26 = vld [vmem:[#allocation2 + $0x378] sm:$0xff] }
 0x1c9   :  { %v355_v27 = vsel %vm354_vm8, %v7579_v25, 0.0  ;;  %v365_v28 = vmul.f32 %v7579_v25, %v7579_v25 }
 0x1ca   :  { %356 = vadd.xlane.f32.xlu0 %v355_v27 }
 0x1cb   :  { %v366_v29 = vsel %vm354_vm8, %v365_v28, 0.0  ;;  %v542_v28 = vlaneseq }
 0x1ce   :  { %367 = vadd.xlane.f32.xlu0 %v366_v29  ;;  %v700_v13 = vpop.f32.mrb[6].mxu1  ;;  %v543_v29 = vshrl.u32 %v542_v28, 7 }
 0x1cf   :  { %v6739_v14 = vpop.f32.mrb[7].mxu1 }
 0x1d0   :  { %v8001_v30 = vsub.s32 0, %v543_v29  ;;  %v1090_v29 = vld [vmem:[#allocation2 + $0x2c0] sm:$0xff] }
 0x257   :  { %v357_v32 = vpop.xlane.xlu0 %356 }
 0x258   :  { %v358_v34 = vrot.slane %v357_v32, 4 }
 0x25a   :  { %v359_v35 = vadd.f32 %v358_v34, %v357_v32  ;;  %v704_v34 = vld [vmem:[#allocation2 + $0x420] sm:$0xff] }
 0x25b   :  { %v368_v39 = vpop.xlane.xlu0 %367 }
 0x25c   :  { %v360_v41 = vrot.slane %v359_v35, 2  ;;  %v369_v42 = vrot.slane %v368_v39, 4 }
 0x25e   :  { %v370_v44 = vadd.f32 %v369_v42, %v368_v39  ;;  %v361_v45 = vadd.f32 %v360_v41, %v359_v35 }
 0x260   :  { %v371_v49 = vrot.slane %v370_v44, 2  ;;  %v362_v50 = vrot.slane %v361_v45, 1 }
 0x262   :  { %v363_v52 = vadd.f32 %v362_v50, %v361_v45  ;;  %v372_v53 = vadd.f32 %v371_v49, %v370_v44 }
 0x264   :  { %7650 = vpush %v363_v52  ;;  %v373_v54 = vrot.slane %v372_v53, 1 }
 0x266   :  { %v374_v55 = vadd.f32 %v373_v54, %v372_v53 }
 0x268   :  { %7652 = vpush %v374_v55  ;;  %v824_v55 = vld [vmem:[#allocation2 + $0x3a0] sm:$0x1] }
 0x295   :  { %s7651_s8 = spop %7650 }
 0x296   :  { %s376_s9 = smul.f32 0.03125, %s7651_s8 }
 0x298   :  { %s378_s10 = smul.f32 %s376_s9, %s376_s9  ;;  %v380_v58 = vstv %s376_s9 }
 0x299   :  { %s7653_s11 = spop %7652  ;;  %v381_v59 = vsub.f32 %v7579_v25, %v380_v58  ;;  %v976_v25 = vld [vmem:[#allocation2 + $0x370] sm:$0xff] }
 0x29a   :  { %s377_s12 = smul.f32 0.03125, %s7653_s11  ;;  %v7338_v27 = vpack.c.bf16 %v977_v26, %v976_v25 }
 0x29c   :  { %s379_s13 = ssub.f32 %s377_s12, %s378_s10 }
 0x29e   :  { %s382_s14 = sadd.f32 1e-05, %s379_s13 }
 0x2a0   :  { %v383_v56 = vstv %s382_s14 }
 0x2a1   :  { %7779 = vrsqrt.f32 %v383_v56  ;;  %v978_v56 = vld [vmem:[#allocation2 + $0x390] sm:$0x1] }
 0x2a2   :  { %v7583_v58 = vadd.f32 %v978_v56, %v824_v55 }
 0x2ab   :  { %v7780_v57 = vpop.eup %7779 }
 0x2ac   :  { %7654 = vpush %v7780_v57 }
 0x2dd   :  { %s7655_s15 = spop %7654 }
 0x2de   :  { %v386_v61 = vstv %s7655_s15 }
 0x2df   :  { %v387_v62 = vmul.f32 %v386_v61, %v381_v59 }
 0x2e1   :  { %v388_v5 = vmul.f32 %v387_v62, %v352_v60 }
 0x2e3   :  { %v389_v7 = vadd.f32 %v388_v5, %v353_v4 }
 0x2e5   :  { %6717 = vmatmul.mubr.msk.f32.vlgmr.msra.gmra.mrb[2].mxu0 %vm277_vm3, %v389_v7 }
 0x2e6   :  { %7324 = vmatpush3.bf16.msra.mxu0 %v7323_v6  ;;  %6727 = vmatprep.mubr.msk.f32.mxu0 %vm7873_vm0, %v7872_v0 }
 0x2e7   :  { %7325 = vmatprep.subr.bf16.mxu0 %v7874_v1 }
 0x2ea   :  { %7327 = vmatpush3.bf16.msra.mxu0 %v7326_v10 }
 0x2eb   :  { %6751 = vmatprep.subr.mxu0 %v7872_v0 }
 0x2ed   :  { %6728 = vmatmul.mubr.msk.f32.vlgmr.msra.gmra.mrb[4].mxu0 %vm277_vm3, %v389_v7 }
 0x2ee   :  { %6752 = vmatpush3.msk.msra.mxu0 %vm122_vm1, %v823_v11  ;;  %6753 = vmatprep.mubr.msk.f32.mxu0 %vm7873_vm0, %v7872_v0 }
 0x2ef   :  { %6756 = vmatprep.subr.mxu0 %v7872_v0 }
 0x2f1   :  { %6754 = vmatmul.mubr.msk.f32.vlgmr.msra.gmra.mrb[6].mxu0 %vm118_vm2, %v7927_v3 }
 0x2f2   :  { %6757 = vmatpush3.msk.msra.mxu0 %vm122_vm1, %v898_v12  ;;  %6758 = vmatprep.mubr.msk.f32.mxu0 %vm7873_vm0, %v7872_v0 }
 0x2f3   :  { %7334 = vmatprep.subr.bf16.mxu0 %v7874_v1 }
 0x2f5   :  { %6759 = vmatmul.mubr.msk.f32.vlgmr.msra.gmra.mrb[8].mxu0 %vm118_vm2, %v7927_v3 }
 0x2f6   :  { %6769 = vmatprep.mubr.msk.f32.mxu0 %vm7873_vm0, %v7872_v0  ;;  %7336 = vmatpush3.bf16.msra.mxu0 %v7335_v24 }
 0x2f7   :  { %7337 = vmatprep.subr.bf16.mxu0 %v7874_v1 }
 0x2fa   :  { %7339 = vmatpush3.bf16.msra.mxu0 %v7338_v27 }
 0x2fb   :  { %7346 = vmatprep.subr.bf16.mxu0 %v7874_v1 }
 0x3b8   :  { %v463_v31 = vpop.f32.mrb[2].mxu0 }
 0x3b9   :  { %v630_v32 = vrot.slane %v463_v31, %v8001_v30  ;;  %v6718_v33 = vpop.f32.mrb[3].mxu0  ;;  %v1091_v31 = vld [vmem:[#allocation2 + $0x2c8] sm:$0xff] }
 0x3bb   :  { %v701_v35 = vadd.f32 %v700_v13, %v630_v32  ;;  %v1167_v32 = vld [vmem:[#allocation2 + $0x308] sm:$0xff] }
 0x3bd   :  { %v705_v36 = vadd.f32 %v704_v34, %v701_v35  ;;  %v7341_v34 = vpack.c.bf16 %v1091_v31, %v1090_v29  ;;  %v1168_v35 = vld [vmem:[#allocation2 + $0x310] sm:$0xff] }
 0x3bf   :  { %v706_v37 = vmax.f32 %v705_v36, 0.0  ;;  %v7347_v36 = vpack.c.bf16 %v1168_v35, %v1167_v32 }
 0x3c0   :  { %v537_v38 = vpop.f32.mrb[4].mxu0 }
 0x3c1   :  { %v6729_v39 = vpop.f32.mrb[5].mxu0  ;;  %6749 = vmatmul.mubr.msk.f32.vlgmr.msra.gmra.mrb[4].mxu1 %vm277_vm3, %v706_v37  ;;  %v545_v45 = vrot.slane %v537_v38, %v8001_v30  ;;  %v1092_v38 = vld [vmem:[#allocation2 + $0x2d0] sm:$0xff] }
 0x3c2   :  { %6780 = vmatprep.mubr.msk.f32.mxu1 %vm7873_vm0, %v7872_v0  ;;  %7342 = vmatpush3.bf16.msra.mxu1 %v7341_v34  ;;  %v1093_v39 = vld [vmem:[#allocation2 + $0x2d8] sm:$0xff] }
 0x3c3   :  { %v7580_v47 = vadd.f32 %v624_v46, %v545_v45  ;;  %7343 = vmatprep.subr.bf16.mxu1 %v7874_v1 }
 0x3c5   :  { %v7581_v49 = vadd.f32 %v7580_v47, %v711_v48 }
 0x3c8   :  { %v969_v41 = vpop.f32.mrb[8].mxu0 }
 0x3c9   :  { %v970_v42 = vadd.f32 %v969_v41, %v899_v40  ;;  %v6760_v43 = vpop.f32.mrb[9].mxu0  ;;  %v1169_v40 = vld [vmem:[#allocation2 + $0x318] sm:$0xff] }
 0x3ca   :  { %v1170_v43 = vld [vmem:[#allocation2 + $0x320] sm:$0xff] }
 0x3cb   :  { %v973_v44 = vmax.f32 %v970_v42, 0.0  ;;  %v7344_v42 = vpack.c.bf16 %v1093_v39, %v1092_v38 }
 0x3cd   :  { %6770 = vmatmul.mubr.msk.f32.vlgmr.msra.gmra.mrb[6].mxu0 %vm277_vm3, %v973_v44  ;;  %v7350_v44 = vpack.c.bf16 %v1170_v43, %v1169_v40  ;;  %7345 = vmatpush3.bf16.msra.mxu1 %v7344_v42 }
 0x3ce   :  { %6791 = vmatprep.mubr.msk.f32.mxu0 %vm7873_vm0, %v7872_v0  ;;  %7348 = vmatpush3.bf16.msra.mxu0 %v7347_v36 }
 0x3cf   :  { %7349 = vmatprep.subr.bf16.mxu0 %v7874_v1  ;;  %6794 = vmatprep.subr.mxu1 %v7872_v0 }
 0x3d2   :  { %7351 = vmatpush3.bf16.msra.mxu0 %v7350_v44 }
 0x3d3   :  { %6815 = vmatprep.subr.mxu0 %v7872_v0 }
 0x494   :  { %v781_v50 = vpop.f32.mrb[4].mxu1 }
 0x495   :  { %v8011_v51 = vadd.f32 %v7581_v49, %v781_v50  ;;  %v6750_v52 = vpop.f32.mrb[5].mxu1 }
 0x497   :  { %v788_v53 = vsel %vm277_vm3, %v8011_v51, 0.0  ;;  %v798_v54 = vmul.f32 %v8011_v51, %v8011_v51 }
 0x498   :  { %789 = vadd.xlane.f32.xlu1 %v788_v53 }
 0x499   :  { %v799_v57 = vsel %vm277_vm3, %v798_v54, 0.0 }
 0x49c   :  { %800 = vadd.xlane.f32.xlu1 %v799_v57 }
 0x4a0   :  { %v1048_v59 = vpop.f32.mrb[6].mxu0 }
 0x4a1   :  { %v8018_v60 = vadd.f32 %v7583_v58, %v1048_v59  ;;  %v6771_v61 = vpop.f32.mrb[7].mxu0  ;;  %v1054_v59 = vld [vmem:[#allocation2 + $0x398] sm:$0x1] }
 0x4a3   :  { %v1055_v62 = vsel %vm354_vm8, %v8018_v60, 0.0  ;;  %v1065_v63 = vmul.f32 %v8018_v60, %v8018_v60 }
 0x4a4   :  { %1056 = vadd.xlane.f32.xlu0 %v1055_v62 }
 0x4a5   :  { %v1066_v2 = vsel %vm354_vm8, %v1065_v63, 0.0  ;;  %v1241_v63 = vld [vmem:[#allocation2 + $0x328] sm:$0xf] }
 0x4a6   :  { %1067 = vadd.xlane.f32.xlu1 %v1066_v2  ;;  %v1325_v2 = vld [vmem:[#allocation2 + $0x2e0] sm:$0xf] }
 0x525   :  { %v790_v4 = vpop.xlane.xlu1 %789 }
 0x526   :  { %v791_v5 = vrot.slane %v790_v4, 4 }
 0x528   :  { %v792_v6 = vadd.f32 %v791_v5, %v790_v4  ;;  %v1406_v4 = vld [vmem:[#allocation2 + $0x2e8] sm:$0xff]  ;;  %v1407_v5 = vld [vmem:[#allocation2 + $0x2f0] sm:$0xff] }
 0x529   :  { %v801_v7 = vpop.xlane.xlu1 %800 }
 0x52a   :  { %v793_v8 = vrot.slane %v792_v6, 2  ;;  %v802_v9 = vrot.slane %v801_v7, 4 }
 0x52c   :  { %v803_v10 = vadd.f32 %v802_v9, %v801_v7  ;;  %v794_v11 = vadd.f32 %v793_v8, %v792_v6  ;;  %v7353_v6 = vpack.c.bf16 %v1407_v5, %v1406_v4  ;;  %v1408_v7 = vld [vmem:[#allocation2 + $0x2f8] sm:$0xff]  ;;  %v1409_v8 = vld [vmem:[#allocation2 + $0x300] sm:$0xff]  ;;  %v1643_v5 = vld [vmem:[#allocation2 + $0x130] sm:$0x7] }
 0x52d   :  { %v7356_v9 = vpack.c.bf16 %v1409_v8, %v1408_v7  ;;  %v1795_v7 = vld [vmem:[#allocation2 + $0x118] sm:$0xff] }
 0x52e   :  { %v804_v12 = vrot.slane %v803_v10, 2  ;;  %v795_v13 = vrot.slane %v794_v11, 1 }
 0x530   :  { %v796_v14 = vadd.f32 %v795_v13, %v794_v11  ;;  %v805_v15 = vadd.f32 %v804_v12, %v803_v10 }
 0x531   :  { %v1057_v18 = vpop.xlane.xlu0 %1056 }
 0x532   :  { %7656 = vpush %v796_v14  ;;  %v806_v16 = vrot.slane %v805_v15, 1  ;;  %v1058_v21 = vrot.slane %v1057_v18, 4 }
 0x533   :  { %v1068_v20 = vpop.xlane.xlu1 %1067 }
 0x534   :  { %v807_v17 = vadd.f32 %v806_v16, %v805_v15  ;;  %v1069_v22 = vrot.slane %v1068_v20, 4  ;;  %v1059_v23 = vadd.f32 %v1058_v21, %v1057_v18  ;;  %v1403_v16 = vld [vmem:[#allocation2 + $0x330] sm:$0xff] }
 0x536   :  { %7658 = vpush %v807_v17  ;;  %v1070_v24 = vadd.f32 %v1069_v22, %v1068_v20  ;;  %v1060_v25 = vrot.slane %v1059_v23, 2 }
 0x538   :  { %v1071_v26 = vrot.slane %v1070_v24, 2  ;;  %v1061_v28 = vadd.f32 %v1060_v25, %v1059_v23  ;;  %v1323_v23 = vld [vmem:[#allocation2 + $0x348] sm:$0xff]  ;;  %v1410_v25 = vld [vmem:[#allocation2 + $0x338] sm:$0xff] }
 0x53a   :  { %v1072_v33 = vadd.f32 %v1071_v26, %v1070_v24  ;;  %v1062_v37 = vrot.slane %v1061_v28, 1 }
 0x53c   :  { %v1073_v41 = vrot.slane %v1072_v33, 1  ;;  %v1063_v46 = vadd.f32 %v1062_v37, %v1061_v28 }
 0x53e   :  { %v1074_v47 = vadd.f32 %v1073_v41, %v1072_v33 }
 0x563   :  { %s7657_s16 = spop %7656 }
 0x564   :  { %s8025_s17 = smul.f32 0.00390625, %s7657_s16 }
 0x566   :  { %s811_s18 = smul.f32 %s8025_s17, %s8025_s17  ;;  %v813_v48 = vstv %s8025_s17  ;;  %s7876_s17 = smov 32  }
 0x567   :  { %s7659_s19 = spop %7658  ;;  %v814_v49 = vsub.f32 %v8011_v51, %v813_v48  ;;  %v1053_v51 = vld [vmem:[#allocation2 + $0x3a8] sm:$0x1] }
 0x568   :  { %s810_s20 = smul.f32 0.00390625, %s7659_s19 }
 0x56a   :  { %s812_s21 = ssub.f32 %s810_s20, %s811_s18 }
 0x56c   :  { %s815_s22 = sadd.f32 1e-05, %s812_s21 }
 0x56e   :  { %v816_v27 = vstv %s815_s22 }
 0x56f   :  { %7781 = vrsqrt.f32 %v816_v27 }
 0x579   :  { %v7782_v45 = vpop.eup %7781 }
 0x57a   :  { %7660 = vpush %v7782_v45 }
 0x57b   :  { %7662 = vpush %v1063_v46 }
 0x57c   :  { %7664 = vpush %v1074_v47 }
 0x5ab   :  { %s7661_s23 = spop %7660 }
 0x5ac   :  { %v819_v50 = vstv %s7661_s23  ;;  %s7663_s24 = spop %7662 }
 0x5ad   :  { %v8035_v52 = vmul.f32 %v819_v50, %v814_v49  ;;  %s1076_s27 = smul.f32 0.03125, %s7663_s24  ;;  %s7665_s28 = spop %7664 }
 0x5ae   :  { %s1077_s29 = smul.f32 0.03125, %s7665_s28 }
 0x5af   :  { %s1078_s3 = smul.f32 %s1076_s27, %s1076_s27  ;;  %v1080_v55 = vstv %s1076_s27 }
 0x5b0   :  { %v1081_v56 = vsub.f32 %v8018_v60, %v1080_v55  ;;  %v35_v60 = vld [vmem:[%s8507_s1] sm:$0xff] }
 0x5b1   :  { %s1079_s30 = ssub.f32 %s1077_s29, %s1078_s3 }
 0x5b3   :  { %s1082_s5 = sadd.f32 1e-05, %s1079_s30 }
 0x5b5   :  { %v1083_v53 = vstv %s1082_s5 }
 0x5b6   :  { %7783 = vrsqrt.f32 %v1083_v53 }
 0x5c0   :  { %v7784_v54 = vpop.eup %7783 }
 0x5c1   :  { %7666 = vpush %v7784_v54  ;;  %v1485_v54 = vld [vmem:[#allocation2 + $0x350] sm:$0xff] }
 0x5f2   :  { %s7667_s6 = spop %7666 }
 0x5f3   :  { %v1086_v57 = vstv %s7667_s6 }
 0x5f4   :  { %v1087_v58 = vmul.f32 %v1086_v57, %v1081_v56 }
 0x5f6   :  { %v1088_v61 = vmul.f32 %v1087_v58, %v1053_v51  ;;  %v1486_v51 = vld [vmem:[#allocation2 + $0x340] sm:$0xff] }
 0x5f8   :  { %v1089_v62 = vadd.f32 %v1088_v61, %v1054_v59  ;;  %v786_v59 = vld [vmem:[#allocation2 + $0x440] sm:$0xff] }
 0x5f9   :  { %v821_v61 = vmul.f32 %v8035_v52, %v786_v59  ;;  %v1718_v52 = vld [vmem:[#allocation2 + $0x108] sm:$0x7] }
 0x5fa   :  { %6781 = vmatmul.mubr.msk.f32.vlgmr.msra.gmra.mrb[8].mxu1 %vm277_vm3, %v1089_v62  ;;  %6792 = vmatmul.mubr.msk.f32.vlgmr.msra.gmra.mrb[10].mxu0 %vm277_vm3, %v1089_v62  ;;  %v787_v62 = vld [vmem:[#allocation2 + $0x430] sm:$0xff] }
 0x5fb   :  { %6795 = vmatpush3.msk.msra.mxu1 %vm42_vm4, %v1241_v63  ;;  %6796 = vmatprep.mubr.msk.f32.mxu1 %vm7873_vm0, %v7872_v0  ;;  %v822_v63 = vadd.f32 %v821_v61, %v787_v62 }
 0x5fc   :  { %6799 = vmatprep.subr.mxu1 %v7872_v0  ;;  %6817 = vmatprep.mubr.msk.f32.mxu0 %vm7873_vm0, %v7872_v0 }
 0x5fe   :  { %6797 = vmatmul.mubr.msk.f32.vlgmr.msra.gmra.mrb[10].mxu1 %vm1246_vm11, %v35_v60 }
 0x5ff   :  { %6800 = vmatpush3.msk.msra.mxu1 %vm42_vm4, %v1325_v2  ;;  %6801 = vmatprep.mubr.msk.f32.mxu1 %vm7873_vm0, %v7872_v0  ;;  %v1527_v2 = vld [vmem:[#allocation2 + $0x160] sm:$0xff] }
 0x600   :  { %7352 = vmatprep.subr.bf16.mxu1 %v7874_v1 }
 0x602   :  { %6802 = vmatmul.mubr.msk.f32.vlgmr.msra.gmra.mrb[12].mxu1 %vm1246_vm11, %v35_v60 }
 0x603   :  { %6812 = vmatprep.mubr.msk.f32.mxu1 %vm7873_vm0, %v7872_v0  ;;  %7354 = vmatpush3.bf16.msra.mxu1 %v7353_v6  ;;  %v1794_v6 = vld [vmem:[#allocation2 + $0x110] sm:$0xff] }
 0x604   :  { %7355 = vmatprep.subr.bf16.mxu1 %v7874_v1  ;;  %v7359_v8 = vpack.c.bf16 %v1795_v7, %v1794_v6 }
 0x607   :  { %7357 = vmatpush3.bf16.msra.mxu1 %v7356_v9  ;;  %v1796_v9 = vld [vmem:[#allocation2 + $0x120] sm:$0xff] }
 0x608   :  { %7364 = vmatprep.subr.bf16.mxu1 %v7874_v1 }
 0x6cd   :  { %v1163_v10 = vpop.f32.mrb[8].mxu1  ;;  %v1237_v11 = vpop.f32.mrb[10].mxu0 }
 0x6ce   :  { %v6782_v12 = vpop.f32.mrb[9].mxu1  ;;  %v6793_v13 = vpop.f32.mrb[11].mxu0  ;;  %v1329_v14 = vrot.slane %v1163_v10, %v8001_v30  ;;  %v1245_v22 = vrot.slane %v1237_v11, %v8001_v30  ;;  %v1797_v10 = vld [vmem:[#allocation2 + $0x128] sm:$0xff] }
 0x6cf   :  { %v7362_v11 = vpack.c.bf16 %v1797_v10, %v1796_v9  ;;  %v1528_v12 = vld [vmem:[#allocation2 + $0x168] sm:$0xff] }
 0x6d0   :  { %v7585_v24 = vadd.f32 %v1323_v23, %v1245_v22 }
 0x6d2   :  { %v7586_v26 = vadd.f32 %v7585_v24, %v1410_v25 }
 0x6d5   :  { %v1399_v15 = vpop.f32.mrb[12].mxu1 }
 0x6d6   :  { %v1400_v17 = vadd.f32 %v1399_v15, %v1329_v14  ;;  %v6803_v18 = vpop.f32.mrb[13].mxu1 }
 0x6d8   :  { %v1404_v20 = vadd.f32 %v1403_v16, %v1400_v17  ;;  %v1719_v17 = vld [vmem:[#allocation2 + $0x138] sm:$0x1] }
 0x6da   :  { %v1405_v21 = vmax.f32 %v1404_v20, 0.0 }
 0x6dc   :  { %6813 = vmatmul.mubr.msk.f32.vlgmr.msra.gmra.mrb[10].mxu1 %vm277_vm3, %v1405_v21 }
 0x6dd   :  { %6849 = vmatprep.mubr.msk.f32.mxu1 %vm7873_vm0, %v7872_v0 }
 0x7af   :  { %v1480_v27 = vpop.f32.mrb[10].mxu1 }
 0x7b0   :  { %v7587_v28 = vadd.f32 %v7586_v26, %v1480_v27  ;;  %v6814_v29 = vpop.f32.mrb[11].mxu1  ;;  %v2061_v26 = vld [vmem:[#allocation2 + $0xa0] sm:$0xff]  ;;  %v2062_v27 = vld [vmem:[#allocation2 + $0xa8] sm:$0xff] }
 0x7b1   :  { %v7377_v29 = vpack.c.bf16 %v2062_v27, %v2061_v26 }
 0x7b2   :  { %v1487_v31 = vsel %vm277_vm3, %v7587_v28, 0.0  ;;  %v1497_v32 = vmul.f32 %v7587_v28, %v7587_v28 }
 0x7b3   :  { %1488 = vadd.xlane.f32.xlu0 %v1487_v31  ;;  %v2064_v31 = vld [vmem:[#allocation2 + $0xb8] sm:$0xff] }
 0x7b4   :  { %v1498_v33 = vsel %vm277_vm3, %v1497_v32, 0.0 }
 0x7b5   :  { %1499 = vadd.xlane.f32.xlu1 %v1498_v33 }
 0x840   :  { %v1489_v34 = vpop.xlane.xlu0 %1488 }
 0x841   :  { %v1490_v35 = vrot.slane %v1489_v34, 4 }
 0x842   :  { %v1500_v36 = vpop.xlane.xlu1 %1499 }
 0x843   :  { %v1491_v37 = vadd.f32 %v1490_v35, %v1489_v34  ;;  %v1501_v38 = vrot.slane %v1500_v36, 4 }
 0x845   :  { %v1492_v39 = vrot.slane %v1491_v37, 2  ;;  %v1502_v40 = vadd.f32 %v1501_v38, %v1500_v36  ;;  %v2066_v38 = vld [vmem:[#allocation2 + $0xc8] sm:$0xff] }
 0x847   :  { %v1503_v41 = vrot.slane %v1502_v40, 2  ;;  %v1493_v42 = vadd.f32 %v1492_v39, %v1491_v37  ;;  %v2065_v37 = vld [vmem:[#allocation2 + $0xc0] sm:$0xff] }
 0x849   :  { %v1494_v43 = vrot.slane %v1493_v42, 1  ;;  %v1504_v44 = vadd.f32 %v1503_v41, %v1502_v40  ;;  %v7383_v41 = vpack.c.bf16 %v2066_v38, %v2065_v37 }
 0x84b   :  { %v1495_v45 = vadd.f32 %v1494_v43, %v1493_v42  ;;  %v1505_v46 = vrot.slane %v1504_v44, 1 }
 0x84d   :  { %7668 = vpush %v1495_v45  ;;  %v1506_v47 = vadd.f32 %v1505_v46, %v1504_v44  ;;  %v2067_v44 = vld [vmem:[#allocation2 + $0xd0] sm:$0xff]  ;;  %v2068_v45 = vld [vmem:[#allocation2 + $0xd8] sm:$0xff] }
 0x84f   :  { %7670 = vpush %v1506_v47 }
 0x87e   :  { %s7669_s9 = spop %7668 }
 0x87f   :  { %s1508_s10 = smul.f32 0.00390625, %s7669_s9 }
 0x880   :  { %s7671_s11 = spop %7670 }
 0x881   :  { %s1510_s12 = smul.f32 %s1508_s10, %s1508_s10  ;;  %v1512_v50 = vstv %s1508_s10 }
 0x882   :  { %s1509_s13 = smul.f32 0.00390625, %s7671_s11  ;;  %v1513_v53 = vsub.f32 %v7587_v28, %v1512_v50  ;;  %v2063_v28 = vld [vmem:[#allocation2 + $0xb0] sm:$0xff] }
 0x883   :  { %v7380_v32 = vpack.c.bf16 %v2064_v31, %v2063_v28 }
 0x884   :  { %s1511_s14 = ssub.f32 %s1509_s13, %s1510_s12 }
 0x886   :  { %s1514_s15 = sadd.f32 1e-05, %s1511_s14 }
 0x888   :  { %v1515_v48 = vstv %s1514_s15 }
 0x889   :  { %7785 = vrsqrt.f32 %v1515_v48  ;;  %v7386_v48 = vpack.c.bf16 %v2068_v45, %v2067_v44  ;;  %v1989_v45 = vld [vmem:[#allocation2 + $0x90] sm:$0xff] }
 0x893   :  { %v7786_v49 = vpop.eup %7785 }
 0x894   :  { %7672 = vpush %v7786_v49 }
 0x8c5   :  { %s7673_s16 = spop %7672 }
 0x8c6   :  { %v1518_v55 = vstv %s7673_s16 }
 0x8c7   :  { %v1519_v56 = vmul.f32 %v1518_v55, %v1513_v53  ;;  %v1644_v55 = vld [vmem:[#allocation2 + $0x150] sm:$0x1] }
 0x8c9   :  { %v1520_v57 = vmul.f32 %v1519_v56, %v1485_v54  ;;  %v1798_v56 = vld [vmem:[#allocation2 + $0x140] sm:$0x1] }
 0x8cb   :  { %v1521_v58 = vadd.f32 %v1520_v57, %v1486_v51  ;;  %v7588_v51 = vadd.f32 %v1798_v56, %v1644_v55  ;;  %v2152_v56 = vld [vmem:[#allocation2 + $0x40] sm:$0xff] }
 0x8cd   :  { %1523 = vrot.lane.b32.xlu0 %v1521_v58, %s7876_s17 }
 0x93f   :  { %v1524_v60 = vpop.permute.xlu0 %1523 }
 0x940   :  { %v1526_v4 = vsel %vm277_vm3, %v822_v63, %v1524_v60 }
 0x941   :  { %6816 = vmatpush3.msra.mxu0 %v1526_v4 }
 0x942   :  { %6818 = vmatmul.mubr.msk.f32.vlgmr.msra.gmra.mrb[12].mxu0 %vm1529_vm12, %v1527_v2  ;;  %6820 = vmatprep.subr.mxu0 %v7872_v0 }
 0x943   :  { %6821 = vmatpush3.msk.msra.mxu0 %vm122_vm1, %v1643_v5  ;;  %6822 = vmatprep.mubr.msk.f32.mxu0 %vm7873_vm0, %v7872_v0 }
 0x944   :  { %6825 = vmatprep.subr.mxu0 %v7872_v0 }
 0x946   :  { %6823 = vmatmul.mubr.msk.f32.vlgmr.msra.gmra.mrb[14].mxu0 %vm118_vm2, %v7927_v3 }
 0x947   :  { %6826 = vmatpush3.msk.msra.mxu0 %vm122_vm1, %v1718_v52  ;;  %6827 = vmatprep.mubr.msk.f32.mxu0 %vm7873_vm0, %v7872_v0  ;;  %v1605_v52 = vld [vmem:[#allocation2 + $0x178] sm:$0xff] }
 0x948   :  { %7358 = vmatprep.subr.bf16.mxu0 %v7874_v1 }
 0x94a   :  { %6828 = vmatmul.mubr.msk.f32.vlgmr.msra.gmra.mrb[16].mxu0 %vm118_vm2, %v7927_v3 }
 0x94b   :  { %6838 = vmatprep.mubr.msk.f32.mxu0 %vm7873_vm0, %v7872_v0  ;;  %7360 = vmatpush3.bf16.msra.mxu0 %v7359_v8  ;;  %v1606_v8 = vld [vmem:[#allocation2 + $0x170] sm:$0xff] }
 0x94c   :  { %7361 = vmatprep.subr.bf16.mxu0 %v7874_v1 }
 0x94f   :  { %7363 = vmatpush3.bf16.msra.mxu0 %v7362_v11 }
 0x950   :  { %7376 = vmatprep.subr.bf16.mxu0 %v7874_v1 }
 0xa15   :  { %v1599_v13 = vpop.f32.mrb[12].mxu0 }
 0xa16   :  { %v1600_v14 = vadd.f32 %v1599_v13, %v1528_v12  ;;  %v6819_v15 = vpop.f32.mrb[13].mxu0 }
 0xa17   :  { %v1911_v15 = vld [vmem:[#allocation2 + $0x8] sm:$0xff] }
 0xa18   :  { %v1603_v3 = vmax.f32 %v1600_v14, 0.0  ;;  %v1910_v14 = vld [vmem:[#allocation2] sm:$0xff] }
 0xa1a   :  { %v8087_v16 = vadd.f32 %v1603_v3, %v1526_v4 }
 0xa1c   :  { %v1608_v18 = vsel %vm1607_vm13, %v8087_v16, 0.0  ;;  %v1618_v20 = vmul.f32 %v8087_v16, %v8087_v16 }
 0xa1d   :  { %1609 = vadd.xlane.f32.xlu1 %v1608_v18  ;;  %v1789_v21 = vpop.f32.mrb[16].mxu0 }
 0xa1e   :  { %v1790_v22 = vadd.f32 %v1789_v21, %v1719_v17  ;;  %v6829_v23 = vpop.f32.mrb[17].mxu0  ;;  %v1619_v25 = vsel %vm1607_vm13, %v1618_v20, 0.0 }
 0xa1f   :  { %v1913_v23 = vld [vmem:[#allocation2 + $0x18] sm:$0xff] }
 0xa20   :  { %v1793_v24 = vmax.f32 %v1790_v22, 0.0  ;;  %v1912_v22 = vld [vmem:[#allocation2 + $0x10] sm:$0xff] }
 0xa21   :  { %1620 = vadd.xlane.f32.xlu1 %v1619_v25 }
 0xa22   :  { %6839 = vmatmul.mubr.msk.f32.vlgmr.msra.gmra.mrb[14].mxu0 %vm277_vm3, %v1793_v24  ;;  %v7368_v24 = vpack.c.bf16 %v1913_v23, %v1912_v22 }
 0xa23   :  { %6879 = vmatprep.mubr.msk.f32.mxu0 %vm7873_vm0, %v7872_v0  ;;  %7378 = vmatpush3.bf16.msra.mxu0 %v7377_v29 }
 0xa24   :  { %7379 = vmatprep.subr.bf16.mxu0 %v7874_v1 }
 0xa27   :  { %7381 = vmatpush3.bf16.msra.mxu0 %v7380_v32 }
 0xa28   :  { %7382 = vmatprep.subr.bf16.mxu0 %v7874_v1 }
 0xa2b   :  { %7384 = vmatpush3.bf16.msra.mxu0 %v7383_v41  ;;  %v1874_v41 = vld [vmem:[#allocation2 + $0x148] sm:$0x1] }
 0xa2c   :  { %7385 = vmatprep.subr.bf16.mxu0 %v7874_v1 }
 0xa2f   :  { %7387 = vmatpush3.bf16.msra.mxu0 %v7386_v48  ;;  %v2148_v48 = vld [vmem:[#allocation2 + $0x20] sm:$0xff] }
 0xa30   :  { %7400 = vmatprep.subr.bf16.mxu0 %v7874_v1 }
 0xaaa   :  { %v1610_v33 = vpop.xlane.xlu1 %1609 }
 0xaab   :  { %v1611_v34 = vrot.slane %v1610_v33, 4 }
 0xaad   :  { %v1612_v35 = vadd.f32 %v1611_v34, %v1610_v33 }
 0xaae   :  { %v1621_v36 = vpop.xlane.xlu1 %1620 }
 0xaaf   :  { %v1613_v39 = vrot.slane %v1612_v35, 2  ;;  %v1622_v40 = vrot.slane %v1621_v36, 4 }
 0xab1   :  { %v1623_v42 = vadd.f32 %v1622_v40, %v1621_v36  ;;  %v1614_v43 = vadd.f32 %v1613_v39, %v1612_v35  ;;  %v1873_v36 = vld [vmem:[#allocation2 + $0x158] sm:$0x1]  ;;  %v1987_v39 = vld [vmem:[#allocation2 + $0x80] sm:$0xff]  ;;  %v1988_v40 = vld [vmem:[#allocation2 + $0x88] sm:$0xff] }
 0xab3   :  { %v1624_v46 = vrot.slane %v1623_v42, 2  ;;  %v1615_v47 = vrot.slane %v1614_v43, 1 }
 0xab5   :  { %v1616_v49 = vadd.f32 %v1615_v47, %v1614_v43  ;;  %v1625_v50 = vadd.f32 %v1624_v46, %v1623_v42  ;;  %v7371_v43 = vpack.c.bf16 %v1988_v40, %v1987_v39  ;;  %v1990_v46 = vld [vmem:[#allocation2 + $0x98] sm:$0xff] }
 0xab6   :  { %v7374_v47 = vpack.c.bf16 %v1990_v46, %v1989_v45  ;;  %v2312_v46 = vld [vmem:[#allocation2 + $0x100] sm:$0xff] }
 0xab7   :  { %7674 = vpush %v1616_v49  ;;  %v1626_v53 = vrot.slane %v1625_v50, 1  ;;  %v2149_v49 = vld [vmem:[#allocation2 + $0x28] sm:$0xff] }
 0xab9   :  { %v1627_v54 = vadd.f32 %v1626_v53, %v1625_v50  ;;  %v7389_v50 = vpack.c.bf16 %v2149_v49, %v2148_v48  ;;  %v2150_v53 = vld [vmem:[#allocation2 + $0x30] sm:$0xff] }
 0xaba   :  { %v2313_v49 = vld [vmem:[#allocation2 + $0xf0] sm:$0xff] }
 0xabb   :  { %7676 = vpush %v1627_v54  ;;  %v2151_v54 = vld [vmem:[#allocation2 + $0x38] sm:$0xff] }
 0xabc   :  { %v7392_v55 = vpack.c.bf16 %v2151_v54, %v2150_v53  ;;  %v2349_v54 = vld [vmem:[#allocation2 + $0x2a0] sm:$0xff] }
 0xae8   :  { %s7675_s18 = spop %7674 }
 0xae9   :  { %s1629_s19 = smul.f32 0.001953125, %s7675_s18 }
 0xaeb   :  { %s1631_s20 = smul.f32 %s1629_s19, %s1629_s19  ;;  %v1633_v4 = vstv %s1629_s19 }
 0xaec   :  { %s7677_s21 = spop %7676  ;;  %v1634_v5 = vsub.f32 %v8087_v16, %v1633_v4  ;;  %v7365_v16 = vpack.c.bf16 %v1911_v15, %v1910_v14  ;;  %v2236_v4 = vld [vmem:[#allocation2 + $0x78] sm:$0xff] }
 0xaed   :  { %s1630_s22 = smul.f32 0.001953125, %s7677_s21 }
 0xaee   :  { %7366 = vmatpush3.bf16.msra.mxu1 %v7365_v16  ;;  %v2146_v16 = vld [vmem:[#allocation2 + $0xf8] sm:$0xff] }
 0xaef   :  { %s1632_s23 = ssub.f32 %s1630_s22, %s1631_s20  ;;  %7367 = vmatprep.subr.bf16.mxu1 %v7874_v1 }
 0xaf1   :  { %s1635_s24 = sadd.f32 1e-05, %s1632_s23 }
 0xaf2   :  { %7369 = vmatpush3.bf16.msra.mxu1 %v7368_v24 }
 0xaf3   :  { %v1636_v57 = vstv %s1635_s24  ;;  %7370 = vmatprep.subr.bf16.mxu1 %v7874_v1 }
 0xaf4   :  { %7787 = vrsqrt.f32 %v1636_v57 }
 0xaf5   :  { %v1868_v58 = vpop.f32.mrb[14].mxu0 }
 0xaf6   :  { %v7589_v59 = vadd.f32 %v7588_v51, %v1868_v58  ;;  %v6840_v61 = vpop.f32.mrb[15].mxu0  ;;  %v2153_v51 = vld [vmem:[#allocation2 + $0x48] sm:$0xff]  ;;  %v2154_v58 = vld [vmem:[#allocation2 + $0x50] sm:$0xff] }
 0xaf7   :  { %v7395_v57 = vpack.c.bf16 %v2153_v51, %v2152_v56  ;;  %v7819_v56 = vld [vmem:[%s8508_s2] sm:$0x1]  ;;  %v2463_v51 = vld [vmem:[#allocation2 + $0x270] sm:$0x7] }
 0xaf8   :  { %v1875_v62 = vsel %vm354_vm8, %v7589_v59, 0.0  ;;  %v1885_v63 = vmul.f32 %v7589_v59, %v7589_v59 }
 0xaf9   :  { %1876 = vadd.xlane.f32.xlu1 %v1875_v62  ;;  %v2233_v62 = vld [vmem:[#allocation2 + $0x60] sm:$0xff] }
 0xafa   :  { %v1886_v60 = vsel %vm354_vm8, %v1885_v63, 0.0  ;;  %v2234_v63 = vld [vmem:[#allocation2 + $0x68] sm:$0xff] }
 0xafd   :  { %1887 = vadd.xlane.f32.xlu1 %v1886_v60  ;;  %v7401_v60 = vpack.c.bf16 %v2234_v63, %v2233_v62  ;;  %v2617_v62 = vld [vmem:[#allocation2 + $0x268] sm:$0xff] }
 0xafe   :  { %v7788_v2 = vpop.eup %7787 }
 0xaff   :  { %7678 = vpush %v7788_v2  ;;  %v2235_v2 = vld [vmem:[#allocation2 + $0x70] sm:$0xff] }
 0xb30   :  { %s7679_s27 = spop %7678 }
 0xb31   :  { %v1639_v6 = vstv %s7679_s27 }
 0xb32   :  { %v1640_v7 = vmul.f32 %v1639_v6, %v1634_v5  ;;  %v7404_v5 = vpack.c.bf16 %v2236_v4, %v2235_v2 }
 0xb34   :  { %v1641_v9 = vmul.f32 %v1640_v7, %v1605_v52 }
 0xb36   :  { %v8104_v10 = vadd.f32 %v1641_v9, %v1606_v8 }
 0xb38   :  { %6880 = vmatmul.mubr.msk.f32.vlgmr.msra.gmra.mrb[18].mxu0 %vm1607_vm13, %v8104_v10 }
 0xb39   :  { %6909 = vmatprep.mubr.msk.f32.mxu0 %vm7873_vm0, %v7872_v0  ;;  %7402 = vmatpush3.bf16.msra.mxu0 %v7401_v60  ;;  %v2350_v60 = vld [vmem:[#allocation2 + $0x2a8] sm:$0xff] }
 0xb3a   :  { %7403 = vmatprep.subr.bf16.mxu0 %v7874_v1 }
 0xb3d   :  { %7405 = vmatpush3.bf16.msra.mxu0 %v7404_v5 }
 0xb3e   :  { %6917 = vmatprep.subr.mxu0 %v7872_v0 }
 0xb86   :  { %v1877_v11 = vpop.xlane.xlu1 %1876 }
 0xb87   :  { %v1878_v12 = vrot.slane %v1877_v11, 4 }
 0xb89   :  { %v1879_v13 = vadd.f32 %v1878_v12, %v1877_v11  ;;  %v2230_v11 = vld [vmem:[#allocation2 + $0xe0] sm:$0xff] }
 0xb8a   :  { %v1888_v3 = vpop.xlane.xlu1 %1887 }
 0xb8b   :  { %v1880_v17 = vrot.slane %v1879_v13, 2  ;;  %v1889_v18 = vrot.slane %v1888_v3, 4 }
 0xb8d   :  { %v1890_v20 = vadd.f32 %v1889_v18, %v1888_v3  ;;  %v1881_v21 = vadd.f32 %v1880_v17, %v1879_v13  ;;  %v2237_v18 = vld [vmem:[#allocation2 + $0xe8] sm:$0xff] }
 0xb8f   :  { %v1891_v25 = vrot.slane %v1890_v20, 2  ;;  %v1882_v26 = vrot.slane %v1881_v21, 1 }
 0xb91   :  { %v1883_v27 = vadd.f32 %v1882_v26, %v1881_v21  ;;  %v1892_v28 = vadd.f32 %v1891_v25, %v1890_v20 }
 0xb93   :  { %7680 = vpush %v1883_v27  ;;  %v1893_v29 = vrot.slane %v1892_v28, 1 }
 0xb95   :  { %v1894_v31 = vadd.f32 %v1893_v29, %v1892_v28 }
 0xb97   :  { %7682 = vpush %v1894_v31 }
 0xbc4   :  { %s7681_s28 = spop %7680 }
 0xbc5   :  { %s1896_s29 = smul.f32 0.03125, %s7681_s28 }
 0xbc7   :  { %s1898_s3 = smul.f32 %s1896_s29, %s1896_s29  ;;  %v1900_v34 = vstv %s1896_s29 }
 0xbc8   :  { %s7683_s30 = spop %7682  ;;  %v1901_v35 = vsub.f32 %v7589_v59, %v1900_v34  ;;  %v2155_v59 = vld [vmem:[#allocation2 + $0x58] sm:$0xff] }
 0xbc9   :  { %s1897_s5 = smul.f32 0.03125, %s7683_s30  ;;  %v7398_v61 = vpack.c.bf16 %v2155_v59, %v2154_v58  ;;  %v2615_v58 = vld [vmem:[#allocation2 + $0x258] sm:$0xff] }
 0xbcb   :  { %s1899_s6 = ssub.f32 %s1897_s5, %s1898_s3 }
 0xbcd   :  { %s1902_s7 = sadd.f32 1e-05, %s1899_s6 }
 0xbcf   :  { %v1903_v32 = vstv %s1902_s7 }
 0xbd0   :  { %7789 = vrsqrt.f32 %v1903_v32 }
 0xbda   :  { %v7790_v33 = vpop.eup %7789 }
 0xbdb   :  { %7684 = vpush %v7790_v33 }
 0xc0c   :  { %s7685_s8 = spop %7684 }
 0xc0d   :  { %v1906_v37 = vstv %s7685_s8 }
 0xc0e   :  { %v1907_v38 = vmul.f32 %v1906_v37, %v1901_v35 }
 0xc10   :  { %v1908_v42 = vmul.f32 %v1907_v38, %v1873_v36 }
 0xc12   :  { %v1909_v44 = vadd.f32 %v1908_v42, %v1874_v41 }
 0xc14   :  { %6850 = vmatmul.mubr.msk.f32.vlgmr.msra.gmra.mrb[14].mxu1 %vm277_vm3, %v1909_v44 }
 0xc15   :  { %7372 = vmatpush3.bf16.msra.mxu1 %v7371_v43  ;;  %6860 = vmatprep.mubr.msk.f32.mxu1 %vm7873_vm0, %v7872_v0 }
 0xc16   :  { %7373 = vmatprep.subr.bf16.mxu1 %v7874_v1 }
 0xc19   :  { %7375 = vmatpush3.bf16.msra.mxu1 %v7374_v47 }
 0xc1a   :  { %7388 = vmatprep.subr.bf16.mxu1 %v7874_v1 }
 0xc1c   :  { %6861 = vmatmul.mubr.msk.f32.vlgmr.msra.gmra.mrb[16].mxu1 %vm277_vm3, %v1909_v44 }
 0xc1d   :  { %7390 = vmatpush3.bf16.msra.mxu1 %v7389_v50  ;;  %6898 = vmatprep.mubr.msk.f32.mxu1 %vm7873_vm0, %v7872_v0 }
 0xc1e   :  { %7391 = vmatprep.subr.bf16.mxu1 %v7874_v1 }
 0xc21   :  { %7393 = vmatpush3.bf16.msra.mxu1 %v7392_v55  ;;  %v2538_v55 = vld [vmem:[#allocation2 + $0x248] sm:$0x7] }
 0xc22   :  { %7394 = vmatprep.subr.bf16.mxu1 %v7874_v1 }
 0xc25   :  { %7396 = vmatpush3.bf16.msra.mxu1 %v7395_v57  ;;  %v2614_v57 = vld [vmem:[#allocation2 + $0x250] sm:$0xff] }
 0xc26   :  { %7397 = vmatprep.subr.bf16.mxu1 %v7874_v1  ;;  %v7407_v59 = vpack.c.bf16 %v2615_v58, %v2614_v57  ;;  %v2733_v57 = vld [vmem:[#allocation2 + $0x198] sm:$0xff]  ;;  %v2809_v58 = vld [vmem:[#allocation2 + $0x1f0] sm:$0xff] }
 0xc29   :  { %7399 = vmatpush3.bf16.msra.mxu1 %v7398_v61  ;;  %v2616_v61 = vld [vmem:[#allocation2 + $0x260] sm:$0xff] }
 0xc2a   :  { %6912 = vmatprep.subr.mxu1 %v7872_v0  ;;  %v7410_v63 = vpack.c.bf16 %v2617_v62, %v2616_v61 }
 0xc2c   :  { %6899 = vmatmul.mubr.msk.f32.vlgmr.msra.gmra.mrb[18].mxu1 %vm1607_vm13, %v8104_v10 }
 0xc2d   :  { %6914 = vmatprep.mubr.msk.f32.mxu1 %vm7873_vm0, %v7872_v0 }
 0xce7   :  { %v1983_v52 = vpop.f32.mrb[14].mxu1 }
 0xce8   :  { %v6851_v6 = vpop.f32.mrb[15].mxu1  ;;  %v2159_v9 = vrot.slane %v1983_v52, %v8001_v30  ;;  %v2539_v52 = vld [vmem:[#allocation2 + $0x278] sm:$0x1] }
 0xcef   :  { %v2057_v7 = vpop.f32.mrb[16].mxu1 }
 0xcf0   :  { %v6862_v8 = vpop.f32.mrb[17].mxu1  ;;  %v2072_v3 = vrot.slane %v2057_v7, %v8001_v30 }
 0xcf2   :  { %v7590_v17 = vadd.f32 %v2146_v16, %v2072_v3 }
 0xcf4   :  { %v7591_v20 = vadd.f32 %v7590_v17, %v2237_v18 }
 0xcff   :  { %v2226_v10 = vpop.f32.mrb[18].mxu1 }
 0xd00   :  { %v2227_v12 = vadd.f32 %v2226_v10, %v2159_v9  ;;  %v6900_v13 = vpop.f32.mrb[19].mxu1 }
 0xd02   :  { %v2231_v14 = vadd.f32 %v2230_v11, %v2227_v12 }
 0xd04   :  { %v2232_v15 = vmax.f32 %v2231_v14, 0.0 }
 0xd06   :  { %6910 = vmatmul.mubr.msk.f32.vlgmr.msra.gmra.mrb[18].mxu0 %vm277_vm3, %v2232_v15 }
 0xd07   :  { %6919 = vmatprep.mubr.msk.f32.mxu0 %vm7873_vm0, %v7872_v0  ;;  %6918 = vmatpush3.msk.msra.mxu0 %vm122_vm1, %v2463_v51  ;;  %v2732_v51 = vld [vmem:[#allocation2 + $0x190] sm:$0xff] }
 0xd08   :  { %7406 = vmatprep.subr.bf16.mxu0 %v7874_v1  ;;  %v7416_v62 = vpack.c.bf16 %v2733_v57, %v2732_v51 }
 0xd0a   :  { %6920 = vmatmul.mubr.msk.f32.vlgmr.msra.gmra.mrb[20].mxu0 %vm118_vm2, %v7819_v56 }
 0xd0b   :  { %7408 = vmatpush3.bf16.msra.mxu0 %v7407_v59  ;;  %6935 = vmatprep.mubr.msk.f32.mxu0 %vm7873_vm0, %v7872_v0 }
 0xd0c   :  { %7409 = vmatprep.subr.bf16.mxu0 %v7874_v1 }
 0xd0f   :  { %7411 = vmatpush3.bf16.msra.mxu0 %v7410_v63  ;;  %v2810_v63 = vld [vmem:[#allocation2 + $0x1f8] sm:$0xff] }
 0xd10   :  { %7418 = vmatprep.subr.bf16.mxu0 %v7874_v1 }
 0xdd9   :  { %v2307_v21 = vpop.f32.mrb[18].mxu0 }
 0xdda   :  { %v7592_v22 = vadd.f32 %v7591_v20, %v2307_v21  ;;  %v6911_v23 = vpop.f32.mrb[19].mxu0 }
 0xddc   :  { %v2314_v24 = vsel %vm277_vm3, %v7592_v22, 0.0  ;;  %v2324_v25 = vmul.f32 %v7592_v22, %v7592_v22 }
 0xddd   :  { %2315 = vadd.xlane.f32.xlu1 %v2314_v24 }
 0xdde   :  { %v2325_v26 = vsel %vm277_vm3, %v2324_v25, 0.0 }
 0xde1   :  { %2326 = vadd.xlane.f32.xlu1 %v2325_v26 }
 0xe6a   :  { %v2316_v27 = vpop.xlane.xlu1 %2315 }
 0xe6b   :  { %v2317_v28 = vrot.slane %v2316_v27, 4 }
 0xe6d   :  { %v2318_v29 = vadd.f32 %v2317_v28, %v2316_v27 }
 0xe6e   :  { %v2327_v31 = vpop.xlane.xlu1 %2326 }
 0xe6f   :  { %v2319_v32 = vrot.slane %v2318_v29, 2  ;;  %v2328_v33 = vrot.slane %v2327_v31, 4 }
 0xe71   :  { %v2329_v34 = vadd.f32 %v2328_v33, %v2327_v31  ;;  %v2320_v35 = vadd.f32 %v2319_v32, %v2318_v29  ;;  %v2464_v29 = vld [vmem:[#allocation2 + $0x290] sm:$0x1]  ;;  %v2618_v31 = vld [vmem:[#allocation2 + $0x280] sm:$0x1] }
 0xe72   :  { %v7593_v32 = vadd.f32 %v2618_v31, %v2464_v29  ;;  %v2966_v29 = vld [vmem:[#allocation2 + $0x1b0] sm:$0xff]  ;;  %v2967_v31 = vld [vmem:[#allocation2 + $0x1b8] sm:$0xff] }
 0xe73   :  { %v2330_v36 = vrot.slane %v2329_v34, 2  ;;  %v2321_v37 = vrot.slane %v2320_v35, 1 }
 0xe75   :  { %v2322_v38 = vadd.f32 %v2321_v37, %v2320_v35  ;;  %v2331_v39 = vadd.f32 %v2330_v36, %v2329_v34 }
 0xe77   :  { %7686 = vpush %v2322_v38  ;;  %v2332_v40 = vrot.slane %v2331_v39, 1 }
 0xe79   :  { %v2333_v41 = vadd.f32 %v2332_v40, %v2331_v39 }
 0xe7b   :  { %7688 = vpush %v2333_v41 }
 0xea8   :  { %s7687_s9 = spop %7686 }
 0xea9   :  { %s2335_s10 = smul.f32 0.00390625, %s7687_s9 }
 0xeab   :  { %s2337_s11 = smul.f32 %s2335_s10, %s2335_s10  ;;  %v2339_v44 = vstv %s2335_s10 }
 0xeac   :  { %s7689_s12 = spop %7688  ;;  %v2340_v45 = vsub.f32 %v7592_v22, %v2339_v44 }
 0xead   :  { %s2336_s13 = smul.f32 0.00390625, %s7689_s12 }
 0xeaf   :  { %s2338_s14 = ssub.f32 %s2336_s13, %s2337_s11 }
 0xeb1   :  { %s2341_s15 = sadd.f32 1e-05, %s2338_s14 }
 0xeb3   :  { %v2342_v42 = vstv %s2341_s15 }
 0xeb4   :  { %7791 = vrsqrt.f32 %v2342_v42 }
 0xebe   :  { %v7792_v43 = vpop.eup %7791 }
 0xebf   :  { %7690 = vpush %v7792_v43 }
 0xef0   :  { %s7691_s16 = spop %7690 }
 0xef1   :  { %v2345_v47 = vstv %s7691_s16 }
 0xef2   :  { %v2346_v48 = vmul.f32 %v2345_v47, %v2340_v45  ;;  %v2730_v45 = vld [vmem:[#allocation2 + $0x180] sm:$0xff] }
 0xef3   :  { %v2807_v47 = vld [vmem:[#allocation2 + $0x1e0] sm:$0xff] }
 0xef4   :  { %v2347_v50 = vmul.f32 %v2346_v48, %v2312_v46  ;;  %v2731_v46 = vld [vmem:[#allocation2 + $0x188] sm:$0xff] }
 0xef6   :  { %v2348_v53 = vadd.f32 %v2347_v50, %v2313_v49  ;;  %v7413_v50 = vpack.c.bf16 %v2731_v46, %v2730_v45  ;;  %v3047_v45 = vld [vmem:[#allocation2 + $0x1d0] sm:$0xff]  ;;  %v3048_v46 = vld [vmem:[#allocation2 + $0x1d8] sm:$0xff] }
 0xef8   :  { %6913 = vmatpush3.msra.mxu1 %v2348_v53 }
 0xef9   :  { %6915 = vmatmul.mubr.msk.f32.vlgmr.msra.gmra.mrb[20].mxu1 %vm1529_vm12, %v2349_v54  ;;  %6922 = vmatprep.subr.mxu1 %v7872_v0 }
 0xefa   :  { %6923 = vmatpush3.msk.msra.mxu1 %vm122_vm1, %v2538_v55  ;;  %6924 = vmatprep.mubr.msk.f32.mxu1 %vm7873_vm0, %v7872_v0 }
 0xefb   :  { %7412 = vmatprep.subr.bf16.mxu1 %v7874_v1 }
 0xefd   :  { %6925 = vmatmul.mubr.msk.f32.vlgmr.msra.gmra.mrb[22].mxu1 %vm118_vm2, %v7819_v56 }
 0xefe   :  { %6946 = vmatprep.mubr.msk.f32.mxu1 %vm7873_vm0, %v7872_v0  ;;  %7414 = vmatpush3.bf16.msra.mxu1 %v7413_v50 }
 0xeff   :  { %7415 = vmatprep.subr.bf16.mxu1 %v7874_v1 }
 0xf02   :  { %7417 = vmatpush3.bf16.msra.mxu1 %v7416_v62  ;;  %v3247_v62 = vld [vmem:[#allocation2 + $0x470] sm:$0x7] }
 0xf03   :  { %7424 = vmatprep.subr.bf16.mxu1 %v7874_v1 }
 0xfcc   :  { %v2420_v2 = vpop.f32.mrb[20].mxu1 }
 0xfcd   :  { %v2421_v4 = vadd.f32 %v2420_v2, %v2350_v60  ;;  %v6916_v5 = vpop.f32.mrb[21].mxu1  ;;  %v7422_v60 = vpack.c.bf16 %v2810_v63, %v2809_v58  ;;  %v3401_v63 = vld [vmem:[#allocation2 + $0x450] sm:$0xff] }
 0xfcf   :  { %v2424_v6 = vmax.f32 %v2421_v4, 0.0 }
 0xfd0   :  { %v2609_v7 = vpop.f32.mrb[22].mxu1 }
 0xfd1   :  { %v8156_v8 = vadd.f32 %v2424_v6, %v2348_v53  ;;  %v2610_v9 = vadd.f32 %v2609_v7, %v2539_v52  ;;  %v6926_v10 = vpop.f32.mrb[23].mxu1  ;;  %v2808_v53 = vld [vmem:[#allocation2 + $0x1e8] sm:$0xff] }
 0xfd2   :  { %v7419_v54 = vpack.c.bf16 %v2808_v53, %v2807_v47  ;;  %v7440_v47 = vpack.c.bf16 %v3048_v46, %v3047_v45 }
 0xfd3   :  { %v2613_v11 = vmax.f32 %v2610_v9, 0.0  ;;  %v2428_v12 = vsel %vm277_vm3, %v8156_v8, 0.0  ;;  %v2438_v13 = vmul.f32 %v8156_v8, %v8156_v8 }
 0xfd4   :  { %2429 = vadd.xlane.f32.xlu0 %v2428_v12  ;;  %v2693_v12 = vld [vmem:[#allocation2 + $0x298] sm:$0x1] }
 0xfd5   :  { %6936 = vmatmul.mubr.msk.f32.vlgmr.msra.gmra.mrb[20].mxu0 %vm277_vm3, %v2613_v11  ;;  %v2439_v14 = vsel %vm277_vm3, %v2438_v13, 0.0 }
 0xfd6   :  { %2440 = vadd.xlane.f32.xlu1 %v2439_v14  ;;  %6957 = vmatprep.mubr.msk.f32.mxu0 %vm7873_vm0, %v7872_v0  ;;  %v2881_v14 = vld [vmem:[#allocation2 + $0x200] sm:$0xff] }
 0xfd7   :  { %7420 = vmatpush3.bf16.msra.mxu0 %v7419_v54 }
 0xfd8   :  { %7421 = vmatprep.subr.bf16.mxu0 %v7874_v1 }
 0xfdb   :  { %7423 = vmatpush3.bf16.msra.mxu0 %v7422_v60  ;;  %v3402_v60 = vld [vmem:[#allocation2 + $0x458] sm:$0xff] }
 0xfdc   :  { %7430 = vmatprep.subr.bf16.mxu0 %v7874_v1 }
0x1061   :  { %v2430_v15 = vpop.xlane.xlu0 %2429 }
0x1062   :  { %v2431_v3 = vrot.slane %v2430_v15, 4 }
0x1063   :  { %v2441_v16 = vpop.xlane.xlu1 %2440 }
0x1064   :  { %v2432_v17 = vadd.f32 %v2431_v3, %v2430_v15  ;;  %v2442_v18 = vrot.slane %v2441_v16, 4  ;;  %v2882_v3 = vld [vmem:[#allocation2 + $0x208] sm:$0xff] }
0x1066   :  { %v2433_v20 = vrot.slane %v2432_v17, 2  ;;  %v2443_v21 = vadd.f32 %v2442_v18, %v2441_v16  ;;  %v2964_v16 = vld [vmem:[#allocation2 + $0x1a0] sm:$0xff] }
0x1068   :  { %v2444_v22 = vrot.slane %v2443_v21, 2  ;;  %v2434_v23 = vadd.f32 %v2433_v20, %v2432_v17  ;;  %v2965_v17 = vld [vmem:[#allocation2 + $0x1a8] sm:$0xff] }
0x1069   :  { %v2694_v20 = vld [vmem:[#allocation2 + $0x288] sm:$0x1] }
0x106a   :  { %v2435_v24 = vrot.slane %v2434_v23, 1  ;;  %v2445_v25 = vadd.f32 %v2444_v22, %v2443_v21 }
0x106c   :  { %v2436_v26 = vadd.f32 %v2435_v24, %v2434_v23  ;;  %v2446_v27 = vrot.slane %v2445_v25, 1  ;;  %v7425_v23 = vpack.c.bf16 %v2882_v3, %v2881_v14  ;;  %v7431_v24 = vpack.c.bf16 %v2965_v17, %v2964_v16  ;;  %v2962_v14 = vld [vmem:[#allocation2 + $0x238] sm:$0xff]  ;;  %v3049_v3 = vld [vmem:[#allocation2 + $0x228] sm:$0xff] }
0x106e   :  { %7692 = vpush %v2436_v26  ;;  %v2447_v28 = vadd.f32 %v2446_v27, %v2445_v25  ;;  %v2883_v25 = vld [vmem:[#allocation2 + $0x210] sm:$0xff] }
0x1070   :  { %7694 = vpush %v2447_v28  ;;  %v2884_v28 = vld [vmem:[#allocation2 + $0x218] sm:$0xff] }
0x109f   :  { %s7693_s20 = spop %7692 }
0x10a0   :  { %s8166_s21 = smul.f32 0.00390625, %s7693_s20 }
0x10a1   :  { %s7695_s22 = spop %7694 }
0x10a2   :  { %s2451_s23 = smul.f32 %s8166_s21, %s8166_s21  ;;  %v2453_v11 = vstv %s8166_s21 }
0x10a3   :  { %s2450_s24 = smul.f32 0.00390625, %s7695_s22  ;;  %v2454_v21 = vsub.f32 %v8156_v8, %v2453_v11  ;;  %v6351_v8 = vld [vmem:[%s8506_s0 + $0x10] sm:$0xff] }
0x10a5   :  { %s2452_s27 = ssub.f32 %s2450_s24, %s2451_s23 }
0x10a7   :  { %s2455_s28 = sadd.f32 1e-05, %s2452_s27 }
0x10a8   :  { %v2688_v33 = vpop.f32.mrb[20].mxu0 }
0x10a9   :  { %v2456_v34 = vstv %s2455_s28  ;;  %v7594_v35 = vadd.f32 %v7593_v32, %v2688_v33  ;;  %v6937_v36 = vpop.f32.mrb[21].mxu0  ;;  %v2426_v32 = vld [vmem:[#allocation2 + $0x2b8] sm:$0xff]  ;;  %v7428_v33 = vpack.c.bf16 %v2884_v28, %v2883_v25 }
0x10aa   :  { %7793 = vrsqrt.f32 %v2456_v34  ;;  %v7434_v34 = vpack.c.bf16 %v2967_v31, %v2966_v29  ;;  %v6352_v36 = vld [vmem:[%s8506_s0 + $0x18] sm:$0xf] }
0x10ab   :  { %v2695_v37 = vsel %vm354_vm8, %v7594_v35, 0.0  ;;  %v2705_v38 = vmul.f32 %v7594_v35, %v7594_v35 }
0x10ac   :  { %2696 = vadd.xlane.f32.xlu1 %v2695_v37  ;;  %v2427_v37 = vld [vmem:[#allocation2 + $0x2b0] sm:$0xff] }
0x10ad   :  { %v2706_v39 = vsel %vm354_vm8, %v2705_v38, 0.0  ;;  %v7443_v38 = vpack.c.bf16 %v6352_v36, %v6351_v8 }
0x10b0   :  { %2707 = vadd.xlane.f32.xlu1 %v2706_v39 }
0x10b4   :  { %v7794_v40 = vpop.eup %7793 }
0x10b5   :  { %7696 = vpush %v7794_v40  ;;  %v3169_v40 = vld [vmem:[#allocation2 + $0x4a0] sm:$0xff] }
0x10e6   :  { %s7697_s29 = spop %7696 }
0x10e7   :  { %v2459_v18 = vstv %s7697_s29 }
0x10e8   :  { %v2460_v26 = vmul.f32 %v2459_v18, %v2454_v21 }
0x1139   :  { %v2697_v41 = vpop.xlane.xlu1 %2696 }
0x113a   :  { %v2698_v42 = vrot.slane %v2697_v41, 4 }
0x113c   :  { %v2699_v43 = vadd.f32 %v2698_v42, %v2697_v41  ;;  %v3325_v41 = vld [vmem:[#allocation2 + $0x448] sm:$0x7]  ;;  %v3045_v42 = vld [vmem:[#allocation2 + $0x1c0] sm:$0xff] }
0x113d   :  { %v2708_v44 = vpop.xlane.xlu1 %2707 }
0x113e   :  { %v2700_v48 = vrot.slane %v2699_v43, 2  ;;  %v2709_v49 = vrot.slane %v2708_v44, 4 }
0x1140   :  { %v2710_v55 = vadd.f32 %v2709_v49, %v2708_v44  ;;  %v2701_v56 = vadd.f32 %v2700_v48, %v2699_v43  ;;  %v3046_v43 = vld [vmem:[#allocation2 + $0x1c8] sm:$0xff] }
0x1141   :  { %v7437_v44 = vpack.c.bf16 %v3046_v43, %v3045_v42 }
0x1142   :  { %v2711_v59 = vrot.slane %v2710_v55, 2  ;;  %v2702_v61 = vrot.slane %v2701_v56, 1 }
0x1144   :  { %v2703_v2 = vadd.f32 %v2702_v61, %v2701_v56  ;;  %v2712_v4 = vadd.f32 %v2711_v59, %v2710_v55  ;;  %v3042_v56 = vld [vmem:[#allocation2 + $0x220] sm:$0xff] }
0x1146   :  { %7698 = vpush %v2703_v2  ;;  %v2713_v5 = vrot.slane %v2712_v4, 1 }
0x1148   :  { %v2714_v52 = vadd.f32 %v2713_v5, %v2712_v4  ;;  %v7447_v4 = vpack.c.bf16 %v3402_v60, %v3401_v63  ;;  %v3326_v5 = vld [vmem:[#allocation2 + $0x478] sm:$0x1] }
0x114a   :  { %7700 = vpush %v2714_v52 }
0x1177   :  { %s7699_s3 = spop %7698 }
0x1178   :  { %s2716_s30 = smul.f32 0.03125, %s7699_s3 }
0x117a   :  { %s2718_s5 = smul.f32 %s2716_s30, %s2716_s30  ;;  %v2720_v9 = vstv %s2716_s30 }
0x117b   :  { %s7701_s6 = spop %7700  ;;  %v2721_v10 = vsub.f32 %v7594_v35, %v2720_v9  ;;  %v2461_v35 = vmul.f32 %v2460_v26, %v2426_v32 }
0x117c   :  { %s2717_s7 = smul.f32 0.03125, %s7701_s6 }
0x117d   :  { %v2462_v39 = vadd.f32 %v2461_v35, %v2427_v37 }
0x117e   :  { %s2719_s8 = ssub.f32 %s2717_s7, %s2718_s5 }
0x1180   :  { %s2722_s9 = sadd.f32 1e-05, %s2719_s8 }
0x1182   :  { %v2723_v6 = vstv %s2722_s9 }
0x1183   :  { %7795 = vrsqrt.f32 %v2723_v6  ;;  %v3403_v6 = vld [vmem:[#allocation2 + $0x460] sm:$0xff] }
0x118d   :  { %v7796_v7 = vpop.eup %7795 }
0x118e   :  { %7702 = vpush %v7796_v7  ;;  %v3404_v7 = vld [vmem:[#allocation2 + $0x468] sm:$0xff] }
0x118f   :  { %v7450_v11 = vpack.c.bf16 %v3404_v7, %v3403_v6  ;;  %v3520_v6 = vld [vmem:[#allocation2 + $0x3c8] sm:$0xff] }
0x1190   :  { %v3596_v7 = vld [vmem:[#allocation2 + $0x408] sm:$0xff] }
0x11bf   :  { %s7703_s10 = spop %7702 }
0x11c0   :  { %v2726_v13 = vstv %s7703_s10 }
0x11c1   :  { %v2727_v15 = vmul.f32 %v2726_v13, %v2721_v10 }
0x11c3   :  { %v2728_v22 = vmul.f32 %v2727_v15, %v2693_v12 }
0x11c5   :  { %v2729_v27 = vadd.f32 %v2728_v22, %v2694_v20 }
0x11c7   :  { %6947 = vmatmul.mubr.msk.f32.vlgmr.msra.gmra.mrb[24].mxu1 %vm277_vm3, %v2729_v27  ;;  %6958 = vmatmul.mubr.msk.f32.vlgmr.msra.gmra.mrb[22].mxu0 %vm277_vm3, %v2729_v27 }
0x11c8   :  { %7426 = vmatpush3.bf16.msra.mxu1 %v7425_v23  ;;  %7432 = vmatpush3.bf16.msra.mxu0 %v7431_v24  ;;  %v3248_v23 = vld [vmem:[#allocation2 + $0x490] sm:$0x1]  ;;  %v3405_v24 = vld [vmem:[#allocation2 + $0x480] sm:$0x1] }
0x11c9   :  { %7427 = vmatprep.subr.bf16.mxu1 %v7874_v1  ;;  %7433 = vmatprep.subr.bf16.mxu0 %v7874_v1  ;;  %v7598_v26 = vadd.f32 %v3405_v24, %v3248_v23 }
0x11ca   :  { %6968 = vmatprep.mubr.msk.f32.mxu1 %vm7873_vm0, %v7872_v0  ;;  %6979 = vmatprep.mubr.msk.f32.mxu0 %vm7873_vm0, %v7872_v0 }
0x11cc   :  { %7429 = vmatpush3.bf16.msra.mxu1 %v7428_v33  ;;  %7435 = vmatpush3.bf16.msra.mxu0 %v7434_v34 }
0x11cd   :  { %7442 = vmatprep.subr.bf16.mxu0 %v7874_v1  ;;  %7436 = vmatprep.subr.bf16.mxu1 %v7874_v1 }
0x11cf   :  { %6969 = vmatmul.mubr.msk.f32.vlgmr.msra.gmra.mrb[26].mxu1 %vm277_vm3, %v2462_v39  ;;  %6980 = vmatmul.mubr.msk.f32.vlgmr.msra.gmra.mrb[24].mxu0 %vm277_vm3, %v2462_v39 }
0x11d0   :  { %7445 = vmatpush3.bf16.msk.msra.mxu0 %vm7953_vm6, %v7443_v38  ;;  %6997 = vmatprep.mubr.msk.f32.mxu0 %vm7873_vm0, %v7872_v0 }
0x11d1   :  { %7005 = vmatprep.subr.mxu0 %v7872_v0  ;;  %6990 = vmatprep.mubr.msk.f32.mxu1 %vm7873_vm0, %v7872_v0 }
0x11d2   :  { %7438 = vmatpush3.bf16.msra.mxu1 %v7437_v44 }
0x11d3   :  { %6998 = vmatmul.mubr.msk.f32.vlgmr.msra.gmra.mrb[26].mxu0 %vm38_vm7, %v3169_v40  ;;  %7439 = vmatprep.subr.bf16.mxu1 %v7874_v1 }
0x11d4   :  { %7006 = vmatpush3.msk.msra.mxu0 %vm122_vm1, %v3325_v41  ;;  %7007 = vmatprep.mubr.msk.f32.mxu0 %vm7873_vm0, %v7872_v0 }
0x11d5   :  { %7452 = vmatprep.subr.bf16.mxu0 %v7874_v1 }
0x11d6   :  { %7441 = vmatpush3.bf16.msra.mxu1 %v7440_v47 }
0x11d7   :  { %7008 = vmatmul.mubr.msk.f32.vlgmr.msra.gmra.mrb[28].mxu0 %vm118_vm2, %v8210_v19  ;;  %7000 = vmatprep.subr.mxu1 %v7872_v0 }
0x11d8   :  { %7029 = vmatprep.mubr.msk.f32.mxu0 %vm7873_vm0, %v7872_v0 }
0x129a   :  { %v2803_v48 = vpop.f32.mrb[24].mxu1  ;;  %v2877_v49 = vpop.f32.mrb[22].mxu0 }
0x129b   :  { %v6948_v50 = vpop.f32.mrb[25].mxu1  ;;  %v6959_v53 = vpop.f32.mrb[23].mxu0  ;;  %v2971_v54 = vrot.slane %v2803_v48, %v8001_v30  ;;  %v2888_v13 = vrot.slane %v2877_v49, %v8001_v30 }
0x129d   :  { %v7595_v15 = vadd.f32 %v2962_v14, %v2888_v13 }
0x129f   :  { %v7596_v16 = vadd.f32 %v7595_v15, %v3049_v3 }
0x12a2   :  { %v3038_v55 = vpop.f32.mrb[24].mxu0 }
0x12a3   :  { %v3039_v51 = vadd.f32 %v3038_v55, %v2971_v54  ;;  %v6981_v57 = vpop.f32.mrb[25].mxu0 }
0x12a5   :  { %v3043_v58 = vadd.f32 %v3042_v56, %v3039_v51 }
0x12a6   :  { %v8220_v59 = vpop.f32.mrb[26].mxu0 }
0x12a7   :  { %v3044_v61 = vmax.f32 %v3043_v58, 0.0  ;;  %v6999_v2 = vpop.f32.mrb[27].mxu0  ;;  %v3517_v58 = vld [vmem:[#allocation2 + $0x3b0] sm:$0xff] }
0x12a8   :  { %v3595_v2 = vld [vmem:[#allocation2 + $0x400] sm:$0xff] }
0x12a9   :  { %6991 = vmatmul.mubr.msk.f32.vlgmr.msra.gmra.mrb[26].mxu1 %vm277_vm3, %v3044_v61  ;;  %v3518_v61 = vld [vmem:[#allocation2 + $0x3b8] sm:$0xff] }
0x12aa   :  { %7001 = vmatpush3.msk.msra.mxu1 %vm122_vm1, %v3247_v62  ;;  %7002 = vmatprep.mubr.msk.f32.mxu1 %vm7873_vm0, %v7872_v0  ;;  %v3396_v52 = vpop.f32.mrb[28].mxu0  ;;  %v3594_v62 = vld [vmem:[#allocation2 + $0x3f8] sm:$0xff]  ;;  %v7453_v60 = vpack.c.bf16 %v3518_v61, %v3517_v58  ;;  %v3829_v61 = vld [vmem:[#allocation2 + $0x420] sm:$0xff] }
0x12ab   :  { %7446 = vmatprep.subr.bf16.mxu1 %v7874_v1  ;;  %v7009_v9 = vpop.f32.mrb[29].mxu0  ;;  %v3397_v10 = vadd.f32 %v3396_v52, %v3326_v5  ;;  %v3519_v52 = vld [vmem:[#allocation2 + $0x3c0] sm:$0xff] }
0x12ac   :  { %7454 = vmatpush3.bf16.msra.mxu0 %v7453_v60 }
0x12ad   :  { %7003 = vmatmul.mubr.msk.f32.vlgmr.msra.gmra.mrb[28].mxu1 %vm118_vm2, %v8210_v19  ;;  %v3400_v12 = vmax.f32 %v3397_v10, 0.0  ;;  %7455 = vmatprep.subr.bf16.mxu0 %v7874_v1  ;;  %v7456_v10 = vpack.c.bf16 %v3520_v6, %v3519_v52 }
0x12ae   :  { %7448 = vmatpush3.bf16.msra.mxu1 %v7447_v4  ;;  %7018 = vmatprep.mubr.msk.f32.mxu1 %vm7873_vm0, %v7872_v0  ;;  %v7459_v4 = vpack.c.bf16 %v3595_v2, %v3594_v62 }
0x12af   :  { %7449 = vmatprep.subr.bf16.mxu1 %v7874_v1 }
0x12b0   :  { %7457 = vmatpush3.bf16.msra.mxu0 %v7456_v10  ;;  %v3949_v10 = vld [vmem:[#allocation2 + $0x3a0] sm:$0x1] }
0x12b1   :  { %7043 = vmatprep.subr.mxu0 %v7872_v0 }
0x12b2   :  { %7451 = vmatpush3.bf16.msra.mxu1 %v7450_v11  ;;  %v3597_v11 = vld [vmem:[#allocation2 + $0x410] sm:$0xff] }
0x12b3   :  { %7458 = vmatprep.subr.bf16.mxu1 %v7874_v1 }
0x12b5   :  { %7019 = vmatmul.mubr.msk.f32.vlgmr.msra.gmra.mrb[28].mxu1 %vm277_vm3, %v3400_v12  ;;  %v7462_v12 = vpack.c.bf16 %v3597_v11, %v3596_v7  ;;  %v4103_v11 = vld [vmem:[#allocation2 + $0x390] sm:$0x1] }
0x12b6   :  { %7040 = vmatprep.mubr.msk.f32.mxu1 %vm7873_vm0, %v7872_v0  ;;  %7460 = vmatpush3.bf16.msra.mxu1 %v7459_v4 }
0x12b7   :  { %7461 = vmatprep.subr.bf16.mxu1 %v7874_v1 }
0x12ba   :  { %7463 = vmatpush3.bf16.msra.mxu1 %v7462_v12 }
0x12bb   :  { %7064 = vmatprep.subr.mxu1 %v7872_v0 }
0x137c   :  { %v3119_v17 = vpop.f32.mrb[26].mxu1 }
0x137d   :  { %v8237_v18 = vadd.f32 %v7596_v16, %v3119_v17  ;;  %v6992_v20 = vpop.f32.mrb[27].mxu1  ;;  %v3124_v17 = vld [vmem:[#allocation2 + $0x240] sm:$0xff] }
0x137f   :  { %v3126_v21 = vsel %vm277_vm3, %v8237_v18, 0.0  ;;  %v3136_v22 = vmul.f32 %v8237_v18, %v8237_v18 }
0x1380   :  { %3127 = vadd.xlane.f32.xlu1 %v3126_v21 }
0x1381   :  { %v3137_v25 = vsel %vm277_vm3, %v3136_v22, 0.0  ;;  %v3125_v22 = vld [vmem:[#allocation2 + $0x230] sm:$0xff] }
0x1384   :  { %3138 = vadd.xlane.f32.xlu1 %v3137_v25 }
0x1388   :  { %v3475_v27 = vpop.f32.mrb[28].mxu1 }
0x1389   :  { %v8244_v28 = vadd.f32 %v7598_v26, %v3475_v27  ;;  %v7020_v29 = vpop.f32.mrb[29].mxu1 }
0x138a   :  { %v3480_v29 = vld [vmem:[#allocation2 + $0x498] sm:$0x1] }
0x138b   :  { %v3482_v31 = vsel %vm354_vm8, %v8244_v28, 0.0  ;;  %v3492_v32 = vmul.f32 %v8244_v28, %v8244_v28 }
0x138c   :  { %3483 = vadd.xlane.f32.xlu1 %v3482_v31 }
0x138d   :  { %v3493_v33 = vsel %vm354_vm8, %v3492_v32, 0.0 }
0x1390   :  { %3494 = vadd.xlane.f32.xlu1 %v3493_v33  ;;  %v3481_v33 = vld [vmem:[#allocation2 + $0x488] sm:$0x1] }
0x140d   :  { %v3128_v34 = vpop.xlane.xlu1 %3127 }
0x140e   :  { %v3129_v35 = vrot.slane %v3128_v34, 4 }
0x1410   :  { %v3130_v8 = vadd.f32 %v3129_v35, %v3128_v34 }
0x1411   :  { %v3139_v36 = vpop.xlane.xlu1 %3138 }
0x1412   :  { %v3131_v37 = vrot.slane %v3130_v8, 2  ;;  %v3140_v38 = vrot.slane %v3139_v36, 4 }
0x1414   :  { %v3141_v39 = vadd.f32 %v3140_v38, %v3139_v36  ;;  %v3132_v40 = vadd.f32 %v3131_v37, %v3130_v8  ;;  %v3668_v8 = vld [vmem:[#allocation2 + $0x418] sm:$0x1f]  ;;  %v3170_v36 = vld [vmem:[#allocation2 + $0x4a8] sm:$0xff]  ;;  %v3948_v37 = vld [vmem:[#allocation2 + $0x380] sm:$0x7] }
0x1415   :  { %v3751_v38 = vld [vmem:[#allocation2 + $0x3d0] sm:$0x1f] }
0x1416   :  { %v3142_v41 = vrot.slane %v3141_v39, 2  ;;  %v3133_v42 = vrot.slane %v3132_v40, 1 }
0x1418   :  { %v3134_v43 = vadd.f32 %v3133_v42, %v3132_v40  ;;  %v3143_v44 = vadd.f32 %v3142_v41, %v3141_v39  ;;  %v4023_v39 = vld [vmem:[#allocation2 + $0x358] sm:$0x7]  ;;  %v4100_v40 = vld [vmem:[#allocation2 + $0x368] sm:$0xff] }
0x1419   :  { %v3484_v47 = vpop.xlane.xlu1 %3483  ;;  %v3832_v42 = vld [vmem:[#allocation2 + $0x3d8] sm:$0xff] }
0x141a   :  { %7704 = vpush %v3134_v43  ;;  %v3144_v45 = vrot.slane %v3143_v44, 1  ;;  %v3485_v49 = vrot.slane %v3484_v47, 4  ;;  %v3833_v43 = vld [vmem:[#allocation2 + $0x3e0] sm:$0xff] }
0x141c   :  { %v3145_v46 = vadd.f32 %v3144_v45, %v3143_v44  ;;  %v3486_v53 = vadd.f32 %v3485_v49, %v3484_v47  ;;  %v7465_v44 = vpack.c.bf16 %v3833_v43, %v3832_v42  ;;  %v4101_v45 = vld [vmem:[#allocation2 + $0x370] sm:$0xff] }
0x141d   :  { %v3495_v48 = vpop.xlane.xlu1 %3494  ;;  %v3835_v49 = vld [vmem:[#allocation2 + $0x3f0] sm:$0xff] }
0x141e   :  { %7706 = vpush %v3145_v46  ;;  %v3496_v50 = vrot.slane %v3495_v48, 4  ;;  %v3487_v55 = vrot.slane %v3486_v53, 2  ;;  %v4102_v46 = vld [vmem:[#allocation2 + $0x378] sm:$0xff] }
0x141f   :  { %v7474_v47 = vpack.c.bf16 %v4102_v46, %v4101_v45 }
0x1420   :  { %v3497_v54 = vadd.f32 %v3496_v50, %v3495_v48  ;;  %v3488_v57 = vadd.f32 %v3487_v55, %v3486_v53  ;;  %v3834_v48 = vld [vmem:[#allocation2 + $0x3e8] sm:$0xff] }
0x1421   :  { %v7468_v50 = vpack.c.bf16 %v3835_v49, %v3834_v48 }
0x1422   :  { %v3498_v56 = vrot.slane %v3497_v54, 2  ;;  %v3489_v5 = vrot.slane %v3488_v57, 1 }
0x1424   :  { %v3499_v63 = vadd.f32 %v3498_v56, %v3497_v54  ;;  %v3490_v14 = vadd.f32 %v3489_v5, %v3488_v57 }
0x1426   :  { %v3500_v9 = vrot.slane %v3499_v63, 1 }
0x1428   :  { %v3501_v15 = vadd.f32 %v3500_v9, %v3499_v63  ;;  %v3749_v9 = vld [vmem:[#allocation2 + $0x438] sm:$0xff] }
0x144b   :  { %s7705_s16 = spop %7704 }
0x144c   :  { %s8251_s18 = smul.f32 0.00390625, %s7705_s16 }
0x144e   :  { %s3149_s19 = smul.f32 %s8251_s18, %s8251_s18  ;;  %v3151_v3 = vstv %s8251_s18 }
0x144f   :  { %s7707_s20 = spop %7706  ;;  %v3152_v16 = vsub.f32 %v8237_v18, %v3151_v3 }
0x1450   :  { %s3148_s21 = smul.f32 0.00390625, %s7707_s20 }
0x1452   :  { %s3150_s22 = ssub.f32 %s3148_s21, %s3149_s19 }
0x1454   :  { %s3153_s23 = sadd.f32 1e-05, %s3150_s22 }
0x1456   :  { %v3154_v51 = vstv %s3153_s23 }
0x1457   :  { %7797 = vrsqrt.f32 %v3154_v51  ;;  %v4024_v51 = vld [vmem:[#allocation2 + $0x388] sm:$0x1] }
0x1461   :  { %v7798_v13 = vpop.eup %7797 }
0x1462   :  { %7708 = vpush %v7798_v13  ;;  %v3836_v13 = vld [vmem:[#allocation2 + $0x428] sm:$0xff] }
0x1463   :  { %7710 = vpush %v3490_v14  ;;  %v7603_v14 = vadd.f32 %v4103_v11, %v3949_v10 }
0x1464   :  { %7712 = vpush %v3501_v15 }
0x1493   :  { %s7709_s24 = spop %7708 }
0x1494   :  { %v3157_v20 = vstv %s7709_s24  ;;  %s7711_s27 = spop %7710 }
0x1495   :  { %v3158_v21 = vmul.f32 %v3157_v20, %v3152_v16  ;;  %s3503_s28 = smul.f32 0.03125, %s7711_s27  ;;  %s7713_s29 = spop %7712 }
0x1496   :  { %s3504_s3 = smul.f32 0.03125, %s7713_s29 }
0x1497   :  { %v3159_v23 = vmul.f32 %v3158_v21, %v3124_v17  ;;  %s3505_s30 = smul.f32 %s3503_s28, %s3503_s28  ;;  %v3507_v18 = vstv %s3503_s28 }
0x1498   :  { %v3508_v27 = vsub.f32 %v8244_v28, %v3507_v18  ;;  %v3244_v28 = vadd.f32 %v8220_v59, %v3170_v36  ;;  %v4099_v59 = vld [vmem:[#allocation2 + $0x360] sm:$0xff] }
0x1499   :  { %v3160_v24 = vadd.f32 %v3159_v23, %v3125_v22  ;;  %s3506_s5 = ssub.f32 %s3504_s3, %s3505_s30  ;;  %v7471_v41 = vpack.c.bf16 %v4100_v40, %v4099_v59 }
0x149b   :  { %3161 = vst.msk [vmem:[#allocation5] sm:$0xff] %vm277_vm3, %v3160_v24  ;;  %s3509_s6 = sadd.f32 1e-05, %s3506_s5 }
0x149d   :  { %v3510_v25 = vstv %s3509_s6 }
0x149e   :  { %7799 = vrsqrt.f32 %v3510_v25 }
0x14a8   :  { %v7800_v26 = vpop.eup %7799 }
0x14a9   :  { %7714 = vpush %v7800_v26 }
0x14da   :  { %s7715_s7 = spop %7714 }
0x14db   :  { %v3513_v31 = vstv %s7715_s7 }
0x14dc   :  { %v3514_v32 = vmul.f32 %v3513_v31, %v3508_v27 }
0x14de   :  { %v3515_v34 = vmul.f32 %v3514_v32, %v3480_v29 }
0x14e0   :  { %v3516_v35 = vadd.f32 %v3515_v34, %v3481_v33 }
0x14e2   :  { %7030 = vmatmul.mubr.msk.f32.vlgmr.msra.gmra.mrb[30].mxu0 %vm277_vm3, %v3516_v35  ;;  %7041 = vmatmul.mubr.msk.f32.vlgmr.msra.gmra.mrb[30].mxu1 %vm277_vm3, %v3516_v35 }
0x14e3   :  { %7044 = vmatpush3.msk.msra.mxu0 %vm550_vm9, %v3668_v8  ;;  %7045 = vmatprep.mubr.msk.f32.mxu0 %vm7873_vm0, %v7872_v0 }
0x14e4   :  { %7065 = vmatpush3.msk.msra.mxu1 %vm122_vm1, %v3948_v37  ;;  %7066 = vmatprep.mubr.msk.f32.mxu1 %vm7873_vm0, %v7872_v0 }
0x14e5   :  { %7048 = vmatprep.subr.mxu0 %v7872_v0  ;;  %7069 = vmatprep.subr.mxu1 %v7872_v0 }
0x14e6   :  { %7046 = vmatmul.mubr.msk.f32.vlgmr.msra.gmra.mrb[32].mxu0 %vm546_vm10, %v3244_v28  ;;  %7067 = vmatmul.mubr.msk.f32.vlgmr.msra.gmra.mrb[32].mxu1 %vm118_vm2, %v8210_v19 }
0x14e7   :  { %7049 = vmatpush3.msk.msra.mxu0 %vm550_vm9, %v3751_v38  ;;  %7050 = vmatprep.mubr.msk.f32.mxu0 %vm7873_vm0, %v7872_v0 }
0x14e8   :  { %7070 = vmatpush3.msk.msra.mxu1 %vm122_vm1, %v4023_v39  ;;  %7071 = vmatprep.mubr.msk.f32.mxu1 %vm7873_vm0, %v7872_v0 }
0x14e9   :  { %7470 = vmatprep.subr.bf16.mxu1 %v7874_v1  ;;  %7464 = vmatprep.subr.bf16.mxu0 %v7874_v1 }
0x14ea   :  { %7051 = vmatmul.mubr.msk.f32.vlgmr.msra.gmra.mrb[34].mxu0 %vm546_vm10, %v3244_v28  ;;  %7072 = vmatmul.mubr.msk.f32.vlgmr.msra.gmra.mrb[34].mxu1 %vm118_vm2, %v8210_v19 }
0x14eb   :  { %7082 = vmatprep.mubr.msk.f32.mxu1 %vm7873_vm0, %v7872_v0  ;;  %7061 = vmatprep.mubr.msk.f32.mxu0 %vm7873_vm0, %v7872_v0 }
0x14ec   :  { %7472 = vmatpush3.bf16.msra.mxu1 %v7471_v41  ;;  %7466 = vmatpush3.bf16.msra.mxu0 %v7465_v44 }
0x14ed   :  { %7473 = vmatprep.subr.bf16.mxu1 %v7874_v1  ;;  %7467 = vmatprep.subr.bf16.mxu0 %v7874_v1 }
0x14f0   :  { %7475 = vmatpush3.bf16.msra.mxu1 %v7474_v47  ;;  %7469 = vmatpush3.bf16.msra.mxu0 %v7468_v50 }
0x14f1   :  { %7482 = vmatprep.subr.bf16.mxu1 %v7874_v1  ;;  %7476 = vmatprep.subr.bf16.mxu0 %v7874_v1 }
0x15b5   :  { %v3590_v53 = vpop.f32.mrb[30].mxu0  ;;  %v3664_v54 = vpop.f32.mrb[30].mxu1 }
0x15b6   :  { %v7031_v55 = vpop.f32.mrb[31].mxu0  ;;  %v7042_v56 = vpop.f32.mrb[31].mxu1  ;;  %v3755_v57 = vrot.slane %v3590_v53, %v8001_v30  ;;  %v3672_v7 = vrot.slane %v3664_v54, %v8001_v30  ;;  %v4215_v53 = vld [vmem:[#allocation2 + $0x2c0] sm:$0xff]  ;;  %v4216_v54 = vld [vmem:[#allocation2 + $0x2c8] sm:$0xff] }
0x15b7   :  { %v4292_v55 = vld [vmem:[#allocation2 + $0x308] sm:$0xff] }
0x15b8   :  { %v7600_v12 = vadd.f32 %v3749_v9, %v3672_v7 }
0x15ba   :  { %v7601_v16 = vadd.f32 %v7600_v12, %v3836_v13 }
0x15bd   :  { %v3825_v58 = vpop.f32.mrb[34].mxu0  ;;  %v4094_v62 = vpop.f32.mrb[34].mxu1 }
0x15be   :  { %v3826_v63 = vadd.f32 %v3825_v58, %v3755_v57  ;;  %v4095_v60 = vadd.f32 %v4094_v62, %v4024_v51  ;;  %v7052_v2 = vpop.f32.mrb[35].mxu0  ;;  %v7073_v4 = vpop.f32.mrb[35].mxu1  ;;  %v7477_v51 = vpack.c.bf16 %v4216_v54, %v4215_v53  ;;  %v4293_v57 = vld [vmem:[#allocation2 + $0x310] sm:$0xff] }
0x15bf   :  { %v7483_v58 = vpack.c.bf16 %v4293_v57, %v4292_v55  ;;  %v4217_v62 = vld [vmem:[#allocation2 + $0x2d0] sm:$0xff] }
0x15c0   :  { %v3830_v5 = vadd.f32 %v3829_v61, %v3826_v63  ;;  %v4098_v52 = vmax.f32 %v4095_v60, 0.0  ;;  %v4218_v63 = vld [vmem:[#allocation2 + $0x2d8] sm:$0xff] }
0x15c1   :  { %v4294_v60 = vld [vmem:[#allocation2 + $0x318] sm:$0xff]  ;;  %v7480_v4 = vpack.c.bf16 %v4218_v63, %v4217_v62 }
0x15c2   :  { %v3831_v6 = vmax.f32 %v3830_v5, 0.0  ;;  %7083 = vmatmul.mubr.msk.f32.vlgmr.msra.gmra.mrb[32].mxu1 %vm277_vm3, %v4098_v52  ;;  %v4295_v5 = vld [vmem:[#allocation2 + $0x320] sm:$0xff] }
0x15c3   :  { %7104 = vmatprep.mubr.msk.f32.mxu1 %vm7873_vm0, %v7872_v0  ;;  %7484 = vmatpush3.bf16.msra.mxu1 %v7483_v58  ;;  %v7486_v52 = vpack.c.bf16 %v4295_v5, %v4294_v60 }
0x15c4   :  { %7062 = vmatmul.mubr.msk.f32.vlgmr.msra.gmra.mrb[32].mxu0 %vm277_vm3, %v3831_v6  ;;  %7485 = vmatprep.subr.bf16.mxu1 %v7874_v1 }
0x15c5   :  { %7093 = vmatprep.mubr.msk.f32.mxu0 %vm7873_vm0, %v7872_v0  ;;  %7478 = vmatpush3.bf16.msra.mxu0 %v7477_v51 }
0x15c6   :  { %7479 = vmatprep.subr.bf16.mxu0 %v7874_v1 }
0x15c7   :  { %7487 = vmatpush3.bf16.msra.mxu1 %v7486_v52 }
0x15c8   :  { %7128 = vmatprep.subr.mxu1 %v7872_v0 }
0x15c9   :  { %7481 = vmatpush3.bf16.msra.mxu0 %v7480_v4 }
0x15ca   :  { %7107 = vmatprep.subr.mxu0 %v7872_v0 }
0x1695   :  { %v4173_v15 = vpop.f32.mrb[32].mxu1 }
0x1696   :  { %v7084_v3 = vpop.f32.mrb[33].mxu1  ;;  %v8304_v20 = vadd.f32 %v7603_v14, %v4173_v15 }
0x1697   :  { %v3906_v17 = vpop.f32.mrb[32].mxu0 }
0x1698   :  { %v8306_v21 = vadd.f32 %v7601_v16, %v3906_v17  ;;  %v7063_v22 = vpop.f32.mrb[33].mxu0  ;;  %v4190_v26 = vmul.f32 %v8304_v20, %v8304_v20  ;;  %v4180_v18 = vsel %vm354_vm8, %v8304_v20, 0.0  ;;  %v4178_v17 = vld [vmem:[#allocation2 + $0x3a8] sm:$0x1] }
0x169a   :  { %v3913_v23 = vsel %vm277_vm3, %v8306_v21, 0.0  ;;  %v3923_v24 = vmul.f32 %v8306_v21, %v8306_v21  ;;  %v4191_v27 = vsel %vm354_vm8, %v4190_v26, 0.0  ;;  %v4366_v26 = vld [vmem:[#allocation2 + $0x328] sm:$0xf] }
0x169b   :  { %3914 = vadd.xlane.f32.xlu1 %v3913_v23  ;;  %v4179_v23 = vld [vmem:[#allocation2 + $0x398] sm:$0x1] }
0x169c   :  { %v3924_v25 = vsel %vm277_vm3, %v3923_v24, 0.0 }
0x169d   :  { %3925 = vadd.xlane.f32.xlu0 %v3924_v25 }
0x169f   :  { %4181 = vadd.xlane.f32.xlu1 %v4180_v18  ;;  %v4449_v18 = vld [vmem:[#allocation2 + $0x2e0] sm:$0xf] }
0x16a1   :  { %4192 = vadd.xlane.f32.xlu0 %v4191_v27  ;;  %v4530_v27 = vld [vmem:[#allocation2 + $0x2e8] sm:$0xff] }
0x1728   :  { %v3915_v29 = vpop.xlane.xlu1 %3914 }
0x1729   :  { %v3916_v31 = vrot.slane %v3915_v29, 4 }
0x172a   :  { %v3926_v32 = vpop.xlane.xlu0 %3925 }
0x172b   :  { %v3917_v33 = vadd.f32 %v3916_v31, %v3915_v29  ;;  %v3927_v34 = vrot.slane %v3926_v32, 4  ;;  %v4531_v29 = vld [vmem:[#allocation2 + $0x2f0] sm:$0xff] }
0x172c   :  { %v4182_v41 = vpop.xlane.xlu1 %4181  ;;  %v7489_v31 = vpack.c.bf16 %v4531_v29, %v4530_v27  ;;  %v4765_v27 = vld [vmem:[#allocation2 + $0x130] sm:$0x7] }
0x172d   :  { %v3918_v35 = vrot.slane %v3917_v33, 2  ;;  %v3928_v8 = vadd.f32 %v3927_v34, %v3926_v32  ;;  %v4183_v43 = vrot.slane %v4182_v41, 4  ;;  %v4532_v32 = vld [vmem:[#allocation2 + $0x2f8] sm:$0xff]  ;;  %v4916_v29 = vld [vmem:[#allocation2 + $0x110] sm:$0xff] }
0x172e   :  { %v4193_v42 = vpop.xlane.xlu0 %4192 }
0x172f   :  { %v3929_v36 = vrot.slane %v3928_v8, 2  ;;  %v3919_v37 = vadd.f32 %v3918_v35, %v3917_v33  ;;  %v4194_v44 = vrot.slane %v4193_v42, 4  ;;  %v4184_v45 = vadd.f32 %v4183_v43, %v4182_v41  ;;  %v4533_v33 = vld [vmem:[#allocation2 + $0x300] sm:$0xff] }
0x1730   :  { %v7492_v34 = vpack.c.bf16 %v4533_v33, %v4532_v32  ;;  %v4918_v33 = vld [vmem:[#allocation2 + $0x120] sm:$0xff] }
0x1731   :  { %v3920_v28 = vrot.slane %v3919_v37, 1  ;;  %v3930_v38 = vadd.f32 %v3929_v36, %v3928_v8  ;;  %v4195_v46 = vadd.f32 %v4194_v44, %v4193_v42  ;;  %v4185_v47 = vrot.slane %v4184_v45, 2  ;;  %v4447_v44 = vld [vmem:[#allocation2 + $0x348] sm:$0xff] }
0x1733   :  { %v3921_v39 = vadd.f32 %v3920_v28, %v3919_v37  ;;  %v3931_v59 = vrot.slane %v3930_v38, 1  ;;  %v4196_v48 = vrot.slane %v4195_v46, 2  ;;  %v4186_v50 = vadd.f32 %v4185_v47, %v4184_v45 }
0x1735   :  { %7716 = vpush %v3921_v39  ;;  %v3932_v40 = vadd.f32 %v3931_v59, %v3930_v38  ;;  %v4197_v56 = vadd.f32 %v4196_v48, %v4195_v46  ;;  %v4187_v61 = vrot.slane %v4186_v50, 1  ;;  %v4527_v39 = vld [vmem:[#allocation2 + $0x330] sm:$0xff]  ;;  %v4534_v46 = vld [vmem:[#allocation2 + $0x338] sm:$0xff] }
0x1737   :  { %7718 = vpush %v3932_v40  ;;  %v4198_v2 = vrot.slane %v4197_v56, 1  ;;  %v4188_v7 = vadd.f32 %v4187_v61, %v4186_v50 }
0x1739   :  { %v4199_v9 = vadd.f32 %v4198_v2, %v4197_v56 }
0x1766   :  { %s7717_s8 = spop %7716 }
0x1767   :  { %s8318_s9 = smul.f32 0.00390625, %s7717_s8 }
0x1768   :  { %s7719_s10 = spop %7718 }
0x1769   :  { %s3936_s11 = smul.f32 %s8318_s9, %s8318_s9  ;;  %v3938_v10 = vstv %s8318_s9 }
0x176a   :  { %s3935_s12 = smul.f32 0.00390625, %s7719_s10  ;;  %v3939_v11 = vsub.f32 %v8306_v21, %v3938_v10 }
0x176c   :  { %s3937_s13 = ssub.f32 %s3935_s12, %s3936_s11 }
0x176e   :  { %s3940_s14 = sadd.f32 1e-05, %s3937_s13 }
0x1770   :  { %v3941_v49 = vstv %s3940_s14 }
0x1771   :  { %7801 = vrsqrt.f32 %v3941_v49 }
0x177b   :  { %v7802_v6 = vpop.eup %7801 }
0x177c   :  { %7720 = vpush %v7802_v6 }
0x177d   :  { %7722 = vpush %v4188_v7 }
0x177e   :  { %7724 = vpush %v4199_v9 }
0x17ad   :  { %s7721_s0 = spop %7720 }
0x17ae   :  { %v3944_v12 = vstv %s7721_s0  ;;  %s7723_s15 = spop %7722 }
0x17af   :  { %v8328_v13 = vmul.f32 %v3944_v12, %v3939_v11  ;;  %s4201_s16 = smul.f32 0.03125, %s7723_s15  ;;  %s7725_s18 = spop %7724 }
0x17b0   :  { %s4202_s19 = smul.f32 0.03125, %s7725_s18 }
0x17b1   :  { %s4203_s20 = smul.f32 %s4201_s16, %s4201_s16  ;;  %v4205_v3 = vstv %s4201_s16 }
0x17b2   :  { %v4206_v16 = vsub.f32 %v8304_v20, %v4205_v3  ;;  %v6353_v20 = vld [vmem:[%s8507_s1 + $0x8] sm:$0xff] }
0x17b3   :  { %s4204_s21 = ssub.f32 %s4202_s19, %s4203_s20 }
0x17b5   :  { %s4207_s22 = sadd.f32 1e-05, %s4204_s21 }
0x17b7   :  { %v4208_v14 = vstv %s4207_s22 }
0x17b8   :  { %7803 = vrsqrt.f32 %v4208_v14  ;;  %v4609_v14 = vld [vmem:[#allocation2 + $0x350] sm:$0xff] }
0x17c2   :  { %v7804_v15 = vpop.eup %7803 }
0x17c3   :  { %7726 = vpush %v7804_v15 }
0x17f4   :  { %s7727_s23 = spop %7726 }
0x17f5   :  { %v4211_v21 = vstv %s7727_s23 }
0x17f6   :  { %v4212_v22 = vmul.f32 %v4211_v21, %v4206_v16  ;;  %v4610_v16 = vld [vmem:[#allocation2 + $0x340] sm:$0xff] }
0x17f8   :  { %v4213_v24 = vmul.f32 %v4212_v22, %v4178_v17  ;;  %v3911_v22 = vld [vmem:[#allocation2 + $0x440] sm:$0xff] }
0x17fa   :  { %v4214_v25 = vadd.f32 %v4213_v24, %v4179_v23  ;;  %v3946_v23 = vmul.f32 %v8328_v13, %v3911_v22  ;;  %v3912_v24 = vld [vmem:[#allocation2 + $0x430] sm:$0xff]  ;;  %v4840_v13 = vld [vmem:[#allocation2 + $0x108] sm:$0x7] }
0x17fc   :  { %7094 = vmatmul.mubr.msk.f32.vlgmr.msra.gmra.mrb[36].mxu0 %vm277_vm3, %v4214_v25  ;;  %7105 = vmatmul.mubr.msk.f32.vlgmr.msra.gmra.mrb[36].mxu1 %vm277_vm3, %v4214_v25  ;;  %v3947_v25 = vadd.f32 %v3946_v23, %v3912_v24 }
0x17fd   :  { %7108 = vmatpush3.msk.msra.mxu0 %vm42_vm4, %v4366_v26  ;;  %7109 = vmatprep.mubr.msk.f32.mxu0 %vm7873_vm0, %v7872_v0 }
0x17fe   :  { %7112 = vmatprep.subr.mxu0 %v7872_v0  ;;  %7130 = vmatprep.mubr.msk.f32.mxu1 %vm7873_vm0, %v7872_v0 }
0x1800   :  { %7110 = vmatmul.mubr.msk.f32.vlgmr.msra.gmra.mrb[38].mxu0 %vm1246_vm11, %v6353_v20 }
0x1801   :  { %7113 = vmatpush3.msk.msra.mxu0 %vm42_vm4, %v4449_v18  ;;  %7114 = vmatprep.mubr.msk.f32.mxu0 %vm7873_vm0, %v7872_v0 }
0x1802   :  { %7488 = vmatprep.subr.bf16.mxu0 %v7874_v1 }
0x1804   :  { %7115 = vmatmul.mubr.msk.f32.vlgmr.msra.gmra.mrb[40].mxu0 %vm1246_vm11, %v6353_v20  ;;  %v4651_v20 = vld [vmem:[#allocation2 + $0x160] sm:$0xff] }
0x1805   :  { %7125 = vmatprep.mubr.msk.f32.mxu0 %vm7873_vm0, %v7872_v0  ;;  %7490 = vmatpush3.bf16.msra.mxu0 %v7489_v31  ;;  %v4917_v31 = vld [vmem:[#allocation2 + $0x118] sm:$0xff] }
0x1806   :  { %7491 = vmatprep.subr.bf16.mxu0 %v7874_v1  ;;  %v7495_v32 = vpack.c.bf16 %v4917_v31, %v4916_v29  ;;  %v4729_v31 = vld [vmem:[#allocation2 + $0x170] sm:$0xff] }
0x1809   :  { %7493 = vmatpush3.bf16.msra.mxu0 %v7492_v34  ;;  %v4919_v34 = vld [vmem:[#allocation2 + $0x128] sm:$0xff] }
0x180a   :  { %7500 = vmatprep.subr.bf16.mxu0 %v7874_v1 }
0x18cf   :  { %v4288_v35 = vpop.f32.mrb[36].mxu0  ;;  %v4362_v8 = vpop.f32.mrb[36].mxu1 }
0x18d0   :  { %v7095_v36 = vpop.f32.mrb[37].mxu0  ;;  %v7106_v37 = vpop.f32.mrb[37].mxu1  ;;  %v4453_v28 = vrot.slane %v4288_v35, %v8001_v30  ;;  %v4370_v43 = vrot.slane %v4362_v8, %v8001_v30  ;;  %v7498_v35 = vpack.c.bf16 %v4919_v34, %v4918_v33  ;;  %v4652_v8 = vld [vmem:[#allocation2 + $0x168] sm:$0xff] }
0x18d2   :  { %v7605_v45 = vadd.f32 %v4447_v44, %v4370_v43 }
0x18d4   :  { %v7606_v47 = vadd.f32 %v7605_v45, %v4534_v46  ;;  %v5183_v46 = vld [vmem:[#allocation2 + $0xa0] sm:$0xff] }
0x18d7   :  { %v4523_v38 = vpop.f32.mrb[40].mxu0 }
0x18d8   :  { %v4524_v59 = vadd.f32 %v4523_v38, %v4453_v28  ;;  %v7116_v40 = vpop.f32.mrb[41].mxu0 }
0x18da   :  { %v4528_v41 = vadd.f32 %v4527_v39, %v4524_v59  ;;  %v4841_v39 = vld [vmem:[#allocation2 + $0x138] sm:$0x1] }
0x18dc   :  { %v4529_v42 = vmax.f32 %v4528_v41, 0.0 }
0x18de   :  { %7126 = vmatmul.mubr.msk.f32.vlgmr.msra.gmra.mrb[38].mxu0 %vm277_vm3, %v4529_v42 }
0x18df   :  { %7162 = vmatprep.mubr.msk.f32.mxu0 %vm7873_vm0, %v7872_v0 }
0x19b1   :  { %v4604_v48 = vpop.f32.mrb[38].mxu0 }
0x19b2   :  { %v7607_v49 = vadd.f32 %v7606_v47, %v4604_v48  ;;  %v7127_v50 = vpop.f32.mrb[39].mxu0  ;;  %v5184_v47 = vld [vmem:[#allocation2 + $0xa8] sm:$0xff]  ;;  %v5185_v48 = vld [vmem:[#allocation2 + $0xb0] sm:$0xff] }
0x19b3   :  { %v5186_v50 = vld [vmem:[#allocation2 + $0xb8] sm:$0xff] }
0x19b4   :  { %v4611_v53 = vsel %vm277_vm3, %v7607_v49, 0.0  ;;  %v4621_v54 = vmul.f32 %v7607_v49, %v7607_v49 }
0x19b5   :  { %4612 = vadd.xlane.f32.xlu1 %v4611_v53  ;;  %v7516_v53 = vpack.c.bf16 %v5186_v50, %v5185_v48 }
0x19b6   :  { %v4622_v55 = vsel %vm277_vm3, %v4621_v54, 0.0 }
0x19b7   :  { %4623 = vadd.xlane.f32.xlu0 %v4622_v55 }
0x1a42   :  { %v4613_v56 = vpop.xlane.xlu1 %4612 }
0x1a43   :  { %v4614_v51 = vrot.slane %v4613_v56, 4 }
0x1a44   :  { %v4624_v57 = vpop.xlane.xlu0 %4623 }
0x1a45   :  { %v4615_v58 = vadd.f32 %v4614_v51, %v4613_v56  ;;  %v4625_v61 = vrot.slane %v4624_v57, 4 }
0x1a47   :  { %v4616_v62 = vrot.slane %v4615_v58, 2  ;;  %v4626_v63 = vadd.f32 %v4625_v61, %v4624_v57  ;;  %v5187_v57 = vld [vmem:[#allocation2 + $0xc0] sm:$0xff] }
0x1a49   :  { %v4627_v60 = vrot.slane %v4626_v63, 2  ;;  %v4617_v2 = vadd.f32 %v4616_v62, %v4615_v58  ;;  %v5188_v58 = vld [vmem:[#allocation2 + $0xc8] sm:$0xff] }
0x1a4b   :  { %v4618_v4 = vrot.slane %v4617_v2, 1  ;;  %v4628_v5 = vadd.f32 %v4627_v60, %v4626_v63  ;;  %v7519_v63 = vpack.c.bf16 %v5188_v58, %v5187_v57  ;;  %v5109_v58 = vld [vmem:[#allocation2 + $0x80] sm:$0xff] }
0x1a4d   :  { %v4619_v52 = vadd.f32 %v4618_v4, %v4617_v2  ;;  %v4629_v6 = vrot.slane %v4628_v5, 1  ;;  %v5189_v4 = vld [vmem:[#allocation2 + $0xd0] sm:$0xff] }
0x1a4f   :  { %7728 = vpush %v4619_v52  ;;  %v4630_v7 = vadd.f32 %v4629_v6, %v4628_v5  ;;  %v5190_v5 = vld [vmem:[#allocation2 + $0xd8] sm:$0xff] }
0x1a51   :  { %7730 = vpush %v4630_v7  ;;  %v7522_v7 = vpack.c.bf16 %v5190_v5, %v5189_v4  ;;  %v5111_v4 = vld [vmem:[#allocation2 + $0x90] sm:$0xff]  ;;  %v5112_v5 = vld [vmem:[#allocation2 + $0x98] sm:$0xff] }
0x1a80   :  { %s7729_s1 = spop %7728 }
0x1a81   :  { %s4632_s28 = smul.f32 0.00390625, %s7729_s1 }
0x1a82   :  { %s7731_s29 = spop %7730 }
0x1a83   :  { %s4634_s3 = smul.f32 %s4632_s28, %s4632_s28  ;;  %v4636_v11 = vstv %s4632_s28 }
0x1a84   :  { %s4633_s30 = smul.f32 0.00390625, %s7731_s29  ;;  %v4637_v12 = vsub.f32 %v7607_v49, %v4636_v11  ;;  %v7513_v49 = vpack.c.bf16 %v5184_v47, %v5183_v46 }
0x1a86   :  { %s4635_s5 = ssub.f32 %s4633_s30, %s4634_s3 }
0x1a88   :  { %s4638_s6 = sadd.f32 1e-05, %s4635_s5 }
0x1a8a   :  { %v4639_v9 = vstv %s4638_s6 }
0x1a8b   :  { %7805 = vrsqrt.f32 %v4639_v9 }
0x1a95   :  { %v7806_v10 = vpop.eup %7805 }
0x1a96   :  { %7732 = vpush %v7806_v10 }
0x1ac7   :  { %s7733_s7 = spop %7732 }
0x1ac8   :  { %v4642_v15 = vstv %s7733_s7 }
0x1ac9   :  { %v4643_v3 = vmul.f32 %v4642_v15, %v4637_v12  ;;  %v4920_v15 = vld [vmem:[#allocation2 + $0x140] sm:$0x1] }
0x1acb   :  { %v4644_v17 = vmul.f32 %v4643_v3, %v4609_v14  ;;  %v4766_v14 = vld [vmem:[#allocation2 + $0x150] sm:$0x1] }
0x1acc   :  { %v7608_v3 = vadd.f32 %v4920_v15, %v4766_v14  ;;  %v5274_v14 = vld [vmem:[#allocation2 + $0x40] sm:$0xff]  ;;  %v5275_v15 = vld [vmem:[#allocation2 + $0x48] sm:$0xff] }
0x1acd   :  { %v4645_v21 = vadd.f32 %v4644_v17, %v4610_v16 }
0x1acf   :  { %4647 = vrot.lane.b32.xlu1 %v4645_v21, %s7876_s17 }
0x1b41   :  { %v4648_v26 = vpop.permute.xlu1 %4647 }
0x1b42   :  { %v4650_v18 = vsel %vm277_vm3, %v3947_v25, %v4648_v26 }
0x1b43   :  { %7129 = vmatpush3.msra.mxu1 %v4650_v18 }
0x1b44   :  { %7131 = vmatmul.mubr.msk.f32.vlgmr.msra.gmra.mrb[38].mxu1 %vm1529_vm12, %v4651_v20  ;;  %7133 = vmatprep.subr.mxu1 %v7872_v0 }
0x1b45   :  { %7134 = vmatpush3.msk.msra.mxu1 %vm122_vm1, %v4765_v27  ;;  %7135 = vmatprep.mubr.msk.f32.mxu1 %vm7873_vm0, %v7872_v0  ;;  %v4728_v27 = vld [vmem:[#allocation2 + $0x178] sm:$0xff] }
0x1b46   :  { %7138 = vmatprep.subr.mxu1 %v7872_v0 }
0x1b48   :  { %7136 = vmatmul.mubr.msk.f32.vlgmr.msra.gmra.mrb[40].mxu1 %vm118_vm2, %v8210_v19 }
0x1b49   :  { %7139 = vmatpush3.msk.msra.mxu1 %vm122_vm1, %v4840_v13  ;;  %7140 = vmatprep.mubr.msk.f32.mxu1 %vm7873_vm0, %v7872_v0 }
0x1b4a   :  { %7494 = vmatprep.subr.bf16.mxu1 %v7874_v1 }
0x1b4c   :  { %7141 = vmatmul.mubr.msk.f32.vlgmr.msra.gmra.mrb[42].mxu1 %vm118_vm2, %v8210_v19 }
0x1b4d   :  { %7151 = vmatprep.mubr.msk.f32.mxu1 %vm7873_vm0, %v7872_v0  ;;  %7496 = vmatpush3.bf16.msra.mxu1 %v7495_v32 }
0x1b4e   :  { %7497 = vmatprep.subr.bf16.mxu1 %v7874_v1 }
0x1b51   :  { %7499 = vmatpush3.bf16.msra.mxu1 %v7498_v35 }
0x1b52   :  { %7512 = vmatprep.subr.bf16.mxu1 %v7874_v1 }
0x1c17   :  { %v4722_v36 = vpop.f32.mrb[38].mxu1 }
0x1c18   :  { %v4723_v37 = vadd.f32 %v4722_v36, %v4652_v8  ;;  %v7132_v28 = vpop.f32.mrb[39].mxu1  ;;  %v5032_v36 = vld [vmem:[#allocation2] sm:$0xff] }
0x1c1a   :  { %v4726_v19 = vmax.f32 %v4723_v37, 0.0  ;;  %v5033_v37 = vld [vmem:[#allocation2 + $0x8] sm:$0xff] }
0x1c1c   :  { %v8380_v38 = vadd.f32 %v4726_v19, %v4650_v18  ;;  %v7501_v19 = vpack.c.bf16 %v5033_v37, %v5032_v36 }
0x1c1e   :  { %v4730_v59 = vsel %vm1607_vm13, %v8380_v38, 0.0  ;;  %v4740_v40 = vmul.f32 %v8380_v38, %v8380_v38  ;;  %7502 = vmatpush3.bf16.msra.mxu0 %v7501_v19 }
0x1c1f   :  { %4731 = vadd.xlane.f32.xlu0 %v4730_v59  ;;  %v4911_v41 = vpop.f32.mrb[42].mxu1  ;;  %7503 = vmatprep.subr.bf16.mxu0 %v7874_v1 }
0x1c20   :  { %v4912_v42 = vadd.f32 %v4911_v41, %v4841_v39  ;;  %v7142_v43 = vpop.f32.mrb[43].mxu1  ;;  %v4741_v45 = vsel %vm1607_vm13, %v4740_v40, 0.0  ;;  %v5034_v41 = vld [vmem:[#allocation2 + $0x10] sm:$0xff] }
0x1c22   :  { %v4915_v44 = vmax.f32 %v4912_v42, 0.0  ;;  %v5035_v42 = vld [vmem:[#allocation2 + $0x18] sm:$0xff] }
0x1c23   :  { %4742 = vadd.xlane.f32.xlu0 %v4741_v45  ;;  %v7504_v43 = vpack.c.bf16 %v5035_v42, %v5034_v41 }
0x1c24   :  { %7152 = vmatmul.mubr.msk.f32.vlgmr.msra.gmra.mrb[40].mxu1 %vm277_vm3, %v4915_v44 }
0x1c25   :  { %7192 = vmatprep.mubr.msk.f32.mxu1 %vm7873_vm0, %v7872_v0  ;;  %7514 = vmatpush3.bf16.msra.mxu1 %v7513_v49 }
0x1c26   :  { %7515 = vmatprep.subr.bf16.mxu1 %v7874_v1  ;;  %7505 = vmatpush3.bf16.msra.mxu0 %v7504_v43 }
0x1c27   :  { %7506 = vmatprep.subr.bf16.mxu0 %v7874_v1 }
0x1c29   :  { %7517 = vmatpush3.bf16.msra.mxu1 %v7516_v53 }
0x1c2a   :  { %7518 = vmatprep.subr.bf16.mxu1 %v7874_v1 }
0x1c2d   :  { %7520 = vmatpush3.bf16.msra.mxu1 %v7519_v63 }
0x1c2e   :  { %7521 = vmatprep.subr.bf16.mxu1 %v7874_v1 }
0x1c31   :  { %7523 = vmatpush3.bf16.msra.mxu1 %v7522_v7  ;;  %v5271_v7 = vld [vmem:[#allocation2 + $0x28] sm:$0xff] }
0x1c32   :  { %7536 = vmatprep.subr.bf16.mxu1 %v7874_v1 }
0x1cac   :  { %v4732_v54 = vpop.xlane.xlu0 %4731 }
0x1cad   :  { %v4733_v55 = vrot.slane %v4732_v54, 4 }
0x1caf   :  { %v4734_v56 = vadd.f32 %v4733_v55, %v4732_v54 }
0x1cb0   :  { %v4743_v51 = vpop.xlane.xlu0 %4742 }
0x1cb1   :  { %v4735_v61 = vrot.slane %v4734_v56, 2  ;;  %v4744_v62 = vrot.slane %v4743_v51, 4 }
0x1cb3   :  { %v4745_v60 = vadd.f32 %v4744_v62, %v4743_v51  ;;  %v4736_v2 = vadd.f32 %v4735_v61, %v4734_v56  ;;  %v4995_v56 = vld [vmem:[#allocation2 + $0x158] sm:$0x1]  ;;  %v5110_v61 = vld [vmem:[#allocation2 + $0x88] sm:$0xff] }
0x1cb4   :  { %v4996_v62 = vld [vmem:[#allocation2 + $0x148] sm:$0x1] }
0x1cb5   :  { %v4746_v52 = vrot.slane %v4745_v60, 2  ;;  %v4737_v6 = vrot.slane %v4736_v2, 1 }
0x1cb7   :  { %v4738_v9 = vadd.f32 %v4737_v6, %v4736_v2  ;;  %v4747_v10 = vadd.f32 %v4746_v52, %v4745_v60  ;;  %v7507_v60 = vpack.c.bf16 %v5110_v61, %v5109_v58  ;;  %v7510_v52 = vpack.c.bf16 %v5112_v5, %v5111_v4  ;;  %v5270_v6 = vld [vmem:[#allocation2 + $0x20] sm:$0xff] }
0x1cb8   :  { %v5434_v4 = vld [vmem:[#allocation2 + $0x100] sm:$0xff] }
0x1cb9   :  { %7734 = vpush %v4738_v9  ;;  %v4748_v11 = vrot.slane %v4747_v10, 1  ;;  %v7525_v9 = vpack.c.bf16 %v5271_v7, %v5270_v6  ;;  %v5435_v6 = vld [vmem:[#allocation2 + $0xf0] sm:$0xff] }
0x1cbb   :  { %v4749_v12 = vadd.f32 %v4748_v11, %v4747_v10  ;;  %v5272_v10 = vld [vmem:[#allocation2 + $0x30] sm:$0xff]  ;;  %v5273_v11 = vld [vmem:[#allocation2 + $0x38] sm:$0xff] }
0x1cbd   :  { %7736 = vpush %v4749_v12  ;;  %v7528_v12 = vpack.c.bf16 %v5273_v11, %v5272_v10  ;;  %v5471_v10 = vld [vmem:[#allocation2 + $0x2a0] sm:$0xff]  ;;  %v5660_v11 = vld [vmem:[#allocation2 + $0x248] sm:$0x7] }
0x1cea   :  { %s7735_s17 = spop %7734 }
0x1ceb   :  { %s4751_s8 = smul.f32 0.001953125, %s7735_s17 }
0x1ced   :  { %s4753_s9 = smul.f32 %s4751_s8, %s4751_s8  ;;  %v4755_v20 = vstv %s4751_s8 }
0x1cee   :  { %s7737_s10 = spop %7736  ;;  %v4756_v18 = vsub.f32 %v8380_v38, %v4755_v20 }
0x1cef   :  { %s4752_s11 = smul.f32 0.001953125, %s7737_s10 }
0x1cf1   :  { %s4754_s12 = ssub.f32 %s4752_s11, %s4753_s9 }
0x1cf3   :  { %s4757_s13 = sadd.f32 1e-05, %s4754_s12 }
0x1cf5   :  { %v4758_v16 = vstv %s4757_s13 }
0x1cf6   :  { %7807 = vrsqrt.f32 %v4758_v16  ;;  %v5276_v16 = vld [vmem:[#allocation2 + $0x50] sm:$0xff] }
0x1cf7   :  { %v4990_v17 = vpop.f32.mrb[40].mxu1 }
0x1cf8   :  { %v7609_v21 = vadd.f32 %v7608_v3, %v4990_v17  ;;  %v7153_v22 = vpop.f32.mrb[41].mxu1  ;;  %v7531_v3 = vpack.c.bf16 %v5275_v15, %v5274_v14  ;;  %v5277_v17 = vld [vmem:[#allocation2 + $0x58] sm:$0xff]  ;;  %v5585_v14 = vld [vmem:[#allocation2 + $0x270] sm:$0x7] }
0x1cf9   :  { %v5355_v22 = vld [vmem:[#allocation2 + $0x60] sm:$0xff]  ;;  %v5736_v15 = vld [vmem:[#allocation2 + $0x250] sm:$0xff] }
0x1cfa   :  { %v4997_v23 = vsel %vm354_vm8, %v7609_v21, 0.0  ;;  %v5007_v24 = vmul.f32 %v7609_v21, %v7609_v21 }
0x1cfb   :  { %4998 = vadd.xlane.f32.xlu0 %v4997_v23  ;;  %v5356_v23 = vld [vmem:[#allocation2 + $0x68] sm:$0xff] }
0x1cfc   :  { %v5008_v25 = vsel %vm354_vm8, %v5007_v24, 0.0  ;;  %v7537_v24 = vpack.c.bf16 %v5356_v23, %v5355_v22  ;;  %v5472_v23 = vld [vmem:[#allocation2 + $0x2a8] sm:$0xff] }
0x1cff   :  { %5009 = vadd.xlane.f32.xlu0 %v5008_v25  ;;  %v5357_v25 = vld [vmem:[#allocation2 + $0x70] sm:$0xff] }
0x1d00   :  { %v7808_v26 = vpop.eup %7807 }
0x1d01   :  { %7738 = vpush %v7808_v26  ;;  %v5358_v26 = vld [vmem:[#allocation2 + $0x78] sm:$0xff] }
0x1d02   :  { %v7540_v20 = vpack.c.bf16 %v5358_v26, %v5357_v25 }
0x1d32   :  { %s7739_s14 = spop %7738 }
0x1d33   :  { %v4761_v13 = vstv %s7739_s14 }
0x1d34   :  { %v4762_v29 = vmul.f32 %v4761_v13, %v4756_v18 }
0x1d36   :  { %v4763_v32 = vmul.f32 %v4762_v29, %v4728_v27 }
0x1d38   :  { %v8397_v33 = vadd.f32 %v4763_v32, %v4729_v31 }
0x1d3a   :  { %7193 = vmatmul.mubr.msk.f32.vlgmr.msra.gmra.mrb[44].mxu1 %vm1607_vm13, %v8397_v33 }
0x1d3b   :  { %7222 = vmatprep.mubr.msk.f32.mxu1 %vm7873_vm0, %v7872_v0  ;;  %7538 = vmatpush3.bf16.msra.mxu1 %v7537_v24 }
0x1d3c   :  { %7539 = vmatprep.subr.bf16.mxu1 %v7874_v1 }
0x1d3f   :  { %7541 = vmatpush3.bf16.msra.mxu1 %v7540_v20  ;;  %v5661_v20 = vld [vmem:[#allocation2 + $0x278] sm:$0x1] }
0x1d40   :  { %7230 = vmatprep.subr.mxu1 %v7872_v0 }
0x1d88   :  { %v4999_v34 = vpop.xlane.xlu0 %4998 }
0x1d89   :  { %v5000_v35 = vrot.slane %v4999_v34, 4 }
0x1d8b   :  { %v5001_v8 = vadd.f32 %v5000_v35, %v4999_v34 }
0x1d8c   :  { %v5010_v28 = vpop.xlane.xlu0 %5009 }
0x1d8d   :  { %v5002_v38 = vrot.slane %v5001_v8, 2  ;;  %v5011_v39 = vrot.slane %v5010_v28, 4 }
0x1d8f   :  { %v5012_v59 = vadd.f32 %v5011_v39, %v5010_v28  ;;  %v5003_v40 = vadd.f32 %v5002_v38, %v5001_v8  ;;  %v5268_v28 = vld [vmem:[#allocation2 + $0xf8] sm:$0xff]  ;;  %v5359_v38 = vld [vmem:[#allocation2 + $0xe8] sm:$0xff] }
0x1d91   :  { %v5013_v44 = vrot.slane %v5012_v59, 2  ;;  %v5004_v45 = vrot.slane %v5003_v40, 1 }
0x1d93   :  { %v5005_v46 = vadd.f32 %v5004_v45, %v5003_v40  ;;  %v5014_v47 = vadd.f32 %v5013_v44, %v5012_v59 }
0x1d95   :  { %7740 = vpush %v5005_v46  ;;  %v5015_v48 = vrot.slane %v5014_v47, 1 }
0x1d97   :  { %v5016_v49 = vadd.f32 %v5015_v48, %v5014_v47 }
0x1d99   :  { %7742 = vpush %v5016_v49 }
0x1dc6   :  { %s7741_s0 = spop %7740 }
0x1dc7   :  { %s5018_s15 = smul.f32 0.03125, %s7741_s0 }
0x1dc9   :  { %s5020_s16 = smul.f32 %s5018_s15, %s5018_s15  ;;  %v5022_v54 = vstv %s5018_s15 }
0x1dca   :  { %s7743_s18 = spop %7742  ;;  %v5023_v55 = vsub.f32 %v7609_v21, %v5022_v54  ;;  %v7534_v21 = vpack.c.bf16 %v5277_v17, %v5276_v16  ;;  %v5738_v17 = vld [vmem:[#allocation2 + $0x260] sm:$0xff] }
0x1dcb   :  { %s5019_s19 = smul.f32 0.03125, %s7743_s18 }
0x1dcd   :  { %s5021_s20 = ssub.f32 %s5019_s19, %s5020_s16 }
0x1dcf   :  { %s5024_s21 = sadd.f32 1e-05, %s5021_s20 }
0x1dd1   :  { %v5025_v50 = vstv %s5024_s21 }
0x1dd2   :  { %7809 = vrsqrt.f32 %v5025_v50 }
0x1ddc   :  { %v7810_v53 = vpop.eup %7809 }
0x1ddd   :  { %7744 = vpush %v7810_v53 }
0x1e0e   :  { %s7745_s22 = spop %7744 }
0x1e0f   :  { %v5028_v51 = vstv %s7745_s22 }
0x1e10   :  { %v5029_v57 = vmul.f32 %v5028_v51, %v5023_v55 }
0x1e12   :  { %v5030_v63 = vmul.f32 %v5029_v57, %v4995_v56 }
0x1e14   :  { %v5031_v2 = vadd.f32 %v5030_v63, %v4996_v62 }
0x1e16   :  { %7163 = vmatmul.mubr.msk.f32.vlgmr.msra.gmra.mrb[42].mxu0 %vm277_vm3, %v5031_v2 }
0x1e17   :  { %7508 = vmatpush3.bf16.msra.mxu0 %v7507_v60  ;;  %7173 = vmatprep.mubr.msk.f32.mxu0 %vm7873_vm0, %v7872_v0 }
0x1e18   :  { %7509 = vmatprep.subr.bf16.mxu0 %v7874_v1 }
0x1e1b   :  { %7511 = vmatpush3.bf16.msra.mxu0 %v7510_v52 }
0x1e1c   :  { %7524 = vmatprep.subr.bf16.mxu0 %v7874_v1 }
0x1e1e   :  { %7174 = vmatmul.mubr.msk.f32.vlgmr.msra.gmra.mrb[44].mxu0 %vm277_vm3, %v5031_v2 }
0x1e1f   :  { %7526 = vmatpush3.bf16.msra.mxu0 %v7525_v9  ;;  %7211 = vmatprep.mubr.msk.f32.mxu0 %vm7873_vm0, %v7872_v0 }
0x1e20   :  { %7527 = vmatprep.subr.bf16.mxu0 %v7874_v1 }
0x1e23   :  { %7529 = vmatpush3.bf16.msra.mxu0 %v7528_v12  ;;  %v7820_v12 = vld [vmem:[%s8508_s2 + $0x1] sm:$0x1] }
0x1e24   :  { %7530 = vmatprep.subr.bf16.mxu0 %v7874_v1 }
0x1e27   :  { %7532 = vmatpush3.bf16.msra.mxu0 %v7531_v3  ;;  %v5737_v3 = vld [vmem:[#allocation2 + $0x258] sm:$0xff] }
0x1e28   :  { %7533 = vmatprep.subr.bf16.mxu0 %v7874_v1  ;;  %v7543_v16 = vpack.c.bf16 %v5737_v3, %v5736_v15  ;;  %v5931_v15 = vld [vmem:[#allocation2 + $0x1f0] sm:$0xff] }
0x1e2b   :  { %7535 = vmatpush3.bf16.msra.mxu0 %v7534_v21  ;;  %v5739_v21 = vld [vmem:[#allocation2 + $0x268] sm:$0xff] }
0x1e2c   :  { %7225 = vmatprep.subr.mxu0 %v7872_v0  ;;  %v7546_v22 = vpack.c.bf16 %v5739_v21, %v5738_v17 }
0x1e2e   :  { %7212 = vmatmul.mubr.msk.f32.vlgmr.msra.gmra.mrb[46].mxu0 %vm1607_vm13, %v8397_v33  ;;  %v5352_v33 = vld [vmem:[#allocation2 + $0xe0] sm:$0xff] }
0x1e2f   :  { %7227 = vmatprep.mubr.msk.f32.mxu0 %vm7873_vm0, %v7872_v0 }
0x1ee9   :  { %v5105_v18 = vpop.f32.mrb[42].mxu0 }
0x1eea   :  { %v7164_v27 = vpop.f32.mrb[43].mxu0  ;;  %v5281_v31 = vrot.slane %v5105_v18, %v8001_v30 }
0x1ef1   :  { %v5179_v13 = vpop.f32.mrb[44].mxu0 }
0x1ef2   :  { %v7175_v29 = vpop.f32.mrb[45].mxu0  ;;  %v5194_v37 = vrot.slane %v5179_v13, %v8001_v30 }
0x1ef4   :  { %v7610_v19 = vadd.f32 %v5268_v28, %v5194_v37 }
0x1ef6   :  { %v7611_v39 = vadd.f32 %v7610_v19, %v5359_v38 }
0x1f01   :  { %v5348_v32 = vpop.f32.mrb[46].mxu0 }
0x1f02   :  { %v5349_v34 = vadd.f32 %v5348_v32, %v5281_v31  ;;  %v7213_v35 = vpop.f32.mrb[47].mxu0 }
0x1f04   :  { %v5353_v8 = vadd.f32 %v5352_v33, %v5349_v34 }
0x1f06   :  { %v5354_v36 = vmax.f32 %v5353_v8, 0.0 }
0x1f08   :  { %7223 = vmatmul.mubr.msk.f32.vlgmr.msra.gmra.mrb[44].mxu1 %vm277_vm3, %v5354_v36 }
0x1f09   :  { %7232 = vmatprep.mubr.msk.f32.mxu1 %vm7873_vm0, %v7872_v0  ;;  %7231 = vmatpush3.msk.msra.mxu1 %vm122_vm1, %v5585_v14  ;;  %v5855_v14 = vld [vmem:[#allocation2 + $0x198] sm:$0xff] }
0x1f0a   :  { %7542 = vmatprep.subr.bf16.mxu1 %v7874_v1 }
0x1f0c   :  { %7233 = vmatmul.mubr.msk.f32.vlgmr.msra.gmra.mrb[46].mxu1 %vm118_vm2, %v7820_v12 }
0x1f0d   :  { %7544 = vmatpush3.bf16.msra.mxu1 %v7543_v16  ;;  %7248 = vmatprep.mubr.msk.f32.mxu1 %vm7873_vm0, %v7872_v0  ;;  %v5932_v16 = vld [vmem:[#allocation2 + $0x1f8] sm:$0xff] }
0x1f0e   :  { %7545 = vmatprep.subr.bf16.mxu1 %v7874_v1 }
0x1f11   :  { %7547 = vmatpush3.bf16.msra.mxu1 %v7546_v22  ;;  %v7558_v22 = vpack.c.bf16 %v5932_v16, %v5931_v15 }
0x1f12   :  { %7554 = vmatprep.subr.bf16.mxu1 %v7874_v1 }
0x1fdb   :  { %v5429_v59 = vpop.f32.mrb[44].mxu1 }
0x1fdc   :  { %v7612_v40 = vadd.f32 %v7611_v39, %v5429_v59  ;;  %v7224_v41 = vpop.f32.mrb[45].mxu1 }
0x1fde   :  { %v5436_v42 = vsel %vm277_vm3, %v7612_v40, 0.0  ;;  %v5446_v43 = vmul.f32 %v7612_v40, %v7612_v40 }
0x1fdf   :  { %5437 = vadd.xlane.f32.xlu0 %v5436_v42 }
0x1fe0   :  { %v5447_v44 = vsel %vm277_vm3, %v5446_v43, 0.0 }
0x1fe1   :  { %5448 = vadd.xlane.f32.xlu1 %v5447_v44 }
0x206c   :  { %v5438_v45 = vpop.xlane.xlu0 %5437 }
0x206d   :  { %v5439_v46 = vrot.slane %v5438_v45, 4 }
0x206e   :  { %v5449_v47 = vpop.xlane.xlu1 %5448 }
0x206f   :  { %v5440_v48 = vadd.f32 %v5439_v46, %v5438_v45  ;;  %v5450_v49 = vrot.slane %v5449_v47, 4  ;;  %v5586_v46 = vld [vmem:[#allocation2 + $0x290] sm:$0x1] }
0x2071   :  { %v5441_v50 = vrot.slane %v5440_v48, 2  ;;  %v5451_v53 = vadd.f32 %v5450_v49, %v5449_v47  ;;  %v5740_v47 = vld [vmem:[#allocation2 + $0x280] sm:$0x1] }
0x2073   :  { %v5452_v54 = vrot.slane %v5451_v53, 2  ;;  %v5442_v55 = vadd.f32 %v5441_v50, %v5440_v48  ;;  %v7613_v48 = vadd.f32 %v5740_v47, %v5586_v46  ;;  %v6089_v46 = vld [vmem:[#allocation2 + $0x1b8] sm:$0xff] }
0x2074   :  { %v5548_v47 = vld [vmem:[#allocation2 + $0x2b8] sm:$0xff] }
0x2075   :  { %v5453_v56 = vadd.f32 %v5452_v54, %v5451_v53  ;;  %v5443_v51 = vrot.slane %v5442_v55, 1 }
0x2077   :  { %v5444_v57 = vadd.f32 %v5443_v51, %v5442_v55  ;;  %v5454_v58 = vrot.slane %v5453_v56, 1 }
0x2079   :  { %7746 = vpush %v5444_v57  ;;  %v5455_v61 = vadd.f32 %v5454_v58, %v5453_v56 }
0x207b   :  { %7748 = vpush %v5455_v61 }
0x20aa   :  { %s7747_s23 = spop %7746 }
0x20ab   :  { %s5457_s24 = smul.f32 0.00390625, %s7747_s23 }
0x20ac   :  { %s7749_s27 = spop %7748 }
0x20ad   :  { %s5459_s1 = smul.f32 %s5457_s24, %s5457_s24  ;;  %v5461_v60 = vstv %s5457_s24 }
0x20ae   :  { %s5458_s28 = smul.f32 0.00390625, %s7749_s27  ;;  %v5462_v2 = vsub.f32 %v7612_v40, %v5461_v60  ;;  %v5853_v60 = vld [vmem:[#allocation2 + $0x188] sm:$0xff] }
0x20b0   :  { %s5460_s29 = ssub.f32 %s5458_s28, %s5459_s1 }
0x20b2   :  { %s5463_s3 = sadd.f32 1e-05, %s5460_s29 }
0x20b4   :  { %v5464_v62 = vstv %s5463_s3  ;;  %s7877_s3 = smov [#allocation5]  }
0x20b5   :  { %7811 = vrsqrt.f32 %v5464_v62 }
0x20bf   :  { %v7812_v63 = vpop.eup %7811 }
0x20c0   :  { %7750 = vpush %v7812_v63  ;;  %v5852_v63 = vld [vmem:[#allocation2 + $0x180] sm:$0xff] }
0x20f1   :  { %s7751_s30 = spop %7750 }
0x20f2   :  { %v5467_v5 = vstv %s7751_s30  ;;  %s6290_s30 = sshll.u32 %s7877_s3, 4  ;;  %s6291_s30 = int_to_ptr.vmem [resolvable:$true] %s6290_s30 }
0x20f3   :  { %v5468_v52 = vmul.f32 %v5467_v5, %v5462_v2  ;;  %v5929_v2 = vld [vmem:[#allocation2 + $0x1e0] sm:$0xff]  ;;  %v7549_v5 = vpack.c.bf16 %v5853_v60, %v5852_v63  ;;  %s7843_s5 = scalar_lea.vmem %s6291_s30, 256  ;;  %p7848_p9 = scmp.lt.s32.totalorder %s6291_s30, %s6291_s30 }
0x20f4   :  { %p7844_p8 = scmp.ne.s32.totalorder %s6291_s30, %s7843_s5  ;;  %p7849_p10 = scmp.lt.s32.totalorder %s7843_s5, %s7843_s5 }
0x20f5   :  { %v5469_v7 = vmul.f32 %v5468_v52, %v5434_v4  ;;  %v5930_v52 = vld [vmem:[#allocation2 + $0x1e8] sm:$0xff] }
0x20f6   :  { %p7850_p11 = por %p7849_p10, %p7848_p9 }
0x20f7   :  { %v5470_v9 = vadd.f32 %v5469_v7, %v5435_v6 }
0x20f8   :  { %p7851_p12 = pnand %p7850_p11, %p7844_p8 }
0x20f9   :  { %7226 = vmatpush3.msra.mxu0 %v5470_v9 }
0x20fa   :  { %7228 = vmatmul.mubr.msk.f32.vlgmr.msra.gmra.mrb[48].mxu0 %vm1529_vm12, %v5471_v10  ;;  %7235 = vmatprep.subr.mxu0 %v7872_v0 }
0x20fb   :  { %7236 = vmatpush3.msk.msra.mxu0 %vm122_vm1, %v5660_v11  ;;  %7237 = vmatprep.mubr.msk.f32.mxu0 %vm7873_vm0, %v7872_v0 }
0x20fc   :  { %7548 = vmatprep.subr.bf16.mxu0 %v7874_v1 }
0x20fe   :  { %7238 = vmatmul.mubr.msk.f32.vlgmr.msra.gmra.mrb[50].mxu0 %vm118_vm2, %v7820_v12  ;;  %v5854_v12 = vld [vmem:[#allocation2 + $0x190] sm:$0xff] }
0x20ff   :  { %7259 = vmatprep.mubr.msk.f32.mxu0 %vm7873_vm0, %v7872_v0  ;;  %7550 = vmatpush3.bf16.msra.mxu0 %v7549_v5  ;;  %v7552_v3 = vpack.c.bf16 %v5855_v14, %v5854_v12  ;;  %v6164_v5 = vld [vmem:[#allocation2 + $0x220] sm:$0xff] }
0x2100   :  { %7551 = vmatprep.subr.bf16.mxu0 %v7874_v1 }
0x2103   :  { %7553 = vmatpush3.bf16.msra.mxu0 %v7552_v3 }
0x2104   :  { %7560 = vmatprep.subr.bf16.mxu0 %v7874_v1 }
0x21cd   :  { %v5542_v24 = vpop.f32.mrb[48].mxu0 }
0x21ce   :  { %v5543_v25 = vadd.f32 %v5542_v24, %v5472_v23  ;;  %v7229_v26 = vpop.f32.mrb[49].mxu0 }
0x21d0   :  { %v5546_v18 = vmax.f32 %v5543_v25, 0.0 }
0x21d1   :  { %v5731_v27 = vpop.f32.mrb[50].mxu0 }
0x21d2   :  { %v8449_v13 = vadd.f32 %v5546_v18, %v5470_v9  ;;  %v5732_v29 = vadd.f32 %v5731_v27, %v5661_v20  ;;  %v7239_v31 = vpop.f32.mrb[51].mxu0  ;;  %v7555_v9 = vpack.c.bf16 %v5930_v52, %v5929_v2 }
0x21d4   :  { %v5735_v32 = vmax.f32 %v5732_v29, 0.0  ;;  %v5550_v33 = vsel %vm277_vm3, %v8449_v13, 0.0  ;;  %v5560_v34 = vmul.f32 %v8449_v13, %v8449_v13 }
0x21d5   :  { %5551 = vadd.xlane.f32.xlu0 %v5550_v33 }
0x21d6   :  { %7249 = vmatmul.mubr.msk.f32.vlgmr.msra.gmra.mrb[46].mxu1 %vm277_vm3, %v5735_v32  ;;  %v5561_v35 = vsel %vm277_vm3, %v5560_v34, 0.0  ;;  %v5815_v32 = vld [vmem:[#allocation2 + $0x298] sm:$0x1]  ;;  %v6003_v34 = vld [vmem:[#allocation2 + $0x200] sm:$0xff] }
0x21d7   :  { %7270 = vmatprep.mubr.msk.f32.mxu1 %vm7873_vm0, %v7872_v0  ;;  %7556 = vmatpush3.bf16.msra.mxu1 %v7555_v9  ;;  %v6084_v9 = vld [vmem:[#allocation2 + $0x238] sm:$0xff] }
0x21d8   :  { %7557 = vmatprep.subr.bf16.mxu1 %v7874_v1 }
0x21d9   :  { %5562 = vadd.xlane.f32.xlu0 %v5561_v35 }
0x21db   :  { %7559 = vmatpush3.bf16.msra.mxu1 %v7558_v22 }
0x21dc   :  { %7566 = vmatprep.subr.bf16.mxu1 %v7874_v1 }
0x2262   :  { %v5552_v8 = vpop.xlane.xlu0 %5551 }
0x2263   :  { %v5553_v36 = vrot.slane %v5552_v8, 4 }
0x2265   :  { %v5554_v37 = vadd.f32 %v5553_v36, %v5552_v8  ;;  %v6004_v8 = vld [vmem:[#allocation2 + $0x208] sm:$0xff]  ;;  %v6086_v36 = vld [vmem:[#allocation2 + $0x1a0] sm:$0xff] }
0x2266   :  { %v5563_v28 = vpop.xlane.xlu0 %5562 }
0x2267   :  { %v5555_v19 = vrot.slane %v5554_v37, 2  ;;  %v5564_v38 = vrot.slane %v5563_v28, 4 }
0x2269   :  { %v5565_v39 = vadd.f32 %v5564_v38, %v5563_v28  ;;  %v5556_v59 = vadd.f32 %v5555_v19, %v5554_v37  ;;  %v6087_v37 = vld [vmem:[#allocation2 + $0x1a8] sm:$0xff] }
0x226a   :  { %v5816_v19 = vld [vmem:[#allocation2 + $0x288] sm:$0x1] }
0x226b   :  { %v5566_v40 = vrot.slane %v5565_v39, 2  ;;  %v5557_v41 = vrot.slane %v5556_v59, 1 }
0x226d   :  { %v5558_v42 = vadd.f32 %v5557_v41, %v5556_v59  ;;  %v5567_v43 = vadd.f32 %v5566_v40, %v5565_v39  ;;  %v7561_v59 = vpack.c.bf16 %v6004_v8, %v6003_v34  ;;  %v7567_v40 = vpack.c.bf16 %v6087_v37, %v6086_v36  ;;  %v6005_v41 = vld [vmem:[#allocation2 + $0x210] sm:$0xff] }
0x226f   :  { %7752 = vpush %v5558_v42  ;;  %v5568_v44 = vrot.slane %v5567_v43, 1 }
0x2271   :  { %v5569_v45 = vadd.f32 %v5568_v44, %v5567_v43  ;;  %v6006_v44 = vld [vmem:[#allocation2 + $0x218] sm:$0xff] }
0x2273   :  { %7754 = vpush %v5569_v45  ;;  %v6088_v45 = vld [vmem:[#allocation2 + $0x1b0] sm:$0xff] }
0x22a0   :  { %s7753_s2 = spop %7752 }
0x22a1   :  { %s8459_s7 = smul.f32 0.00390625, %s7753_s2 }
0x22a3   :  { %s5573_s17 = smul.f32 %s8459_s7, %s8459_s7  ;;  %v5575_v31 = vstv %s8459_s7 }
0x22a4   :  { %s7755_s8 = spop %7754  ;;  %v5576_v38 = vsub.f32 %v8449_v13, %v5575_v31  ;;  %v5549_v13 = vld [vmem:[#allocation2 + $0x2b0] sm:$0xff] }
0x22a5   :  { %s5572_s9 = smul.f32 0.00390625, %s7755_s8 }
0x22a7   :  { %s5574_s10 = ssub.f32 %s5572_s9, %s5573_s17 }
0x22a9   :  { %s5577_s11 = sadd.f32 1e-05, %s5574_s10  ;;  %v5810_v49 = vpop.f32.mrb[46].mxu1 }
0x22aa   :  { %v7614_v50 = vadd.f32 %v7613_v48, %v5810_v49  ;;  %v7250_v53 = vpop.f32.mrb[47].mxu1  ;;  %v7564_v48 = vpack.c.bf16 %v6006_v44, %v6005_v41  ;;  %v7570_v49 = vpack.c.bf16 %v6089_v46, %v6088_v45 }
0x22ab   :  { %v5578_v54 = vstv %s5577_s11 }
0x22ac   :  { %7813 = vrsqrt.f32 %v5578_v54  ;;  %v5817_v55 = vsel %vm354_vm8, %v7614_v50, 0.0  ;;  %v5827_v56 = vmul.f32 %v7614_v50, %v7614_v50  ;;  %v6167_v54 = vld [vmem:[#allocation2 + $0x1c0] sm:$0xff] }
0x22ad   :  { %5818 = vadd.xlane.f32.xlu0 %v5817_v55  ;;  %v6168_v55 = vld [vmem:[#allocation2 + $0x1c8] sm:$0xff] }
0x22ae   :  { %v5828_v51 = vsel %vm354_vm8, %v5827_v56, 0.0  ;;  %v7573_v56 = vpack.c.bf16 %v6168_v55, %v6167_v54 }
0x22b1   :  { %5829 = vadd.xlane.f32.xlu0 %v5828_v51  ;;  %v6169_v51 = vld [vmem:[#allocation2 + $0x1d0] sm:$0xff] }
0x22b6   :  { %v7814_v57 = vpop.eup %7813 }
0x22b7   :  { %7756 = vpush %v7814_v57  ;;  %v6170_v57 = vld [vmem:[#allocation2 + $0x1d8] sm:$0xff] }
0x22e8   :  { %s7757_s12 = spop %7756 }
0x22e9   :  { %v5581_v28 = vstv %s7757_s12 }
0x22ea   :  { %v5582_v42 = vmul.f32 %v5581_v28, %v5576_v38  ;;  %v6246_v28 = vld [vmem:[#allocation2 + $0x240] sm:$0xff] }
0x233a   :  { %v5819_v58 = vpop.xlane.xlu0 %5818 }
0x233b   :  { %v5820_v61 = vrot.slane %v5819_v58, 4 }
0x233d   :  { %v5821_v62 = vadd.f32 %v5820_v61, %v5819_v58  ;;  %v7576_v58 = vpack.c.bf16 %v6170_v57, %v6169_v51 }
0x233e   :  { %v5830_v4 = vpop.xlane.xlu0 %5829 }
0x233f   :  { %v5822_v6 = vrot.slane %v5821_v62, 2  ;;  %v5831_v7 = vrot.slane %v5830_v4, 4 }
0x2341   :  { %v5832_v10 = vadd.f32 %v5831_v7, %v5830_v4  ;;  %v5823_v11 = vadd.f32 %v5822_v6, %v5821_v62 }
0x2343   :  { %v5833_v17 = vrot.slane %v5832_v10, 2  ;;  %v5824_v21 = vrot.slane %v5823_v11, 1 }
0x2345   :  { %v5825_v23 = vadd.f32 %v5824_v21, %v5823_v11  ;;  %v5834_v24 = vadd.f32 %v5833_v17, %v5832_v10  ;;  %v6171_v11 = vld [vmem:[#allocation2 + $0x228] sm:$0xff] }
0x2347   :  { %7758 = vpush %v5825_v23  ;;  %v5835_v25 = vrot.slane %v5834_v24, 1 }
0x2349   :  { %v5836_v26 = vadd.f32 %v5835_v25, %v5834_v24 }
0x234b   :  { %7760 = vpush %v5836_v26 }
0x2378   :  { %s7759_s13 = spop %7758 }
0x2379   :  { %s5838_s14 = smul.f32 0.03125, %s7759_s13 }
0x237b   :  { %s5840_s0 = smul.f32 %s5838_s14, %s5838_s14  ;;  %v5842_v27 = vstv %s5838_s14 }
0x237c   :  { %s7761_s15 = spop %7760  ;;  %v5843_v29 = vsub.f32 %v7614_v50, %v5842_v27  ;;  %v5583_v50 = vmul.f32 %v5582_v42, %v5548_v47 }
0x237d   :  { %s5839_s16 = smul.f32 0.03125, %s7761_s15 }
0x237e   :  { %v5584_v53 = vadd.f32 %v5583_v50, %v5549_v13 }
0x237f   :  { %s5841_s18 = ssub.f32 %s5839_s16, %s5840_s0 }
0x2381   :  { %s5844_s19 = sadd.f32 1e-05, %s5841_s18 }
0x2383   :  { %v5845_v20 = vstv %s5844_s19 }
0x2384   :  { %7815 = vrsqrt.f32 %v5845_v20 }
0x238e   :  { %v7816_v18 = vpop.eup %7815 }
0x238f   :  { %7762 = vpush %v7816_v18 }
0x23c0   :  { %s7763_s20 = spop %7762 }
0x23c1   :  { %v5848_v33 = vstv %s7763_s20 }
0x23c2   :  { %v5849_v35 = vmul.f32 %v5848_v33, %v5843_v29 }
0x23c4   :  { %v5850_v39 = vmul.f32 %v5849_v35, %v5815_v32 }
0x23c6   :  { %v5851_v43 = vadd.f32 %v5850_v39, %v5816_v19  ;;  %v6247_v39 = vld [vmem:[#allocation2 + $0x230] sm:$0xff] }
0x23c8   :  { %7260 = vmatmul.mubr.msk.f32.vlgmr.msra.gmra.mrb[52].mxu0 %vm277_vm3, %v5851_v43  ;;  %7271 = vmatmul.mubr.msk.f32.vlgmr.msra.gmra.mrb[48].mxu1 %vm277_vm3, %v5851_v43 }
0x23c9   :  { %7562 = vmatpush3.bf16.msra.mxu0 %v7561_v59  ;;  %7568 = vmatpush3.bf16.msra.mxu1 %v7567_v40 }
0x23ca   :  { %7563 = vmatprep.subr.bf16.mxu0 %v7874_v1  ;;  %7569 = vmatprep.subr.bf16.mxu1 %v7874_v1 }
0x23cb   :  { %7281 = vmatprep.mubr.msk.f32.mxu0 %vm7873_vm0, %v7872_v0  ;;  %7292 = vmatprep.mubr.msk.f32.mxu1 %vm7873_vm0, %v7872_v0 }
0x23cd   :  { %7565 = vmatpush3.bf16.msra.mxu0 %v7564_v48  ;;  %7571 = vmatpush3.bf16.msra.mxu1 %v7570_v49 }
0x23ce   :  { %7572 = vmatprep.subr.bf16.mxu0 %v7874_v1 }
0x23d0   :  { %7282 = vmatmul.mubr.msk.f32.vlgmr.msra.gmra.mrb[54].mxu0 %vm277_vm3, %v5584_v53  ;;  %7293 = vmatmul.mubr.msk.f32.vlgmr.msra.gmra.mrb[50].mxu1 %vm277_vm3, %v5584_v53 }
0x23d1   :  { %7303 = vmatprep.mubr.msk.f32.mxu0 %vm7873_vm0, %v7872_v0  ;;  %7574 = vmatpush3.bf16.msra.mxu0 %v7573_v56 }
0x23d2   :  { %7575 = vmatprep.subr.bf16.mxu0 %v7874_v1 }
0x23d5   :  { %7577 = vmatpush3.bf16.msra.mxu0 %v7576_v58 }
0x249b   :  { %v5925_v61 = vpop.f32.mrb[52].mxu0  ;;  %v5999_v62 = vpop.f32.mrb[48].mxu1 }
0x249c   :  { %v7261_v63 = vpop.f32.mrb[53].mxu0  ;;  %v7272_v60 = vpop.f32.mrb[49].mxu1  ;;  %v6093_v2 = vrot.slane %v5925_v61, %v8001_v30  ;;  %v6010_v1 = vrot.slane %v5999_v62, %v8001_v30 }
0x249e   :  { %v7615_v10 = vadd.f32 %v6084_v9, %v6010_v1 }
0x24a0   :  { %v7616_v12 = vadd.f32 %v7615_v10, %v6171_v11 }
0x24a3   :  { %v6160_v4 = vpop.f32.mrb[50].mxu1 }
0x24a4   :  { %v6161_v52 = vadd.f32 %v6160_v4, %v6093_v2  ;;  %v7294_v0 = vpop.f32.mrb[51].mxu1 }
0x24a6   :  { %v6165_v6 = vadd.f32 %v6164_v5, %v6161_v52 }
0x24a8   :  { %v6166_v7 = vmax.f32 %v6165_v6, 0.0 }
0x24aa   :  { %7304 = vmatmul.mubr.msk.f32.vlgmr.msra.gmra.mrb[54].mxu0 %vm277_vm3, %v6166_v7 }
0x257d   :  { %v6241_v14 = vpop.f32.mrb[54].mxu0 }
0x257e   :  { %v7617_v15 = vadd.f32 %v7616_v12, %v6241_v14  ;;  %v7305_v3 = vpop.f32.mrb[55].mxu0 }
0x2580   :  { %v6248_v16 = vsel %vm277_vm3, %v7617_v15, 0.0  ;;  %v6258_v17 = vmul.f32 %v7617_v15, %v7617_v15 }
0x2581   :  { %6249 = vadd.xlane.f32.xlu0 %v6248_v16 }
0x2582   :  { %v6259_v21 = vsel %vm277_vm3, %v6258_v17, 0.0 }
0x2585   :  { %6260 = vadd.xlane.f32.xlu0 %v6259_v21 }
0x260e   :  { %v6250_v22 = vpop.xlane.xlu0 %6249 }
0x260f   :  { %v6251_v23 = vrot.slane %v6250_v22, 4 }
0x2611   :  { %v6252_v24 = vadd.f32 %v6251_v23, %v6250_v22 }
0x2612   :  { %v6261_v25 = vpop.xlane.xlu0 %6260 }
0x2613   :  { %v6253_v26 = vrot.slane %v6252_v24, 2  ;;  %v6262_v30 = vrot.slane %v6261_v25, 4 }
0x2615   :  { %v6263_v20 = vadd.f32 %v6262_v30, %v6261_v25  ;;  %v6254_v18 = vadd.f32 %v6253_v26, %v6252_v24 }
0x2617   :  { %v6264_v27 = vrot.slane %v6263_v20, 2  ;;  %v6255_v29 = vrot.slane %v6254_v18, 1 }
0x2619   :  { %v6265_v31 = vadd.f32 %v6264_v27, %v6263_v20  ;;  %v6256_v32 = vadd.f32 %v6255_v29, %v6254_v18 }
0x261b   :  { %7764 = vpush %v6256_v32  ;;  %v6266_v33 = vrot.slane %v6265_v31, 1 }
0x261d   :  { %v6267_v34 = vadd.f32 %v6266_v33, %v6265_v31 }
0x261f   :  { %7766 = vpush %v6267_v34 }
0x264c   :  { %s7765_s21 = spop %7764 }
0x264d   :  { %s6269_s22 = smul.f32 0.00390625, %s7765_s21 }
0x264f   :  { %s6271_s23 = smul.f32 %s6269_s22, %s6269_s22  ;;  %v6273_v36 = vstv %s6269_s22 }
0x2650   :  { %s7767_s24 = spop %7766  ;;  %v6274_v37 = vsub.f32 %v7617_v15, %v6273_v36 }
0x2651   :  { %s6270_s27 = smul.f32 0.00390625, %s7767_s24 }
0x2653   :  { %s6272_s1 = ssub.f32 %s6270_s27, %s6271_s23 }
0x2655   :  { %s6275_s28 = sadd.f32 1e-05, %s6272_s1 }
0x2657   :  { %v6276_v35 = vstv %s6275_s28 }
0x2658   :  { %7817 = vrsqrt.f32 %v6276_v35 }
0x2662   :  { %v7818_v8 = vpop.eup %7817 }
0x2663   :  { %7768 = vpush %v7818_v8 }
0x2694   :  { %s7769_s29 = spop %7768 }
0x2695   :  { %v6279_v19 = vstv %s7769_s29 }
0x2696   :  { %v6280_v38 = vmul.f32 %v6279_v19, %v6274_v37 }
0x2698   :  { %v6281_v59 = vmul.f32 %v6280_v38, %v6246_v28 }
0x269a   :  { %v6282_v40 = vadd.f32 %v6281_v59, %v6247_v39 }
0x269c   :  { %6284 = vst.msk [vmem:[#allocation5 + $0x8] sm:$0xff] %vm277_vm3, %v6282_v40 }
0x269d   :  { %7854 = shalt.err (!%p7851_p12)
}
0x269e   :  { %s7855_s7 = scalar_lea.hbm %s8510_s4, 256 }
0x269f   :  { %p7856_p13 = scmp.ne.s32.totalorder %s8510_s4, %s7855_s7  ;;  %p7859_p0 = scmp.lt.u32.totalorder %s7855_s7, %s8510_s4 }
0x26a1   :  { %p7861_p1 = pnand %p7859_p0, %p7856_p13 }
0x26a3   :  { %7864 = shalt.err (!%p7861_p1)
}
0x26a4   :  { %6296 = dma.vmem_to_hbm [thread:$0]  %s6291_s30, 256, %s8510_s4, [#allocation4], %s7870_s25, %s7870_s25, %s7871_s26  }
0x26a5   :  { %7867 = dma.done.wait [#allocation4], 256  }
0x26a6   :  { %7868 = vsyncadd [#allocation4], 4294967040 }
0x26a7   :  { %6300 = vsyncpa [#allocation3], 1 }
0x26a8   :  { %6301 = vsyncpa [#allocation4], 1 }

</bundles_post_ra>
